<compile_context>
chip_gen: v7x
topology: tpu7x:2x2x1
jax: 0.10.0
libtpu: 0.0.40
codegen_flags: <defaults>
</compile_context>

<pallas_src>
import functools

import jax
import jax.numpy as jnp
from jax import lax
from jax.experimental import pallas as pl
from jax.experimental.pallas import tpu as pltpu

EPS = 1e-5  # PyTorch nn.LayerNorm default


# ----------------------------------------------------------------------------
# Fused kernel: LN -> MLP -> LN -> Linear(odim) [-> symmetrize] -> log_softmax
#   vecs rows: 0=ln1.gamma 1=ln1.beta 2=b1 3=b2 4=b3 5=ln2.gamma 6=ln2.beta
#              7=b4 (padded to width C)
# ----------------------------------------------------------------------------
def task_kernel(x_ref, w_ref, v_ref, w4_ref, o_ref, *, symm, L, odim):
    x = x_ref[...]                                  # (rows, C) f32
    v = v_ref[...]                                  # (8, C)    f32
    g1, be1 = v[0:1], v[1:2]
    b1, b2, b3 = v[2:3], v[3:4], v[4:5]
    g2, be2 = v[5:6], v[6:7]
    b4 = v[7:8, :odim]                              # (1, odim)

    def mm(a, w):
        # f32 in / f32 accumulate on the MXU.  No bf16 casts: at C=32 the MXU
        # is a few % utilized either way and the casts only add VPU work.
        return jnp.dot(a, w, preferred_element_type=jnp.float32)

    # LayerNorm 1 (biased variance, eps inside the rsqrt -- matches PyTorch).
    mu = jnp.mean(x, axis=-1, keepdims=True)
    var = jnp.mean((x - mu) ** 2, axis=-1, keepdims=True)
    h = (x - mu) * lax.rsqrt(var + EPS) * g1 + be1

    # relu(linear1), relu(linear2), residual linear3.
    h = jnp.maximum(mm(h, w_ref[0]) + b1, 0.0)
    h = jnp.maximum(mm(h, w_ref[1]) + b2, 0.0)
    s = x + mm(h, w_ref[2]) + b3

    # LayerNorm 2.
    mu2 = jnp.mean(s, axis=-1, keepdims=True)
    var2 = jnp.mean((s - mu2) ** 2, axis=-1, keepdims=True)
    s2 = (s - mu2) * lax.rsqrt(var2 + EPS) * g2 + be2

    # linear4 -> odim logits.
    z = mm(s2, w4_ref[...]) + b4                    # (rows, odim)

    if symm:
        # rows == L*L here (the wrapper forces a single grid step for symm).
        # out[i*L+j] = 0.5 * (z[i*L+j] + z[j*L+i]) implemented as one matmul
        # with the (N, N) "commutation" permutation matrix built from iotas.
        # Only 0/1 entries -> the MXU pass is numerically exact on z.
        # TODO(synk): for large L replace this O(N^2) permutation matrix with
        # a tiled/DMA-based transpose; at the module's small pair sizes the
        # matrix is a few hundred KiB and the matmul is free (idle MXU).
        n = z.shape[0]
        rows_i = lax.broadcasted_iota(jnp.int32, (n, n), 0)   # flat row index r
        cols_i = lax.broadcasted_iota(jnp.int32, (n, n), 1)   # flat col index s
        if (L & (L - 1)) == 0:                      # power-of-two L: shift/mask
            sh = (L - 1).bit_length()
            ii = rows_i >> sh
            jj = rows_i & (L - 1)
        else:                                       # general L
            ii = rows_i // L
            jj = rows_i - ii * L
        partner = jj * L + ii                       # index of the (j, i) pair
        perm = jnp.where(cols_i == partner, 1.0, 0.0)          # (n, n) f32 0/1
        z_sw = jnp.dot(perm, z, preferred_element_type=jnp.float32)
        z = (z + z_sw) * 0.5

    # log_softmax over the (small) channel dim.  The axis=-1 reductions touch
    # only 8 lanes, but the slab is a few KiB in one grid step -- cheaper than
    # extra in-kernel transposes or a separate lane-dense pass + layout fix.
    m = jnp.max(z, axis=-1, keepdims=True)
    zz = z - m
    o_ref[...] = zz - jnp.log(jnp.sum(jnp.exp(zz), axis=-1, keepdims=True))


# ----------------------------------------------------------------------------
# Wrapper
# ----------------------------------------------------------------------------
def _vmem_limit_bytes(rows, c, odim, n_total, symm):
    f32 = 4
    io = 2 * (rows * c + rows * odim) * f32                  # double-buffered I/O
    params = 2 * (3 * c * c + 8 * c + c * odim) * f32        # param blocks (x2)
    inter = (6 * rows * c + 4 * rows * odim) * f32           # in-kernel temps
    if symm:
        inter += 3 * n_total * n_total * f32                 # perm matrix + iotas
    est = 2 * (io + params + inter)
    # Cap at 32 MiB so the scoped limit leaves headroom on v7x (64 MiB VMEM/TC);
    # generous 8 MiB floor so tiny shapes never hit a too-tight limit.
    return int(min(32 * 2 ** 20, max(8 * 2 ** 20, est)))


def task_module_forward(x, p, symm, *, rows_per_block=None):
    """x: (L, L, C) f32 -> (L, L, odim) f32 log-probabilities.

    rows_per_block: optional row tiling of the flattened (L*L, C) tensor for
        the symm=False path (must divide L*L and be a multiple of 8).  Default
        (and forced for symm=True) is a single grid step -- at these sizes the
        kernel is launch-overhead-bound and extra grid steps are pure cost.
    """
    L, L2, C = x.shape
    assert L == L2
    odim = p["w4"].shape[1]
    N = L * L

    x2d = x.reshape(N, C)                    # row-major reshape: free

    if symm or rows_per_block is None:
        rows_per_block = N                   # single grid step
    assert N % rows_per_block == 0
    assert rows_per_block == N or rows_per_block % 8 == 0
    n_steps = N // rows_per_block

    in_specs = [
        pl.BlockSpec((rows_per_block, C), lambda i: (i, 0)),   # x rows
        pl.BlockSpec((3, C, C), lambda i: (0, 0, 0)),          # w1,w2,w3 packed
        pl.BlockSpec((8, C), lambda i: (0, 0)),                # gammas/betas/biases (+b4)
        pl.BlockSpec((C, odim), lambda i: (0, 0)),             # w4
    ]
    out_spec = pl.BlockSpec((rows_per_block, odim), lambda i: (i, 0))
    # TODO(synk): if n_steps > 1 at larger shapes, single-buffer the constant
    # index param specs (pipeline_mode=pl.Buffered(1)) to halve resident-weight
    # VMEM; with the default single grid step it is a no-op.

    kernel = functools.partial(task_kernel, symm=symm, L=L, odim=odim)
    out2d = pl.pallas_call(
        kernel,
        out_shape=jax.ShapeDtypeStruct((N, odim), jnp.float32),
        grid_spec=pltpu.PrefetchScalarGridSpec(
            num_scalar_prefetch=0,
            grid=(n_steps,),
            in_specs=in_specs,
            out_specs=out_spec),
        compiler_params=pltpu.CompilerParams(
            dimension_semantics=("arbitrary",) if n_steps == 1 else ("parallel",),
            vmem_limit_bytes=_vmem_limit_bytes(rows_per_block, C, odim, N, symm)),
    )(x2d, p["wstack"], p["vecs"], p["w4"])

    return out2d.reshape(L, L, odim)         # row-major reshape: free


# ----------------------------------------------------------------------------
# Pure-JAX reference (mirrors the PyTorch module semantics)
# ----------------------------------------------------------------------------
def task_module_ref(x, p, symm):
    g1, be1, b1, b2, b3, g2, be2 = (p["vecs"][k] for k in range(7))
    w1, w2, w3 = p["wstack"][0], p["wstack"][1], p["wstack"][2]

    def ln(v, g, b):
        mu = v.mean(-1, keepdims=True)
        var = ((v - mu) ** 2).mean(-1, keepdims=True)
        return (v - mu) / jnp.sqrt(var + EPS) * g + b

    s = ln(x, g1, be1)
    s = jax.nn.relu(s @ w1 + b1)
    s = jax.nn.relu(s @ w2 + b2)
    s = x + (s @ w3 + b3)
    s = ln(s, g2, be2) @ p["w4"] + p["b4"]
    if symm:
        s = (s + jnp.swapaxes(s, 0, 1)) * 0.5
    return jax.nn.log_softmax(s, axis=-1)


def init_params(key, c, odim):
    assert odim <= c, "b4 is packed into the (8, C) vecs stack"
    ks = jax.random.split(key, 8)
    scale = 1.0 / jnp.sqrt(c)
    w1 = jax.random.normal(ks[0], (c, c), jnp.float32) * scale
    w2 = jax.random.normal(ks[1], (c, c), jnp.float32) * scale
    w3 = jax.random.normal(ks[2], (c, c), jnp.float32) * scale
    w4 = jax.random.normal(ks[3], (c, odim), jnp.float32) * scale
    b1 = jax.random.normal(ks[4], (c,), jnp.float32) * 0.01
    b2 = jax.random.normal(ks[5], (c,), jnp.float32) * 0.01
    b3 = jax.random.normal(ks[6], (c,), jnp.float32) * 0.01
    b4 = jax.random.normal(ks[7], (odim,), jnp.float32) * 0.01
    g1 = jnp.ones((c,), jnp.float32)
    be1 = jnp.zeros((c,), jnp.float32)
    g2 = jnp.ones((c,), jnp.float32)
    be2 = jnp.zeros((c,), jnp.float32)
    b4_pad = jnp.zeros((c,), jnp.float32).at[:odim].set(b4)
    return {
        "wstack": jnp.stack([w1, w2, w3]),                          # (3, c, c)
        "vecs": jnp.stack([g1, be1, b1, b2, b3, g2, be2, b4_pad]),  # (8, c)
        "w4": w4,                                                   # (c, odim)
        "b4": b4,                                                   # (odim,) ref only
    }


if __name__ == "__main__":
    L, C, ODIM = 16, 32, 8       # pair length, channels, task output dim
    key = jax.random.PRNGKey(0)
    kx, kp = jax.random.split(key)
    x = jax.random.normal(kx, (L, L, C), jnp.float32)
    params = init_params(kp, C, ODIM)

    for symm in (True, False):
        out = jax.block_until_ready(task_module_forward(x, params, symm))
        ref = task_module_ref(x, params, symm)
        assert out.shape == (L, L, ODIM)
        err = float(jnp.max(jnp.abs(out - ref)))
        assert jnp.allclose(out, ref, atol=1e-4, rtol=1e-4), (symm, err)

    print("KERNEL_OK")
</pallas_src>

<mosaic_0001>
module attributes {stable_mosaic.version = 11 : i64} {
  func.func @task_kernel(%arg0: i32, %arg1: memref<256x32xf32, #tpu.memory_space<vmem>>, %arg2: memref<3x32x32xf32, #tpu.memory_space<vmem>>, %arg3: memref<8x32xf32, #tpu.memory_space<vmem>>, %arg4: memref<32x8xf32, #tpu.memory_space<vmem>>, %arg5: memref<256x8xf32, #tpu.memory_space<vmem>>) attributes {dimension_semantics = [#tpu.dimension_semantics<arbitrary>], iteration_bounds = array<i64: 1>, scalar_prefetch = 0 : i64, scratch_operands = 0 : i64, tpu.core_type = #tpu.core_type<tc>, window_params = [{transform_indices = @transform_0, window_bounds = array<i64: 256, 32>}, {pipeline_mode = #tpu.pipeline_mode<synchronous>, transform_indices = @transform_1, window_bounds = array<i64: 3, 32, 32>}, {pipeline_mode = #tpu.pipeline_mode<synchronous>, transform_indices = @transform_2, window_bounds = array<i64: 8, 32>}, {pipeline_mode = #tpu.pipeline_mode<synchronous>, transform_indices = @transform_3, window_bounds = array<i64: 32, 8>}, {transform_indices = @transform_4, window_bounds = array<i64: 256, 8>}]} {
    %c0 = arith.constant 0 : index
    %c0_0 = arith.constant 0 : index
    %0 = vector.load %arg1[%c0, %c0_0] : memref<256x32xf32, #tpu.memory_space<vmem>>, vector<256x32xf32>
    %c0_1 = arith.constant 0 : index
    %c0_2 = arith.constant 0 : index
    %1 = vector.load %arg3[%c0_1, %c0_2] : memref<8x32xf32, #tpu.memory_space<vmem>>, vector<8x32xf32>
    %2 = vector.extract_strided_slice %1 {offsets = [0, 0], sizes = [1, 32], strides = [1, 1]} : vector<8x32xf32> to vector<1x32xf32>
    %3 = vector.extract_strided_slice %1 {offsets = [1, 0], sizes = [1, 32], strides = [1, 1]} : vector<8x32xf32> to vector<1x32xf32>
    %4 = vector.extract_strided_slice %1 {offsets = [2, 0], sizes = [1, 32], strides = [1, 1]} : vector<8x32xf32> to vector<1x32xf32>
    %5 = vector.extract_strided_slice %1 {offsets = [3, 0], sizes = [1, 32], strides = [1, 1]} : vector<8x32xf32> to vector<1x32xf32>
    %6 = vector.extract_strided_slice %1 {offsets = [4, 0], sizes = [1, 32], strides = [1, 1]} : vector<8x32xf32> to vector<1x32xf32>
    %7 = vector.extract_strided_slice %1 {offsets = [5, 0], sizes = [1, 32], strides = [1, 1]} : vector<8x32xf32> to vector<1x32xf32>
    %8 = vector.extract_strided_slice %1 {offsets = [6, 0], sizes = [1, 32], strides = [1, 1]} : vector<8x32xf32> to vector<1x32xf32>
    %9 = vector.extract_strided_slice %1 {offsets = [7, 0], sizes = [1, 8], strides = [1, 1]} : vector<8x32xf32> to vector<1x8xf32>
    %cst = arith.constant dense<0.000000e+00> : vector<256xf32>
    %10 = vector.multi_reduction <add>, %0, %cst [1] : vector<256x32xf32> to vector<256xf32>
    %11 = vector.shape_cast %10 : vector<256xf32> to vector<256x1xf32>
    %cst_3 = arith.constant 3.200000e+01 : f32
    %12 = vector.broadcast %cst_3 : f32 to vector<256x1xf32>
    %13 = arith.divf %11, %12 : vector<256x1xf32>
    %14 = vector.broadcast %13 : vector<256x1xf32> to vector<256x32xf32>
    %15 = arith.subf %0, %14 : vector<256x32xf32>
    %16 = arith.mulf %15, %15 : vector<256x32xf32>
    %cst_4 = arith.constant dense<0.000000e+00> : vector<256xf32>
    %17 = vector.multi_reduction <add>, %16, %cst_4 [1] : vector<256x32xf32> to vector<256xf32>
    %18 = vector.shape_cast %17 : vector<256xf32> to vector<256x1xf32>
    %cst_5 = arith.constant 3.200000e+01 : f32
    %19 = vector.broadcast %cst_5 : f32 to vector<256x1xf32>
    %20 = arith.divf %18, %19 : vector<256x1xf32>
    %21 = vector.broadcast %13 : vector<256x1xf32> to vector<256x32xf32>
    %22 = arith.subf %0, %21 : vector<256x32xf32>
    %cst_6 = arith.constant 9.99999974E-6 : f32
    %23 = vector.broadcast %cst_6 : f32 to vector<256x1xf32>
    %24 = arith.addf %20, %23 : vector<256x1xf32>
    %25 = math.rsqrt %24 : vector<256x1xf32>
    %26 = vector.broadcast %25 : vector<256x1xf32> to vector<256x32xf32>
    %27 = arith.mulf %22, %26 : vector<256x32xf32>
    %28 = vector.broadcast %2 : vector<1x32xf32> to vector<256x32xf32>
    %29 = arith.mulf %27, %28 : vector<256x32xf32>
    %30 = vector.broadcast %3 : vector<1x32xf32> to vector<256x32xf32>
    %31 = arith.addf %29, %30 : vector<256x32xf32>
    %c0_7 = arith.constant 0 : index
    %c0_8 = arith.constant 0 : index
    %c0_9 = arith.constant 0 : index
    %32 = vector.load %arg2[%c0_7, %c0_8, %c0_9] : memref<3x32x32xf32, #tpu.memory_space<vmem>>, vector<1x32x32xf32>
    %33 = vector.shape_cast %32 : vector<1x32x32xf32> to vector<32x32xf32>
    %cst_10 = arith.constant dense<0.000000e+00> : vector<256x32xf32>
    %34 = tpu.matmul %31, %33, %cst_10 {dimension_numbers = #tpu.dot_dimension_numbers<[1], [0], [0], [1], [0, 0, 1, 1], [], []>} : vector<256x32xf32>, vector<32x32xf32>, vector<256x32xf32> -> vector<256x32xf32>
    %35 = vector.broadcast %4 : vector<1x32xf32> to vector<256x32xf32>
    %36 = arith.addf %34, %35 : vector<256x32xf32>
    %cst_11 = arith.constant 0.000000e+00 : f32
    %37 = vector.broadcast %cst_11 : f32 to vector<256x32xf32>
    %38 = arith.maximumf %36, %37 : vector<256x32xf32>
    %c1 = arith.constant 1 : index
    %c0_12 = arith.constant 0 : index
    %c0_13 = arith.constant 0 : index
    %39 = vector.load %arg2[%c1, %c0_12, %c0_13] : memref<3x32x32xf32, #tpu.memory_space<vmem>>, vector<1x32x32xf32>
    %40 = vector.shape_cast %39 : vector<1x32x32xf32> to vector<32x32xf32>
    %cst_14 = arith.constant dense<0.000000e+00> : vector<256x32xf32>
    %41 = tpu.matmul %38, %40, %cst_14 {dimension_numbers = #tpu.dot_dimension_numbers<[1], [0], [0], [1], [0, 0, 1, 1], [], []>} : vector<256x32xf32>, vector<32x32xf32>, vector<256x32xf32> -> vector<256x32xf32>
    %42 = vector.broadcast %5 : vector<1x32xf32> to vector<256x32xf32>
    %43 = arith.addf %41, %42 : vector<256x32xf32>
    %cst_15 = arith.constant 0.000000e+00 : f32
    %44 = vector.broadcast %cst_15 : f32 to vector<256x32xf32>
    %45 = arith.maximumf %43, %44 : vector<256x32xf32>
    %c2 = arith.constant 2 : index
    %c0_16 = arith.constant 0 : index
    %c0_17 = arith.constant 0 : index
    %46 = vector.load %arg2[%c2, %c0_16, %c0_17] : memref<3x32x32xf32, #tpu.memory_space<vmem>>, vector<1x32x32xf32>
    %47 = vector.shape_cast %46 : vector<1x32x32xf32> to vector<32x32xf32>
    %cst_18 = arith.constant dense<0.000000e+00> : vector<256x32xf32>
    %48 = tpu.matmul %45, %47, %cst_18 {dimension_numbers = #tpu.dot_dimension_numbers<[1], [0], [0], [1], [0, 0, 1, 1], [], []>} : vector<256x32xf32>, vector<32x32xf32>, vector<256x32xf32> -> vector<256x32xf32>
    %49 = arith.addf %0, %48 : vector<256x32xf32>
    %50 = vector.broadcast %6 : vector<1x32xf32> to vector<256x32xf32>
    %51 = arith.addf %49, %50 : vector<256x32xf32>
    %cst_19 = arith.constant dense<0.000000e+00> : vector<256xf32>
    %52 = vector.multi_reduction <add>, %51, %cst_19 [1] : vector<256x32xf32> to vector<256xf32>
    %53 = vector.shape_cast %52 : vector<256xf32> to vector<256x1xf32>
    %cst_20 = arith.constant 3.200000e+01 : f32
    %54 = vector.broadcast %cst_20 : f32 to vector<256x1xf32>
    %55 = arith.divf %53, %54 : vector<256x1xf32>
    %56 = vector.broadcast %55 : vector<256x1xf32> to vector<256x32xf32>
    %57 = arith.subf %51, %56 : vector<256x32xf32>
    %58 = arith.mulf %57, %57 : vector<256x32xf32>
    %cst_21 = arith.constant dense<0.000000e+00> : vector<256xf32>
    %59 = vector.multi_reduction <add>, %58, %cst_21 [1] : vector<256x32xf32> to vector<256xf32>
    %60 = vector.shape_cast %59 : vector<256xf32> to vector<256x1xf32>
    %cst_22 = arith.constant 3.200000e+01 : f32
    %61 = vector.broadcast %cst_22 : f32 to vector<256x1xf32>
    %62 = arith.divf %60, %61 : vector<256x1xf32>
    %63 = vector.broadcast %55 : vector<256x1xf32> to vector<256x32xf32>
    %64 = arith.subf %51, %63 : vector<256x32xf32>
    %cst_23 = arith.constant 9.99999974E-6 : f32
    %65 = vector.broadcast %cst_23 : f32 to vector<256x1xf32>
    %66 = arith.addf %62, %65 : vector<256x1xf32>
    %67 = math.rsqrt %66 : vector<256x1xf32>
    %68 = vector.broadcast %67 : vector<256x1xf32> to vector<256x32xf32>
    %69 = arith.mulf %64, %68 : vector<256x32xf32>
    %70 = vector.broadcast %7 : vector<1x32xf32> to vector<256x32xf32>
    %71 = arith.mulf %69, %70 : vector<256x32xf32>
    %72 = vector.broadcast %8 : vector<1x32xf32> to vector<256x32xf32>
    %73 = arith.addf %71, %72 : vector<256x32xf32>
    %c0_24 = arith.constant 0 : index
    %c0_25 = arith.constant 0 : index
    %74 = vector.load %arg4[%c0_24, %c0_25] : memref<32x8xf32, #tpu.memory_space<vmem>>, vector<32x8xf32>
    %cst_26 = arith.constant dense<0.000000e+00> : vector<256x8xf32>
    %75 = tpu.matmul %73, %74, %cst_26 {dimension_numbers = #tpu.dot_dimension_numbers<[1], [0], [0], [1], [0, 0, 1, 1], [], []>} : vector<256x32xf32>, vector<32x8xf32>, vector<256x8xf32> -> vector<256x8xf32>
    %76 = vector.broadcast %9 : vector<1x8xf32> to vector<256x8xf32>
    %77 = arith.addf %75, %76 : vector<256x8xf32>
    %78 = tpu.iota {dimensions = array<i32: 0>} : vector<256x256xi32>
    %79 = tpu.iota {dimensions = array<i32: 1>} : vector<256x256xi32>
    %c4_i32 = arith.constant 4 : i32
    %80 = vector.broadcast %c4_i32 : i32 to vector<256x256xi32>
    %81 = arith.shrsi %78, %80 : vector<256x256xi32>
    %c15_i32 = arith.constant 15 : i32
    %82 = vector.broadcast %c15_i32 : i32 to vector<256x256xi32>
    %83 = arith.andi %78, %82 : vector<256x256xi32>
    %c16_i32 = arith.constant 16 : i32
    %84 = vector.broadcast %c16_i32 : i32 to vector<256x256xi32>
    %85 = arith.muli %83, %84 : vector<256x256xi32>
    %86 = arith.addi %85, %81 : vector<256x256xi32>
    %87 = arith.cmpi eq, %79, %86 : vector<256x256xi32>
    %cst_27 = arith.constant 1.000000e+00 : f32
    %cst_28 = arith.constant 0.000000e+00 : f32
    %88 = vector.broadcast %cst_27 : f32 to vector<256x256xf32>
    %89 = vector.broadcast %cst_28 : f32 to vector<256x256xf32>
    %90 = arith.select %87, %88, %89 : vector<256x256xi1>, vector<256x256xf32>
    %cst_29 = arith.constant dense<0.000000e+00> : vector<256x8xf32>
    %91 = tpu.matmul %90, %77, %cst_29 {dimension_numbers = #tpu.dot_dimension_numbers<[1], [0], [0], [1], [0, 0, 1, 1], [], []>} : vector<256x256xf32>, vector<256x8xf32>, vector<256x8xf32> -> vector<256x8xf32>
    %92 = arith.addf %77, %91 : vector<256x8xf32>
    %cst_30 = arith.constant 5.000000e-01 : f32
    %93 = vector.broadcast %cst_30 : f32 to vector<256x8xf32>
    %94 = arith.mulf %92, %93 : vector<256x8xf32>
    %cst_31 = arith.constant dense<0xFF800000> : vector<256xf32>
    %95 = vector.multi_reduction <maximumf>, %94, %cst_31 [1] : vector<256x8xf32> to vector<256xf32>
    %96 = vector.shape_cast %95 : vector<256xf32> to vector<256x1xf32>
    %97 = vector.broadcast %96 : vector<256x1xf32> to vector<256x8xf32>
    %98 = arith.subf %94, %97 : vector<256x8xf32>
    %99 = math.exp %98 : vector<256x8xf32>
    %cst_32 = arith.constant dense<0.000000e+00> : vector<256xf32>
    %100 = vector.multi_reduction <add>, %99, %cst_32 [1] : vector<256x8xf32> to vector<256xf32>
    %101 = vector.shape_cast %100 : vector<256xf32> to vector<256x1xf32>
    %102 = math.log %101 : vector<256x1xf32>
    %103 = vector.broadcast %102 : vector<256x1xf32> to vector<256x8xf32>
    %104 = arith.subf %98, %103 : vector<256x8xf32>
    %c0_33 = arith.constant 0 : index
    %c0_34 = arith.constant 0 : index
    %105 = vector.load %arg5[%c0_33, %c0_34] : memref<256x8xf32, #tpu.memory_space<vmem>>, vector<256x8xf32>
    tpu.vector_store %arg5[%c0_33, %c0_34], %104 {strides = array<i32>} : memref<256x8xf32, #tpu.memory_space<vmem>>, vector<256x8xf32>,
    return
  }
  func.func @transform_0(%arg0: i32) -> (i32, i32) {
    %c0_i32 = arith.constant 0 : i32
    %c0_i32_0 = arith.constant 0 : i32
    return %arg0, %c0_i32 : i32, i32
  }
  func.func @transform_1(%arg0: i32) -> (i32, i32, i32) {
    %c0_i32 = arith.constant 0 : i32
    %c0_i32_0 = arith.constant 0 : i32
    %c0_i32_1 = arith.constant 0 : i32
    %c0_i32_2 = arith.constant 0 : i32
    return %c0_i32, %c0_i32_0, %c0_i32_1 : i32, i32, i32
  }
  func.func @transform_2(%arg0: i32) -> (i32, i32) {
    %c0_i32 = arith.constant 0 : i32
    %c0_i32_0 = arith.constant 0 : i32
    %c0_i32_1 = arith.constant 0 : i32
    return %c0_i32, %c0_i32_0 : i32, i32
  }
  func.func @transform_3(%arg0: i32) -> (i32, i32) {
    %c0_i32 = arith.constant 0 : i32
    %c0_i32_0 = arith.constant 0 : i32
    %c0_i32_1 = arith.constant 0 : i32
    return %c0_i32, %c0_i32_0 : i32, i32
  }
  func.func @transform_4(%arg0: i32) -> (i32, i32) {
    %c0_i32 = arith.constant 0 : i32
    %c0_i32_0 = arith.constant 0 : i32
    return %arg0, %c0_i32 : i32, i32
  }
}

</mosaic_0001>

<bundles_post_ra>
// kernel: tpu_custom_call.1
= control target key start
LH: loop header
LB: loop body
LE: loop exit
PB: predicated region body
PF: predicated region fallthrough
CT: control target
= control target key end

     0   :  { %vm50_vm0 = vcmask 261120   ;;  %s6585_s0 = inlined_call_operand.vmem [shape: f32[256,32], index: 0, kind: input, shape index: {}]   ;;  %s6586_s1 = inlined_call_operand.vmem [shape: f32[3,32,32], index: 1, kind: input, shape index: {}]   ;;  %s6587_s2 = inlined_call_operand.vmem [shape: f32[8,32], index: 2, kind: input, shape index: {}]   ;;  %s6588_s3 = inlined_call_operand.vmem [shape: f32[32,8], index: 3, kind: input, shape index: {}]   ;;  %s6589_s4 = inlined_call_operand.vmem [shape: f32[256,8], index: 4, kind: output, shape index: {}]  }
   0x1   :  { %v4446_v0 = vld [vmem:[%s6585_s0] sm:$0xff]  ;;  %v4451_v1 = vld [vmem:[%s6585_s0 + $0x10] sm:$0xff]  ;;  %v4456_v2 = vld [vmem:[%s6585_s0 + $0x8] sm:$0xff] }
   0x2   :  { %v51_v3 = vsel %vm50_vm0, %v4446_v0, 0.0  ;;  %v57_v4 = vsel %vm50_vm0, %v4451_v1, 0.0  ;;  %v4465_v5 = vld [vmem:[%s6585_s0 + $0x18] sm:$0xff]  ;;  %v54_v6 = vsel %vm50_vm0, %v4456_v2, 0.0  ;;  %v4474_v8 = vld [vmem:[%s6585_s0 + $0x20] sm:$0xff]  ;;  %v4479_v9 = vld [vmem:[%s6585_s0 + $0x28] sm:$0xff] }
   0x3   :  { %52 = vadd.xlane.f32.xlu0 %v51_v3  ;;  %58 = vadd.xlane.f32.xlu1 %v57_v4  ;;  %v60_v7 = vsel %vm50_vm0, %v4465_v5, 0.0  ;;  %v63_v10 = vsel %vm50_vm0, %v4474_v8, 0.0  ;;  %v66_v11 = vsel %vm50_vm0, %v4479_v9, 0.0  ;;  %v4488_v12 = vld [vmem:[%s6585_s0 + $0x30] sm:$0xff]  ;;  %v4493_v13 = vld [vmem:[%s6585_s0 + $0x38] sm:$0xff]  ;;  %v4502_v16 = vld [vmem:[%s6585_s0 + $0x40] sm:$0xff] }
   0x4   :  { %v69_v14 = vsel %vm50_vm0, %v4488_v12, 0.0  ;;  %v72_v15 = vsel %vm50_vm0, %v4493_v13, 0.0  ;;  %v4507_v17 = vld [vmem:[%s6585_s0 + $0x48] sm:$0xff]  ;;  %v75_v18 = vsel %vm50_vm0, %v4502_v16, 0.0  ;;  %v4516_v20 = vld [vmem:[%s6585_s0 + $0x50] sm:$0xff]  ;;  %v4521_v21 = vld [vmem:[%s6585_s0 + $0x58] sm:$0xff] }
   0x5   :  { %v78_v19 = vsel %vm50_vm0, %v4507_v17, 0.0  ;;  %v81_v22 = vsel %vm50_vm0, %v4516_v20, 0.0  ;;  %v84_v23 = vsel %vm50_vm0, %v4521_v21, 0.0  ;;  %v4530_v24 = vld [vmem:[%s6585_s0 + $0x60] sm:$0xff]  ;;  %v4535_v25 = vld [vmem:[%s6585_s0 + $0x68] sm:$0xff]  ;;  %v4544_v28 = vld [vmem:[%s6585_s0 + $0x70] sm:$0xff] }
   0x6   :  { %v87_v26 = vsel %vm50_vm0, %v4530_v24, 0.0  ;;  %v90_v27 = vsel %vm50_vm0, %v4535_v25, 0.0  ;;  %v4549_v29 = vld [vmem:[%s6585_s0 + $0x78] sm:$0xff]  ;;  %v93_v30 = vsel %vm50_vm0, %v4544_v28, 0.0  ;;  %v4558_v32 = vld [vmem:[%s6585_s0 + $0x80] sm:$0xff]  ;;  %v4563_v33 = vld [vmem:[%s6585_s0 + $0x88] sm:$0xff] }
   0x7   :  { %55 = vadd.xlane.f32.xlu0 %v54_v6  ;;  %61 = vadd.xlane.f32.xlu1 %v60_v7  ;;  %v96_v31 = vsel %vm50_vm0, %v4549_v29, 0.0  ;;  %v99_v34 = vsel %vm50_vm0, %v4558_v32, 0.0  ;;  %v102_v35 = vsel %vm50_vm0, %v4563_v33, 0.0  ;;  %v4572_v36 = vld [vmem:[%s6585_s0 + $0x90] sm:$0xff]  ;;  %v4577_v37 = vld [vmem:[%s6585_s0 + $0x98] sm:$0xff]  ;;  %v4586_v40 = vld [vmem:[%s6585_s0 + $0xa0] sm:$0xff] }
   0x8   :  { %v105_v38 = vsel %vm50_vm0, %v4572_v36, 0.0  ;;  %v108_v39 = vsel %vm50_vm0, %v4577_v37, 0.0  ;;  %v4591_v41 = vld [vmem:[%s6585_s0 + $0xa8] sm:$0xff]  ;;  %v111_v42 = vsel %vm50_vm0, %v4586_v40, 0.0  ;;  %v4600_v44 = vld [vmem:[%s6585_s0 + $0xb0] sm:$0xff]  ;;  %v4605_v45 = vld [vmem:[%s6585_s0 + $0xb8] sm:$0xff] }
   0x9   :  { %v114_v43 = vsel %vm50_vm0, %v4591_v41, 0.0  ;;  %v117_v46 = vsel %vm50_vm0, %v4600_v44, 0.0  ;;  %v120_v47 = vsel %vm50_vm0, %v4605_v45, 0.0  ;;  %v4614_v48 = vld [vmem:[%s6585_s0 + $0xc0] sm:$0xff]  ;;  %v4619_v49 = vld [vmem:[%s6585_s0 + $0xc8] sm:$0xff]  ;;  %v4628_v52 = vld [vmem:[%s6585_s0 + $0xd0] sm:$0xff] }
   0xa   :  { %v123_v50 = vsel %vm50_vm0, %v4614_v48, 0.0  ;;  %v126_v51 = vsel %vm50_vm0, %v4619_v49, 0.0  ;;  %v4633_v53 = vld [vmem:[%s6585_s0 + $0xd8] sm:$0xff]  ;;  %v129_v54 = vsel %vm50_vm0, %v4628_v52, 0.0  ;;  %v4642_v56 = vld [vmem:[%s6585_s0 + $0xe0] sm:$0xff]  ;;  %v4647_v57 = vld [vmem:[%s6585_s0 + $0xe8] sm:$0xff] }
   0xb   :  { %64 = vadd.xlane.f32.xlu0 %v63_v10  ;;  %67 = vadd.xlane.f32.xlu1 %v66_v11  ;;  %v132_v55 = vsel %vm50_vm0, %v4633_v53, 0.0  ;;  %v135_v58 = vsel %vm50_vm0, %v4642_v56, 0.0  ;;  %v138_v59 = vsel %vm50_vm0, %v4647_v57, 0.0  ;;  %v4656_v60 = vld [vmem:[%s6585_s0 + $0xf0] sm:$0xff]  ;;  %v4661_v61 = vld [vmem:[%s6585_s0 + $0xf8] sm:$0xff] }
   0xc   :  { %v141_v62 = vsel %vm50_vm0, %v4656_v60, 0.0  ;;  %v144_v63 = vsel %vm50_vm0, %v4661_v61, 0.0 }
   0xf   :  { %70 = vadd.xlane.f32.xlu0 %v69_v14  ;;  %73 = vadd.xlane.f32.xlu1 %v72_v15 }
  0x13   :  { %76 = vadd.xlane.f32.xlu0 %v75_v18  ;;  %79 = vadd.xlane.f32.xlu1 %v78_v19 }
  0x17   :  { %82 = vadd.xlane.f32.xlu0 %v81_v22  ;;  %85 = vadd.xlane.f32.xlu1 %v84_v23 }
  0x1b   :  { %88 = vadd.xlane.f32.xlu0 %v87_v26  ;;  %91 = vadd.xlane.f32.xlu1 %v90_v27 }
  0x1f   :  { %94 = vadd.xlane.f32.xlu0 %v93_v30  ;;  %97 = vadd.xlane.f32.xlu1 %v96_v31 }
  0x23   :  { %100 = vadd.xlane.f32.xlu0 %v99_v34  ;;  %103 = vadd.xlane.f32.xlu1 %v102_v35 }
  0x27   :  { %106 = vadd.xlane.f32.xlu0 %v105_v38  ;;  %109 = vadd.xlane.f32.xlu1 %v108_v39 }
  0x2b   :  { %112 = vadd.xlane.f32.xlu0 %v111_v42  ;;  %115 = vadd.xlane.f32.xlu1 %v114_v43 }
  0x2f   :  { %118 = vadd.xlane.f32.xlu0 %v117_v46  ;;  %121 = vadd.xlane.f32.xlu1 %v120_v47 }
  0x33   :  { %124 = vadd.xlane.f32.xlu0 %v123_v50  ;;  %127 = vadd.xlane.f32.xlu1 %v126_v51 }
  0x37   :  { %130 = vadd.xlane.f32.xlu0 %v129_v54  ;;  %133 = vadd.xlane.f32.xlu1 %v132_v55 }
  0x3b   :  { %136 = vadd.xlane.f32.xlu0 %v135_v58  ;;  %139 = vadd.xlane.f32.xlu1 %v138_v59 }
  0x3f   :  { %142 = vadd.xlane.f32.xlu0 %v141_v62  ;;  %145 = vadd.xlane.f32.xlu1 %v144_v63 }
  0x90   :  { %v53_v3 = vpop.xlane.xlu0 %52  ;;  %v59_v4 = vpop.xlane.xlu1 %58 }
  0x91   :  { %v148_v6 = vmul.f32 0.03125, %v53_v3  ;;  %v150_v7 = vmul.f32 0.03125, %v59_v4 }
  0x93   :  { %v4668_v10 = vsub.f32 %v4446_v0, %v148_v6  ;;  %v4671_v11 = vsub.f32 %v4451_v1, %v150_v7 }
  0x94   :  { %v56_v14 = vpop.xlane.xlu0 %55  ;;  %v62_v15 = vpop.xlane.xlu1 %61 }
  0x95   :  { %v149_v18 = vmul.f32 0.03125, %v56_v14  ;;  %v151_v19 = vmul.f32 0.03125, %v62_v15  ;;  %v212_v22 = vmul.f32 %v4668_v10, %v4668_v10  ;;  %v214_v23 = vmul.f32 %v4671_v11, %v4671_v11 }
  0x97   :  { %v4678_v26 = vsub.f32 %v4456_v2, %v149_v18  ;;  %v4681_v27 = vsub.f32 %v4465_v5, %v151_v19  ;;  %v244_v0 = vsel %vm50_vm0, %v212_v22, 0.0  ;;  %v250_v31 = vsel %vm50_vm0, %v214_v23, 0.0 }
  0x98   :  { %245 = vadd.xlane.f32.xlu0 %v244_v0  ;;  %v65_v1 = vpop.xlane.xlu0 %64  ;;  %v68_v30 = vpop.xlane.xlu1 %67 }
  0x99   :  { %v152_v34 = vmul.f32 0.03125, %v65_v1  ;;  %v153_v35 = vmul.f32 0.03125, %v68_v30  ;;  %v213_v38 = vmul.f32 %v4678_v26, %v4678_v26  ;;  %v215_v39 = vmul.f32 %v4681_v27, %v4681_v27 }
  0x9b   :  { %v4690_v2 = vsub.f32 %v4474_v8, %v152_v34  ;;  %v4693_v5 = vsub.f32 %v4479_v9, %v153_v35  ;;  %v247_v42 = vsel %vm50_vm0, %v213_v38, 0.0  ;;  %v253_v47 = vsel %vm50_vm0, %v215_v39, 0.0 }
  0x9c   :  { %251 = vadd.xlane.f32.xlu0 %v250_v31  ;;  %248 = vadd.xlane.f32.xlu1 %v247_v42  ;;  %v71_v43 = vpop.xlane.xlu0 %70  ;;  %v74_v46 = vpop.xlane.xlu1 %73 }
  0x9d   :  { %v154_v50 = vmul.f32 0.03125, %v71_v43  ;;  %v155_v51 = vmul.f32 0.03125, %v74_v46  ;;  %v216_v54 = vmul.f32 %v4690_v2, %v4690_v2  ;;  %v217_v8 = vmul.f32 %v4693_v5, %v4693_v5 }
  0x9f   :  { %v4702_v55 = vsub.f32 %v4488_v12, %v154_v50  ;;  %v4705_v9 = vsub.f32 %v4493_v13, %v155_v51  ;;  %v256_v58 = vsel %vm50_vm0, %v216_v54, 0.0  ;;  %v259_v63 = vsel %vm50_vm0, %v217_v8, 0.0 }
  0xa0   :  { %254 = vadd.xlane.f32.xlu1 %v253_v47  ;;  %257 = vadd.xlane.f32.xlu0 %v256_v58  ;;  %v77_v59 = vpop.xlane.xlu0 %76  ;;  %v80_v62 = vpop.xlane.xlu1 %79 }
  0xa1   :  { %v156_v3 = vmul.f32 0.03125, %v77_v59  ;;  %v157_v4 = vmul.f32 0.03125, %v80_v62  ;;  %v218_v6 = vmul.f32 %v4702_v55, %v4702_v55  ;;  %v219_v12 = vmul.f32 %v4705_v9, %v4705_v9 }
  0xa3   :  { %v4714_v7 = vsub.f32 %v4502_v16, %v156_v3  ;;  %v4717_v13 = vsub.f32 %v4507_v17, %v157_v4  ;;  %v262_v14 = vsel %vm50_vm0, %v218_v6, 0.0  ;;  %v265_v19 = vsel %vm50_vm0, %v219_v12, 0.0 }
  0xa4   :  { %260 = vadd.xlane.f32.xlu1 %v259_v63  ;;  %263 = vadd.xlane.f32.xlu0 %v262_v14  ;;  %v83_v15 = vpop.xlane.xlu0 %82  ;;  %v86_v18 = vpop.xlane.xlu1 %85 }
  0xa5   :  { %v158_v22 = vmul.f32 0.03125, %v83_v15  ;;  %v159_v23 = vmul.f32 0.03125, %v86_v18  ;;  %v220_v0 = vmul.f32 %v4714_v7, %v4714_v7  ;;  %v221_v16 = vmul.f32 %v4717_v13, %v4717_v13 }
  0xa7   :  { %v4726_v1 = vsub.f32 %v4516_v20, %v158_v22  ;;  %v4729_v17 = vsub.f32 %v4521_v21, %v159_v23  ;;  %v268_v30 = vsel %vm50_vm0, %v220_v0, 0.0  ;;  %v271_v35 = vsel %vm50_vm0, %v221_v16, 0.0 }
  0xa8   :  { %266 = vadd.xlane.f32.xlu1 %v265_v19  ;;  %269 = vadd.xlane.f32.xlu0 %v268_v30  ;;  %v89_v31 = vpop.xlane.xlu0 %88  ;;  %v92_v34 = vpop.xlane.xlu1 %91 }
  0xa9   :  { %v160_v38 = vmul.f32 0.03125, %v89_v31  ;;  %v161_v39 = vmul.f32 0.03125, %v92_v34  ;;  %v222_v42 = vmul.f32 %v4726_v1, %v4726_v1  ;;  %v223_v20 = vmul.f32 %v4729_v17, %v4729_v17  ;;  %v541_v31 = vld [vmem:[%s6586_s1 + $0x8] sm:$0xff] }
  0xab   :  { %v4738_v43 = vsub.f32 %v4530_v24, %v160_v38  ;;  %v4741_v21 = vsub.f32 %v4535_v25, %v161_v39  ;;  %v274_v46 = vsel %vm50_vm0, %v222_v42, 0.0  ;;  %v277_v51 = vsel %vm50_vm0, %v223_v20, 0.0 }
  0xac   :  { %272 = vadd.xlane.f32.xlu1 %v271_v35  ;;  %275 = vadd.xlane.f32.xlu0 %v274_v46  ;;  %v95_v47 = vpop.xlane.xlu0 %94  ;;  %v98_v50 = vpop.xlane.xlu1 %97 }
  0xad   :  { %v162_v54 = vmul.f32 0.03125, %v95_v47  ;;  %v163_v8 = vmul.f32 0.03125, %v98_v50  ;;  %v224_v58 = vmul.f32 %v4738_v43, %v4738_v43  ;;  %v225_v24 = vmul.f32 %v4741_v21, %v4741_v21 }
  0xaf   :  { %v4750_v59 = vsub.f32 %v4544_v28, %v162_v54  ;;  %v4753_v25 = vsub.f32 %v4549_v29, %v163_v8  ;;  %v280_v62 = vsel %vm50_vm0, %v224_v58, 0.0  ;;  %v283_v4 = vsel %vm50_vm0, %v225_v24, 0.0  ;;  %v543_v54 = vld [vmem:[%s6586_s1 + $0x18] sm:$0xff] }
  0xb0   :  { %278 = vadd.xlane.f32.xlu1 %v277_v51  ;;  %281 = vadd.xlane.f32.xlu0 %v280_v62  ;;  %v101_v63 = vpop.xlane.xlu0 %100  ;;  %v104_v3 = vpop.xlane.xlu1 %103 }
  0xb1   :  { %v164_v6 = vmul.f32 0.03125, %v101_v63  ;;  %v165_v12 = vmul.f32 0.03125, %v104_v3  ;;  %v226_v14 = vmul.f32 %v4750_v59, %v4750_v59  ;;  %v227_v28 = vmul.f32 %v4753_v25, %v4753_v25 }
  0xb3   :  { %v4762_v15 = vsub.f32 %v4558_v32, %v164_v6  ;;  %v4765_v29 = vsub.f32 %v4563_v33, %v165_v12  ;;  %v286_v18 = vsel %vm50_vm0, %v226_v14, 0.0  ;;  %v289_v23 = vsel %vm50_vm0, %v227_v28, 0.0  ;;  %v540_v33 = vld [vmem:[%s6586_s1] sm:$0xff] }
  0xb4   :  { %284 = vadd.xlane.f32.xlu1 %v283_v4  ;;  %287 = vadd.xlane.f32.xlu0 %v286_v18  ;;  %v107_v19 = vpop.xlane.xlu0 %106  ;;  %v110_v22 = vpop.xlane.xlu1 %109  ;;  %v4044_v34 = vpack.c.bf16 %v541_v31, %v540_v33 }
  0xb5   :  { %v166_v0 = vmul.f32 0.03125, %v107_v19  ;;  %v167_v16 = vmul.f32 0.03125, %v110_v22  ;;  %v228_v30 = vmul.f32 %v4762_v15, %v4762_v15  ;;  %v229_v32 = vmul.f32 %v4765_v29, %v4765_v29 }
  0xb6   :  { %4045 = vmatprep.subr.bf16.mxu1 %v4044_v34 }
  0xb7   :  { %v4780_v35 = vsub.f32 %v4572_v36, %v166_v0  ;;  %v4783_v38 = vsub.f32 %v4577_v37, %v167_v16  ;;  %v292_v39 = vsel %vm50_vm0, %v228_v30, 0.0  ;;  %v295_v46 = vsel %vm50_vm0, %v229_v32, 0.0  ;;  %v542_v37 = vld [vmem:[%s6586_s1 + $0x10] sm:$0xff]  ;;  %4047 = vmatpush3.bf16.msra.mxu1 %v4044_v34 }
  0xb8   :  { %290 = vadd.xlane.f32.xlu1 %v289_v23  ;;  %293 = vadd.xlane.f32.xlu0 %v292_v39  ;;  %v113_v42 = vpop.xlane.xlu0 %112  ;;  %v116_v20 = vpop.xlane.xlu1 %115  ;;  %v4048_v8 = vpack.c.bf16 %v543_v54, %v542_v37 }
  0xb9   :  { %v168_v47 = vmul.f32 0.03125, %v113_v42  ;;  %v169_v50 = vmul.f32 0.03125, %v116_v20  ;;  %v230_v51 = vmul.f32 %v4780_v35, %v4780_v35  ;;  %v231_v36 = vmul.f32 %v4783_v38, %v4783_v38 }
  0xba   :  { %4049 = vmatprep.subr.bf16.mxu1 %v4048_v8 }
  0xbb   :  { %v4798_v58 = vsub.f32 %v4586_v40, %v168_v47  ;;  %v4801_v24 = vsub.f32 %v4591_v41, %v169_v50  ;;  %v298_v62 = vsel %vm50_vm0, %v230_v51, 0.0  ;;  %v301_v4 = vsel %vm50_vm0, %v231_v36, 0.0  ;;  %4051 = vmatpush3.bf16.msra.mxu1 %v4048_v8 }
  0xbc   :  { %296 = vadd.xlane.f32.xlu1 %v295_v46  ;;  %299 = vadd.xlane.f32.xlu0 %v298_v62  ;;  %v119_v63 = vpop.xlane.xlu0 %118  ;;  %v122_v3 = vpop.xlane.xlu1 %121 }
  0xbd   :  { %v170_v6 = vmul.f32 0.03125, %v119_v63  ;;  %v171_v12 = vmul.f32 0.03125, %v122_v3  ;;  %v232_v14 = vmul.f32 %v4798_v58, %v4798_v58  ;;  %v233_v40 = vmul.f32 %v4801_v24, %v4801_v24 }
  0xbf   :  { %v4810_v41 = vsub.f32 %v4600_v44, %v170_v6  ;;  %v4813_v28 = vsub.f32 %v4605_v45, %v171_v12  ;;  %v304_v18 = vsel %vm50_vm0, %v232_v14, 0.0  ;;  %v307_v23 = vsel %vm50_vm0, %v233_v40, 0.0 }
  0xc0   :  { %302 = vadd.xlane.f32.xlu1 %v301_v4  ;;  %305 = vadd.xlane.f32.xlu0 %v304_v18  ;;  %v125_v19 = vpop.xlane.xlu0 %124  ;;  %v128_v22 = vpop.xlane.xlu1 %127 }
  0xc1   :  { %v172_v0 = vmul.f32 0.03125, %v125_v19  ;;  %v173_v16 = vmul.f32 0.03125, %v128_v22  ;;  %v234_v30 = vmul.f32 %v4810_v41, %v4810_v41  ;;  %v235_v44 = vmul.f32 %v4813_v28, %v4813_v28 }
  0xc3   :  { %v4822_v32 = vsub.f32 %v4614_v48, %v172_v0  ;;  %v4825_v45 = vsub.f32 %v4619_v49, %v173_v16  ;;  %v310_v33 = vsel %vm50_vm0, %v234_v30, 0.0  ;;  %v313_v39 = vsel %vm50_vm0, %v235_v44, 0.0  ;;  %v3509_v44 = vld [vmem:[%s6586_s1 + $0x28] sm:$0xff] }
  0xc4   :  { %308 = vadd.xlane.f32.xlu1 %v307_v23  ;;  %311 = vadd.xlane.f32.xlu0 %v310_v33  ;;  %v131_v31 = vpop.xlane.xlu0 %130  ;;  %v134_v34 = vpop.xlane.xlu1 %133 }
  0xc5   :  { %v174_v42 = vmul.f32 0.03125, %v131_v31  ;;  %v175_v20 = vmul.f32 0.03125, %v134_v34  ;;  %v236_v46 = vmul.f32 %v4822_v32, %v4822_v32  ;;  %v237_v48 = vmul.f32 %v4825_v45, %v4825_v45 }
  0xc7   :  { %v4834_v47 = vsub.f32 %v4628_v52, %v174_v42  ;;  %v4837_v49 = vsub.f32 %v4633_v53, %v175_v20  ;;  %v316_v50 = vsel %vm50_vm0, %v236_v46, 0.0  ;;  %v319_v37 = vsel %vm50_vm0, %v237_v48, 0.0 }
  0xc8   :  { %314 = vadd.xlane.f32.xlu1 %v313_v39  ;;  %317 = vadd.xlane.f32.xlu0 %v316_v50  ;;  %v137_v51 = vpop.xlane.xlu0 %136  ;;  %v140_v36 = vpop.xlane.xlu1 %139  ;;  %v468_v39 = vlaneseq }
  0xc9   :  { %v176_v54 = vmul.f32 0.03125, %v137_v51  ;;  %v177_v8 = vmul.f32 0.03125, %v140_v36  ;;  %v238_v62 = vmul.f32 %v4834_v47, %v4834_v47  ;;  %v239_v52 = vmul.f32 %v4837_v49, %v4837_v49 }
  0xca   :  { %v4881_v51 = vshrl.u32 %v468_v39, 7 }
  0xcb   :  { %v4846_v63 = vsub.f32 %v4642_v56, %v176_v54  ;;  %v4849_v53 = vsub.f32 %v4647_v57, %v177_v8  ;;  %v322_v3 = vsel %vm50_vm0, %v238_v62, 0.0  ;;  %v325_v12 = vsel %vm50_vm0, %v239_v52, 0.0 }
  0xcc   :  { %320 = vadd.xlane.f32.xlu1 %v319_v37  ;;  %323 = vadd.xlane.f32.xlu0 %v322_v3  ;;  %v143_v4 = vpop.xlane.xlu0 %142  ;;  %v146_v6 = vpop.xlane.xlu1 %145  ;;  %v470_v3 = vsub.s32 0, %v4881_v51 }
  0xcd   :  { %v178_v14 = vmul.f32 0.03125, %v143_v4  ;;  %v179_v40 = vmul.f32 0.03125, %v146_v6  ;;  %v240_v18 = vmul.f32 %v4846_v63, %v4846_v63  ;;  %v241_v56 = vmul.f32 %v4849_v53, %v4849_v53 }
  0xcf   :  { %v4858_v19 = vsub.f32 %v4656_v60, %v178_v14  ;;  %v4861_v57 = vsub.f32 %v4661_v61, %v179_v40  ;;  %v328_v22 = vsel %vm50_vm0, %v240_v18, 0.0  ;;  %v331_v23 = vsel %vm50_vm0, %v241_v56, 0.0  ;;  %v3508_v61 = vld [vmem:[%s6586_s1 + $0x20] sm:$0xff] }
  0xd0   :  { %326 = vadd.xlane.f32.xlu1 %v325_v12  ;;  %329 = vadd.xlane.f32.xlu0 %v328_v22  ;;  %v4877_v33 = vpack.c.bf16 %v3509_v44, %v3508_v61  ;;  %v4887_v12 = vld [vmem:[%s6587_s2] sm:$0xff]  ;;  %v506_v18 = vsub.s32 1, %v4881_v51 }
  0xd1   :  { %v242_v0 = vmul.f32 %v4858_v19, %v4858_v19  ;;  %v243_v16 = vmul.f32 %v4861_v57, %v4861_v57 }
  0xd2   :  { %4053 = vmatprep.subr.bf16.mxu1 %v4877_v33 }
  0xd3   :  { %v334_v30 = vsel %vm50_vm0, %v242_v0, 0.0  ;;  %v337_v60 = vsel %vm50_vm0, %v243_v16, 0.0 }
  0xd4   :  { %332 = vadd.xlane.f32.xlu1 %v331_v23  ;;  %335 = vadd.xlane.f32.xlu0 %v334_v30  ;;  %v4891_v23 = vrot.slane %v4887_v12, %v470_v3 }
  0xd8   :  { %338 = vadd.xlane.f32.xlu1 %v337_v60 }
 0x125   :  { %v246_v31 = vpop.xlane.xlu0 %245 }
 0x126   :  { %v340_v34 = vmul.f32 0.03125, %v246_v31  ;;  %v4895_v31 = vrot.slane %v4887_v12, %v506_v18 }
 0x128   :  { %v372_v42 = vadd.f32 1e-05, %v340_v34 }
 0x129   :  { %v249_v20 = vpop.xlane.xlu1 %248  ;;  %v252_v46 = vpop.xlane.xlu0 %251 }
 0x12a   :  { %4126 = vrsqrt.f32 %v372_v42  ;;  %v341_v48 = vmul.f32 0.03125, %v249_v20  ;;  %v342_v50 = vmul.f32 0.03125, %v252_v46 }
 0x12c   :  { %v373_v36 = vadd.f32 1e-05, %v341_v48  ;;  %v374_v37 = vadd.f32 1e-05, %v342_v50 }
 0x12d   :  { %v255_v54 = vpop.xlane.xlu1 %254  ;;  %v258_v8 = vpop.xlane.xlu0 %257 }
 0x12e   :  { %4128 = vrsqrt.f32 %v373_v36  ;;  %v343_v62 = vmul.f32 0.03125, %v255_v54  ;;  %v344_v52 = vmul.f32 0.03125, %v258_v8 }
 0x12f   :  { %4130 = vrsqrt.f32 %v374_v37 }
 0x130   :  { %v375_v4 = vadd.f32 1e-05, %v343_v62  ;;  %v376_v6 = vadd.f32 1e-05, %v344_v52 }
 0x131   :  { %v261_v14 = vpop.xlane.xlu1 %260  ;;  %v264_v40 = vpop.xlane.xlu0 %263 }
 0x132   :  { %4132 = vrsqrt.f32 %v375_v4  ;;  %v345_v56 = vmul.f32 0.03125, %v261_v14  ;;  %v346_v22 = vmul.f32 0.03125, %v264_v40  ;;  %v3510_v4 = vld [vmem:[%s6586_s1 + $0x30] sm:$0xff] }
 0x133   :  { %4134 = vrsqrt.f32 %v376_v6  ;;  %v3511_v6 = vld [vmem:[%s6586_s1 + $0x38] sm:$0xff] }
 0x134   :  { %v4127_v0 = vpop.eup %4126  ;;  %v377_v16 = vadd.f32 1e-05, %v345_v56  ;;  %v378_v30 = vadd.f32 1e-05, %v346_v22 }
 0x135   :  { %v267_v60 = vpop.xlane.xlu1 %266  ;;  %v270_v61 = vpop.xlane.xlu0 %269  ;;  %v436_v44 = vmul.f32 %v4127_v0, %v4668_v10 }
 0x136   :  { %4136 = vrsqrt.f32 %v377_v16  ;;  %v347_v34 = vmul.f32 0.03125, %v267_v60  ;;  %v348_v42 = vmul.f32 0.03125, %v270_v61  ;;  %v4056_v60 = vpack.c.bf16 %v3511_v6, %v3510_v4 }
 0x137   :  { %4138 = vrsqrt.f32 %v378_v30  ;;  %v472_v20 = vmul.f32 %v4891_v23, %v436_v44 }
 0x138   :  { %v4129_v46 = vpop.eup %4128  ;;  %v379_v48 = vadd.f32 1e-05, %v347_v34  ;;  %v380_v50 = vadd.f32 1e-05, %v348_v42 }
 0x139   :  { %v4131_v36 = vpop.eup %4130  ;;  %v273_v37 = vpop.xlane.xlu1 %272  ;;  %v508_v8 = vadd.f32 %v4895_v31, %v472_v20  ;;  %v437_v62 = vmul.f32 %v4129_v46, %v4678_v26 }
 0x13a   :  { %v276_v54 = vpop.xlane.xlu0 %275  ;;  %4140 = vrsqrt.f32 %v379_v48  ;;  %v349_v10 = vmul.f32 0.03125, %v273_v37  ;;  %v438_v3 = vmul.f32 %v4131_v36, %v4671_v11 }
 0x13b   :  { %v350_v52 = vmul.f32 0.03125, %v276_v54  ;;  %4142 = vrsqrt.f32 %v380_v50  ;;  %3828 = vmatprep.mubr.msk.f32.mxu1 %vm50_vm0, %v508_v8  ;;  %v473_v14 = vmul.f32 %v4891_v23, %v437_v62 }
 0x13c   :  { %v4133_v40 = vpop.eup %4132  ;;  %v381_v26 = vadd.f32 1e-05, %v349_v10  ;;  %v474_v56 = vmul.f32 %v4891_v23, %v438_v3 }
 0x13d   :  { %v382_v18 = vadd.f32 1e-05, %v350_v52  ;;  %v4135_v22 = vpop.eup %4134  ;;  %v279_v11 = vpop.xlane.xlu1 %278  ;;  %v509_v16 = vadd.f32 %v4895_v31, %v473_v14  ;;  %v439_v30 = vmul.f32 %v4133_v40, %v4681_v27 }
 0x13e   :  { %v282_v0 = vpop.xlane.xlu0 %281  ;;  %4144 = vrsqrt.f32 %v381_v26  ;;  %v351_v61 = vmul.f32 0.03125, %v279_v11  ;;  %v510_v34 = vadd.f32 %v4895_v31, %v474_v56  ;;  %v440_v20 = vmul.f32 %v4135_v22, %v4690_v2 }
 0x13f   :  { %v352_v44 = vmul.f32 0.03125, %v282_v0  ;;  %4146 = vrsqrt.f32 %v382_v18  ;;  %3829 = vmatmul.mubr.msk.f32.vlgmr.msra.gmra.mrb[0].mxu1 %vm50_vm0, %v509_v16  ;;  %v475_v42 = vmul.f32 %v4891_v23, %v439_v30 }
 0x140   :  { %v4137_v46 = vpop.eup %4136  ;;  %v383_v48 = vadd.f32 1e-05, %v351_v61  ;;  %3831 = vmatprep.mubr.msk.f32.mxu1 %vm50_vm0, %v510_v34  ;;  %4055 = vmatpush3.bf16.msra.mxu1 %v4877_v33  ;;  %v476_v8 = vmul.f32 %v4891_v23, %v440_v20 }
 0x141   :  { %v384_v50 = vadd.f32 1e-05, %v352_v44  ;;  %v4139_v27 = vpop.eup %4138  ;;  %v285_v36 = vpop.xlane.xlu1 %284  ;;  %v511_v54 = vadd.f32 %v4895_v31, %v475_v42  ;;  %v441_v62 = vmul.f32 %v4137_v46, %v4693_v5  ;;  %4057 = vmatprep.subr.bf16.mxu1 %v4056_v60 }
 0x142   :  { %v288_v37 = vpop.xlane.xlu0 %287  ;;  %4148 = vrsqrt.f32 %v383_v48  ;;  %v353_v10 = vmul.f32 0.03125, %v285_v36  ;;  %v442_v52 = vmul.f32 %v4139_v27, %v4702_v55  ;;  %v512_v33 = vadd.f32 %v4895_v31, %v476_v8 }
 0x143   :  { %v354_v2 = vmul.f32 0.03125, %v288_v37  ;;  %4150 = vrsqrt.f32 %v384_v50  ;;  %3832 = vmatmul.mubr.msk.f32.gmra.mrb[2].mxu1 %vm50_vm0, %v511_v54  ;;  %v477_v3 = vmul.f32 %v4891_v23, %v441_v62 }
 0x144   :  { %v4141_v4 = vpop.eup %4140  ;;  %v385_v6 = vadd.f32 1e-05, %v353_v10  ;;  %v478_v40 = vmul.f32 %v4891_v23, %v442_v52  ;;  %4059 = vmatpush3.bf16.msra.mxu1 %v4056_v60  ;;  %3834 = vmatprep.mubr.msk.f32.mxu1 %vm50_vm0, %v512_v33 }
 0x145   :  { %v386_v14 = vadd.f32 1e-05, %v354_v2  ;;  %v4143_v5 = vpop.eup %4142  ;;  %v291_v26 = vpop.xlane.xlu1 %290  ;;  %v513_v55 = vadd.f32 %v4895_v31, %v477_v3  ;;  %v443_v56 = vmul.f32 %v4141_v4, %v4705_v9 }
 0x146   :  { %v294_v18 = vpop.xlane.xlu0 %293  ;;  %4152 = vrsqrt.f32 %v385_v6  ;;  %v355_v22 = vmul.f32 0.03125, %v291_v26  ;;  %v514_v0 = vadd.f32 %v4895_v31, %v478_v40  ;;  %v444_v30 = vmul.f32 %v4143_v5, %v4714_v7 }
 0x147   :  { %v356_v11 = vmul.f32 0.03125, %v294_v18  ;;  %4154 = vrsqrt.f32 %v386_v14  ;;  %3835 = vmatmul.mubr.msk.f32.gmra.mrb[4].mxu1 %vm50_vm0, %v513_v55  ;;  %v479_v16 = vmul.f32 %v4891_v23, %v443_v56 }
 0x148   :  { %v4145_v60 = vpop.eup %4144  ;;  %v387_v61 = vadd.f32 1e-05, %v355_v22  ;;  %3837 = vmatprep.mubr.msk.f32.mxu1 %vm50_vm0, %v514_v0  ;;  %v480_v46 = vmul.f32 %v4891_v23, %v444_v30 }
 0x149   :  { %v388_v44 = vadd.f32 1e-05, %v356_v11  ;;  %v4147_v34 = vpop.eup %4146  ;;  %v297_v42 = vpop.xlane.xlu1 %296  ;;  %v515_v20 = vadd.f32 %v4895_v31, %v479_v16  ;;  %v445_v48 = vmul.f32 %v4145_v60, %v4717_v13 }
 0x14a   :  { %v300_v9 = vpop.xlane.xlu0 %299  ;;  %4156 = vrsqrt.f32 %v387_v61  ;;  %v357_v50 = vmul.f32 0.03125, %v297_v42  ;;  %v446_v36 = vmul.f32 %v4147_v34, %v4726_v1  ;;  %v516_v7 = vadd.f32 %v4895_v31, %v480_v46 }
 0x14b   :  { %v358_v27 = vmul.f32 0.03125, %v300_v9  ;;  %4158 = vrsqrt.f32 %v388_v44  ;;  %3838 = vmatmul.mubr.msk.f32.gmra.mrb[6].mxu1 %vm50_vm0, %v515_v20  ;;  %v481_v37 = vmul.f32 %v4891_v23, %v445_v48 }
 0x14c   :  { %v4149_v54 = vpop.eup %4148  ;;  %v389_v8 = vadd.f32 1e-05, %v357_v50  ;;  %v482_v10 = vmul.f32 %v4891_v23, %v446_v36  ;;  %3840 = vmatprep.mubr.msk.f32.mxu1 %vm50_vm0, %v516_v7 }
 0x14d   :  { %v390_v62 = vadd.f32 1e-05, %v358_v27  ;;  %v4151_v2 = vpop.eup %4150  ;;  %v303_v13 = vpop.xlane.xlu1 %302  ;;  %v517_v33 = vadd.f32 %v4895_v31, %v481_v37  ;;  %v447_v1 = vmul.f32 %v4149_v54, %v4729_v17 }
 0x14e   :  { %v306_v52 = vpop.xlane.xlu0 %305  ;;  %4160 = vrsqrt.f32 %v389_v8  ;;  %v359_v3 = vmul.f32 0.03125, %v303_v13  ;;  %v518_v6 = vadd.f32 %v4895_v31, %v482_v10  ;;  %v448_v40 = vmul.f32 %v4151_v2, %v4738_v43 }
 0x14f   :  { %v360_v4 = vmul.f32 0.03125, %v306_v52  ;;  %4162 = vrsqrt.f32 %v390_v62  ;;  %3841 = vmatmul.mubr.msk.f32.gmra.mrb[8].mxu1 %vm50_vm0, %v517_v33  ;;  %v483_v14 = vmul.f32 %v4891_v23, %v447_v1 }
 0x150   :  { %v4153_v5 = vpop.eup %4152  ;;  %v391_v26 = vadd.f32 1e-05, %v359_v3  ;;  %3843 = vmatprep.mubr.msk.f32.mxu1 %vm50_vm0, %v518_v6  ;;  %v484_v11 = vmul.f32 %v4891_v23, %v448_v40 }
 0x151   :  { %v392_v18 = vadd.f32 1e-05, %v360_v4  ;;  %v4155_v55 = vpop.eup %4154  ;;  %v309_v56 = vpop.xlane.xlu1 %308  ;;  %v519_v22 = vadd.f32 %v4895_v31, %v483_v14  ;;  %v449_v0 = vmul.f32 %v4153_v5, %v4741_v21 }
 0x152   :  { %v312_v17 = vpop.xlane.xlu0 %311  ;;  %4164 = vrsqrt.f32 %v391_v26  ;;  %v361_v16 = vmul.f32 0.03125, %v309_v56  ;;  %v450_v60 = vmul.f32 %v4155_v55, %v4750_v59  ;;  %v520_v43 = vadd.f32 %v4895_v31, %v484_v11 }
 0x153   :  { %v362_v30 = vmul.f32 0.03125, %v312_v17  ;;  %4166 = vrsqrt.f32 %v392_v18  ;;  %3844 = vmatmul.mubr.msk.f32.gmra.mrb[10].mxu1 %vm50_vm0, %v519_v22  ;;  %v485_v61 = vmul.f32 %v4891_v23, %v449_v0 }
 0x154   :  { %v4157_v44 = vpop.eup %4156  ;;  %v393_v34 = vadd.f32 1e-05, %v361_v16  ;;  %v486_v9 = vmul.f32 %v4891_v23, %v450_v60  ;;  %3846 = vmatprep.mubr.msk.f32.mxu1 %vm50_vm0, %v520_v43 }
 0x155   :  { %v394_v42 = vadd.f32 1e-05, %v362_v30  ;;  %v4159_v20 = vpop.eup %4158  ;;  %v315_v21 = vpop.xlane.xlu1 %314  ;;  %v521_v48 = vadd.f32 %v4895_v31, %v485_v61  ;;  %v451_v59 = vmul.f32 %v4157_v44, %v4753_v25 }
 0x156   :  { %v318_v46 = vpop.xlane.xlu0 %317  ;;  %4168 = vrsqrt.f32 %v393_v34  ;;  %v363_v50 = vmul.f32 0.03125, %v315_v21  ;;  %v522_v36 = vadd.f32 %v4895_v31, %v486_v9  ;;  %v452_v37 = vmul.f32 %v4159_v20, %v4762_v15 }
 0x157   :  { %v364_v27 = vmul.f32 0.03125, %v318_v46  ;;  %4170 = vrsqrt.f32 %v394_v42  ;;  %3847 = vmatmul.mubr.msk.f32.gmra.mrb[12].mxu1 %vm50_vm0, %v521_v48  ;;  %v487_v7 = vmul.f32 %v4891_v23, %v451_v59 }
 0x158   :  { %v4161_v54 = vpop.eup %4160  ;;  %v395_v8 = vadd.f32 1e-05, %v363_v50  ;;  %3849 = vmatprep.mubr.msk.f32.mxu1 %vm50_vm0, %v522_v36  ;;  %v488_v52 = vmul.f32 %v4891_v23, %v452_v37 }
 0x159   :  { %v396_v62 = vadd.f32 1e-05, %v364_v27  ;;  %v4163_v10 = vpop.eup %4162  ;;  %v321_v2 = vpop.xlane.xlu1 %320  ;;  %v523_v13 = vadd.f32 %v4895_v31, %v487_v7  ;;  %v453_v33 = vmul.f32 %v4161_v54, %v4765_v29 }
 0x15a   :  { %v324_v25 = vpop.xlane.xlu0 %323  ;;  %4172 = vrsqrt.f32 %v395_v8  ;;  %v365_v1 = vmul.f32 0.03125, %v321_v2  ;;  %v454_v4 = vmul.f32 %v4163_v10, %v4780_v35  ;;  %v524_v15 = vadd.f32 %v4895_v31, %v488_v52 }
 0x15b   :  { %v366_v3 = vmul.f32 0.03125, %v324_v25  ;;  %4174 = vrsqrt.f32 %v396_v62  ;;  %3850 = vmatmul.mubr.msk.f32.gmra.mrb[14].mxu1 %vm50_vm0, %v523_v13  ;;  %v489_v6 = vmul.f32 %v4891_v23, %v453_v33 }
 0x15c   :  { %v4165_v14 = vpop.eup %4164  ;;  %v397_v40 = vadd.f32 1e-05, %v365_v1  ;;  %v490_v26 = vmul.f32 %v4891_v23, %v454_v4  ;;  %3852 = vmatprep.mubr.msk.f32.mxu1 %vm50_vm0, %v524_v15 }
 0x15d   :  { %v398_v5 = vadd.f32 1e-05, %v366_v3  ;;  %v4167_v18 = vpop.eup %4166  ;;  %v327_v29 = vpop.xlane.xlu1 %326  ;;  %v525_v56 = vadd.f32 %v4895_v31, %v489_v6  ;;  %v455_v35 = vmul.f32 %v4165_v14, %v4783_v38 }
 0x15e   :  { %v330_v55 = vpop.xlane.xlu0 %329  ;;  %4176 = vrsqrt.f32 %v397_v40  ;;  %v367_v17 = vmul.f32 0.03125, %v327_v29  ;;  %v526_v11 = vadd.f32 %v4895_v31, %v490_v26  ;;  %v456_v16 = vmul.f32 %v4167_v18, %v4798_v58 }
 0x15f   :  { %v368_v22 = vmul.f32 0.03125, %v330_v55  ;;  %4178 = vrsqrt.f32 %v398_v5  ;;  %3853 = vmatmul.mubr.msk.f32.gmra.mrb[16].mxu1 %vm50_vm0, %v525_v56  ;;  %v491_v0 = vmul.f32 %v4891_v23, %v455_v35 }
 0x160   :  { %v4169_v30 = vpop.eup %4168  ;;  %v399_v60 = vadd.f32 1e-05, %v367_v17  ;;  %3855 = vmatprep.mubr.msk.f32.mxu1 %vm50_vm0, %v526_v11  ;;  %v492_v42 = vmul.f32 %v4891_v23, %v456_v16 }
 0x161   :  { %v400_v43 = vadd.f32 1e-05, %v368_v22  ;;  %v4171_v61 = vpop.eup %4170  ;;  %v333_v44 = vpop.xlane.xlu1 %332  ;;  %v527_v34 = vadd.f32 %v4895_v31, %v491_v0  ;;  %v457_v9 = vmul.f32 %v4169_v30, %v4801_v24  ;;  %v3544_v30 = vld [vmem:[%s6586_s1 + $0x40] sm:$0xff] }
 0x162   :  { %v336_v38 = vpop.xlane.xlu0 %335  ;;  %4180 = vrsqrt.f32 %v399_v60  ;;  %v369_v20 = vmul.f32 0.03125, %v333_v44  ;;  %v458_v46 = vmul.f32 %v4171_v61, %v4810_v41  ;;  %v528_v58 = vadd.f32 %v4895_v31, %v492_v42 }
 0x163   :  { %v370_v21 = vmul.f32 0.03125, %v336_v38  ;;  %4182 = vrsqrt.f32 %v400_v43  ;;  %3856 = vmatmul.mubr.msk.f32.gmra.mrb[18].mxu1 %vm50_vm0, %v527_v34  ;;  %v493_v48 = vmul.f32 %v4891_v23, %v457_v9  ;;  %v546_v43 = vsub.s32 2, %v4881_v51 }
 0x164   :  { %v4173_v59 = vpop.eup %4172  ;;  %v401_v50 = vadd.f32 1e-05, %v369_v20  ;;  %v494_v36 = vmul.f32 %v4891_v23, %v458_v46  ;;  %3858 = vmatprep.mubr.msk.f32.mxu1 %vm50_vm0, %v528_v58 }
 0x165   :  { %v402_v27 = vadd.f32 1e-05, %v370_v21  ;;  %v4175_v7 = vpop.eup %4174  ;;  %v339_v24 = vpop.xlane.xlu1 %338  ;;  %v529_v37 = vadd.f32 %v4895_v31, %v493_v48  ;;  %v459_v41 = vmul.f32 %v4173_v59, %v4813_v28 }
 0x166   :  { %4184 = vrsqrt.f32 %v401_v50  ;;  %v371_v54 = vmul.f32 0.03125, %v339_v24  ;;  %v530_v8 = vadd.f32 %v4895_v31, %v494_v36  ;;  %v460_v62 = vmul.f32 %v4175_v7, %v4822_v32 }
 0x167   :  { %4186 = vrsqrt.f32 %v402_v27  ;;  %3859 = vmatmul.mubr.msk.f32.gmra.mrb[20].mxu1 %vm50_vm0, %v529_v37  ;;  %v495_v10 = vmul.f32 %v4891_v23, %v459_v41 }
 0x168   :  { %v4177_v2 = vpop.eup %4176  ;;  %v403_v25 = vadd.f32 1e-05, %v371_v54  ;;  %3861 = vmatprep.mubr.msk.f32.mxu1 %vm50_vm0, %v530_v8  ;;  %v496_v13 = vmul.f32 %v4891_v23, %v460_v62 }
 0x169   :  { %v4179_v52 = vpop.eup %4178  ;;  %v531_v28 = vadd.f32 %v4895_v31, %v495_v10  ;;  %v461_v33 = vmul.f32 %v4177_v2, %v4825_v45 }
 0x16a   :  { %4188 = vrsqrt.f32 %v403_v25  ;;  %v532_v1 = vadd.f32 %v4895_v31, %v496_v13  ;;  %v462_v32 = vmul.f32 %v4179_v52, %v4834_v47 }
 0x16b   :  { %3862 = vmatmul.mubr.msk.f32.gmra.mrb[22].mxu1 %vm50_vm0, %v531_v28  ;;  %v497_v3 = vmul.f32 %v4891_v23, %v461_v33 }
 0x16c   :  { %v4181_v4 = vpop.eup %4180  ;;  %3864 = vmatprep.mubr.msk.f32.mxu1 %vm50_vm0, %v532_v1  ;;  %v498_v15 = vmul.f32 %v4891_v23, %v462_v32 }
 0x16d   :  { %v4183_v6 = vpop.eup %4182  ;;  %v533_v14 = vadd.f32 %v4895_v31, %v497_v3  ;;  %v463_v40 = vmul.f32 %v4181_v4, %v4837_v49 }
 0x16e   :  { %v534_v45 = vadd.f32 %v4895_v31, %v498_v15  ;;  %v464_v5 = vmul.f32 %v4183_v6, %v4846_v63 }
 0x16f   :  { %3865 = vmatmul.mubr.msk.f32.gmra.mrb[24].mxu1 %vm50_vm0, %v533_v14  ;;  %v499_v47 = vmul.f32 %v4891_v23, %v463_v40 }
 0x170   :  { %v4185_v26 = vpop.eup %4184  ;;  %3867 = vmatprep.mubr.msk.f32.mxu1 %vm50_vm0, %v534_v45  ;;  %v500_v18 = vmul.f32 %v4891_v23, %v464_v5 }
 0x171   :  { %v4187_v29 = vpop.eup %4186  ;;  %v535_v55 = vadd.f32 %v4895_v31, %v499_v47  ;;  %v465_v56 = vmul.f32 %v4185_v26, %v4849_v53 }
 0x172   :  { %v536_v49 = vadd.f32 %v4895_v31, %v500_v18  ;;  %v466_v35 = vmul.f32 %v4187_v29, %v4858_v19 }
 0x173   :  { %3868 = vmatmul.mubr.msk.f32.gmra.mrb[26].mxu1 %vm50_vm0, %v535_v55  ;;  %v501_v63 = vmul.f32 %v4891_v23, %v465_v56 }
 0x174   :  { %v4189_v17 = vpop.eup %4188  ;;  %3870 = vmatprep.mubr.msk.f32.mxu1 %vm50_vm0, %v536_v49  ;;  %v502_v22 = vmul.f32 %v4891_v23, %v466_v35 }
 0x175   :  { %v537_v11 = vadd.f32 %v4895_v31, %v501_v63  ;;  %v467_v0 = vmul.f32 %v4189_v17, %v4861_v57  ;;  %v3545_v57 = vld [vmem:[%s6586_s1 + $0x48] sm:$0xff] }
 0x176   :  { %v538_v16 = vadd.f32 %v4895_v31, %v502_v22  ;;  %v4060_v60 = vpack.c.bf16 %v3545_v57, %v3544_v30 }
 0x177   :  { %3871 = vmatmul.mubr.msk.f32.gmra.mrb[28].mxu1 %vm50_vm0, %v537_v11  ;;  %v503_v53 = vmul.f32 %v4891_v23, %v467_v0  ;;  %v5039_v23 = vrot.slane %v4887_v12, %v546_v43 }
 0x178   :  { %3873 = vmatprep.mubr.msk.f32.mxu1 %vm50_vm0, %v538_v16  ;;  %4061 = vmatprep.subr.bf16.mxu0 %v4060_v60 }
 0x179   :  { %v539_v19 = vadd.f32 %v4895_v31, %v503_v53  ;;  %4063 = vmatpush3.bf16.msra.mxu0 %v4060_v60 }
 0x17b   :  { %3874 = vmatmul.mubr.msk.f32.gmra.mrb[30].mxu1 %vm50_vm0, %v539_v19 }
 0x212   :  { %v3830_v61 = vpop.f32.mrb[0].mxu1 }
 0x213   :  { %v716_v31 = vadd.f32 %v3830_v61, %v5039_v23  ;;  %v710_v44 = vpop.f32.mrb[1].mxu1 }
 0x214   :  { %v711_v38 = vadd.f32 %v710_v44, %v5039_v23 }
 0x215   :  { %v870_v9 = vmax.f32 %v716_v31, 0.0 }
 0x216   :  { %v869_v34 = vmax.f32 %v711_v38, 0.0  ;;  %v3833_v42 = vpop.f32.mrb[2].mxu1 }
 0x217   :  { %v726_v20 = vadd.f32 %v3833_v42, %v5039_v23  ;;  %v720_v21 = vpop.f32.mrb[3].mxu1 }
 0x218   :  { %v721_v46 = vadd.f32 %v720_v21, %v5039_v23  ;;  %3884 = vmatprep.mubr.msk.f32.mxu1 %vm50_vm0, %v869_v34 }
 0x219   :  { %3885 = vmatmul.mubr.msk.f32.vlgmr.msra.gmra.mrb[32].mxu1 %vm50_vm0, %v870_v9  ;;  %v872_v59 = vmax.f32 %v726_v20, 0.0 }
 0x21a   :  { %v871_v58 = vmax.f32 %v721_v46, 0.0  ;;  %v3836_v48 = vpop.f32.mrb[4].mxu1 }
 0x21b   :  { %v736_v50 = vadd.f32 %v3836_v48, %v5039_v23  ;;  %v730_v27 = vpop.f32.mrb[5].mxu1 }
 0x21c   :  { %v731_v36 = vadd.f32 %v730_v27, %v5039_v23  ;;  %3887 = vmatprep.mubr.msk.f32.mxu1 %vm50_vm0, %v871_v58 }
 0x21d   :  { %3888 = vmatmul.mubr.msk.f32.gmra.mrb[34].mxu1 %vm50_vm0, %v872_v59  ;;  %v874_v37 = vmax.f32 %v736_v50, 0.0 }
 0x21e   :  { %v873_v7 = vmax.f32 %v731_v36, 0.0  ;;  %v3839_v24 = vpop.f32.mrb[6].mxu1 }
 0x21f   :  { %v746_v41 = vadd.f32 %v3839_v24, %v5039_v23  ;;  %v740_v54 = vpop.f32.mrb[7].mxu1 }
 0x220   :  { %v741_v8 = vadd.f32 %v740_v54, %v5039_v23  ;;  %3890 = vmatprep.mubr.msk.f32.mxu1 %vm50_vm0, %v873_v7 }
 0x221   :  { %3891 = vmatmul.mubr.msk.f32.gmra.mrb[36].mxu1 %vm50_vm0, %v874_v37  ;;  %v876_v2 = vmax.f32 %v746_v41, 0.0 }
 0x222   :  { %v875_v62 = vmax.f32 %v741_v8, 0.0  ;;  %v3842_v10 = vpop.f32.mrb[8].mxu1 }
 0x223   :  { %v756_v25 = vadd.f32 %v3842_v10, %v5039_v23  ;;  %v750_v13 = vpop.f32.mrb[9].mxu1 }
 0x224   :  { %v751_v52 = vadd.f32 %v750_v13, %v5039_v23  ;;  %3893 = vmatprep.mubr.msk.f32.mxu1 %vm50_vm0, %v875_v62 }
 0x225   :  { %3894 = vmatmul.mubr.msk.f32.gmra.mrb[38].mxu1 %vm50_vm0, %v876_v2  ;;  %v878_v1 = vmax.f32 %v756_v25, 0.0 }
 0x226   :  { %v877_v28 = vmax.f32 %v751_v52, 0.0  ;;  %v3845_v33 = vpop.f32.mrb[10].mxu1 }
 0x227   :  { %v766_v32 = vadd.f32 %v3845_v33, %v5039_v23  ;;  %v760_v3 = vpop.f32.mrb[11].mxu1 }
 0x228   :  { %v761_v4 = vadd.f32 %v760_v3, %v5039_v23  ;;  %3896 = vmatprep.mubr.msk.f32.mxu1 %vm50_vm0, %v877_v28 }
 0x229   :  { %3897 = vmatmul.mubr.msk.f32.gmra.mrb[40].mxu1 %vm50_vm0, %v878_v1  ;;  %v880_v14 = vmax.f32 %v766_v32, 0.0 }
 0x22a   :  { %v879_v15 = vmax.f32 %v761_v4, 0.0  ;;  %v3848_v6 = vpop.f32.mrb[12].mxu1 }
 0x22b   :  { %v776_v40 = vadd.f32 %v3848_v6, %v5039_v23  ;;  %v770_v45 = vpop.f32.mrb[13].mxu1 }
 0x22c   :  { %v771_v5 = vadd.f32 %v770_v45, %v5039_v23  ;;  %3899 = vmatprep.mubr.msk.f32.mxu1 %vm50_vm0, %v879_v15 }
 0x22d   :  { %3900 = vmatmul.mubr.msk.f32.gmra.mrb[42].mxu1 %vm50_vm0, %v880_v14  ;;  %v882_v18 = vmax.f32 %v776_v40, 0.0  ;;  %v3546_v14 = vld [vmem:[%s6586_s1 + $0x50] sm:$0xff]  ;;  %v3547_v40 = vld [vmem:[%s6586_s1 + $0x58] sm:$0xff] }
 0x22e   :  { %v881_v47 = vmax.f32 %v771_v5, 0.0  ;;  %v3851_v26 = vpop.f32.mrb[14].mxu1  ;;  %v4064_v45 = vpack.c.bf16 %v3547_v40, %v3546_v14 }
 0x22f   :  { %v786_v29 = vadd.f32 %v3851_v26, %v5039_v23  ;;  %v780_v55 = vpop.f32.mrb[15].mxu1 }
 0x230   :  { %v781_v56 = vadd.f32 %v780_v55, %v5039_v23  ;;  %3902 = vmatprep.mubr.msk.f32.mxu1 %vm50_vm0, %v881_v47  ;;  %4065 = vmatprep.subr.bf16.mxu0 %v4064_v45 }
 0x231   :  { %3903 = vmatmul.mubr.msk.f32.gmra.mrb[44].mxu1 %vm50_vm0, %v882_v18  ;;  %v884_v63 = vmax.f32 %v786_v29, 0.0  ;;  %4067 = vmatpush3.bf16.msra.mxu0 %v4064_v45 }
 0x232   :  { %v883_v49 = vmax.f32 %v781_v56, 0.0  ;;  %v3854_v35 = vpop.f32.mrb[16].mxu1 }
 0x233   :  { %v796_v17 = vadd.f32 %v3854_v35, %v5039_v23  ;;  %v790_v22 = vpop.f32.mrb[17].mxu1 }
 0x234   :  { %v791_v11 = vadd.f32 %v790_v22, %v5039_v23  ;;  %3905 = vmatprep.mubr.msk.f32.mxu1 %vm50_vm0, %v883_v49 }
 0x235   :  { %3906 = vmatmul.mubr.msk.f32.gmra.mrb[46].mxu1 %vm50_vm0, %v884_v63  ;;  %v886_v53 = vmax.f32 %v796_v17, 0.0 }
 0x236   :  { %v885_v0 = vmax.f32 %v791_v11, 0.0  ;;  %v3857_v16 = vpop.f32.mrb[18].mxu1 }
 0x237   :  { %v806_v19 = vadd.f32 %v3857_v16, %v5039_v23  ;;  %v800_v30 = vpop.f32.mrb[19].mxu1 }
 0x238   :  { %v801_v57 = vadd.f32 %v800_v30, %v5039_v23  ;;  %3908 = vmatprep.mubr.msk.f32.mxu1 %vm50_vm0, %v885_v0 }
 0x239   :  { %3909 = vmatmul.mubr.msk.f32.gmra.mrb[48].mxu1 %vm50_vm0, %v886_v53  ;;  %v888_v61 = vmax.f32 %v806_v19, 0.0 }
 0x23a   :  { %v887_v60 = vmax.f32 %v801_v57, 0.0  ;;  %v3860_v43 = vpop.f32.mrb[20].mxu1 }
 0x23b   :  { %v816_v31 = vadd.f32 %v3860_v43, %v5039_v23  ;;  %v810_v44 = vpop.f32.mrb[21].mxu1 }
 0x23c   :  { %v811_v38 = vadd.f32 %v810_v44, %v5039_v23  ;;  %3911 = vmatprep.mubr.msk.f32.mxu1 %vm50_vm0, %v887_v60 }
 0x23d   :  { %3912 = vmatmul.mubr.msk.f32.gmra.mrb[50].mxu1 %vm50_vm0, %v888_v61  ;;  %v890_v9 = vmax.f32 %v816_v31, 0.0 }
 0x23e   :  { %v889_v34 = vmax.f32 %v811_v38, 0.0  ;;  %v3863_v42 = vpop.f32.mrb[22].mxu1 }
 0x23f   :  { %v826_v20 = vadd.f32 %v3863_v42, %v5039_v23  ;;  %v820_v21 = vpop.f32.mrb[23].mxu1 }
 0x240   :  { %v821_v46 = vadd.f32 %v820_v21, %v5039_v23  ;;  %3914 = vmatprep.mubr.msk.f32.mxu1 %vm50_vm0, %v889_v34 }
 0x241   :  { %3915 = vmatmul.mubr.msk.f32.gmra.mrb[52].mxu1 %vm50_vm0, %v890_v9  ;;  %v892_v59 = vmax.f32 %v826_v20, 0.0 }
 0x242   :  { %v891_v58 = vmax.f32 %v821_v46, 0.0  ;;  %v3866_v48 = vpop.f32.mrb[24].mxu1 }
 0x243   :  { %v836_v50 = vadd.f32 %v3866_v48, %v5039_v23  ;;  %v830_v27 = vpop.f32.mrb[25].mxu1 }
 0x244   :  { %v831_v36 = vadd.f32 %v830_v27, %v5039_v23  ;;  %3917 = vmatprep.mubr.msk.f32.mxu1 %vm50_vm0, %v891_v58 }
 0x245   :  { %3918 = vmatmul.mubr.msk.f32.gmra.mrb[54].mxu1 %vm50_vm0, %v892_v59  ;;  %v894_v37 = vmax.f32 %v836_v50, 0.0 }
 0x246   :  { %v893_v7 = vmax.f32 %v831_v36, 0.0  ;;  %v3869_v24 = vpop.f32.mrb[26].mxu1 }
 0x247   :  { %v846_v41 = vadd.f32 %v3869_v24, %v5039_v23  ;;  %v840_v54 = vpop.f32.mrb[27].mxu1 }
 0x248   :  { %v841_v8 = vadd.f32 %v840_v54, %v5039_v23  ;;  %3920 = vmatprep.mubr.msk.f32.mxu1 %vm50_vm0, %v893_v7 }
 0x249   :  { %3921 = vmatmul.mubr.msk.f32.gmra.mrb[56].mxu1 %vm50_vm0, %v894_v37  ;;  %v896_v2 = vmax.f32 %v846_v41, 0.0 }
 0x24a   :  { %v895_v62 = vmax.f32 %v841_v8, 0.0  ;;  %v3872_v10 = vpop.f32.mrb[28].mxu1 }
 0x24b   :  { %v856_v25 = vadd.f32 %v3872_v10, %v5039_v23  ;;  %v850_v13 = vpop.f32.mrb[29].mxu1 }
 0x24c   :  { %v851_v52 = vadd.f32 %v850_v13, %v5039_v23  ;;  %3923 = vmatprep.mubr.msk.f32.mxu1 %vm50_vm0, %v895_v62 }
 0x24d   :  { %3924 = vmatmul.mubr.msk.f32.gmra.mrb[58].mxu1 %vm50_vm0, %v896_v2  ;;  %v898_v1 = vmax.f32 %v856_v25, 0.0 }
 0x24e   :  { %v897_v28 = vmax.f32 %v851_v52, 0.0  ;;  %v3875_v33 = vpop.f32.mrb[30].mxu1 }
 0x24f   :  { %v866_v32 = vadd.f32 %v3875_v33, %v5039_v23  ;;  %v860_v3 = vpop.f32.mrb[31].mxu1 }
 0x250   :  { %v861_v4 = vadd.f32 %v860_v3, %v5039_v23  ;;  %3926 = vmatprep.mubr.msk.f32.mxu1 %vm50_vm0, %v897_v28  ;;  %v908_v23 = vsub.s32 3, %v4881_v51 }
 0x251   :  { %3927 = vmatmul.mubr.msk.f32.gmra.mrb[60].mxu1 %vm50_vm0, %v898_v1  ;;  %v900_v6 = vmax.f32 %v866_v32, 0.0 }
 0x252   :  { %v899_v15 = vmax.f32 %v861_v4, 0.0  ;;  %v5113_v5 = vrot.slane %v4887_v12, %v908_v23 }
 0x254   :  { %3929 = vmatprep.mubr.msk.f32.mxu1 %vm50_vm0, %v899_v15 }
 0x255   :  { %3930 = vmatmul.mubr.msk.f32.gmra.mrb[62].mxu1 %vm50_vm0, %v900_v6 }
 0x2ec   :  { %v3886_v47 = vpop.f32.mrb[32].mxu1 }
 0x2ed   :  { %v1078_v26 = vadd.f32 %v3886_v47, %v5113_v5  ;;  %v1072_v18 = vpop.f32.mrb[33].mxu1 }
 0x2ee   :  { %v1073_v29 = vadd.f32 %v1072_v18, %v5113_v5 }
 0x2ef   :  { %v1232_v49 = vmax.f32 %v1078_v26, 0.0 }
 0x2f0   :  { %v1231_v55 = vmax.f32 %v1073_v29, 0.0  ;;  %v3889_v56 = vpop.f32.mrb[34].mxu1 }
 0x2f1   :  { %v1088_v35 = vadd.f32 %v3889_v56, %v5113_v5  ;;  %v1082_v63 = vpop.f32.mrb[35].mxu1 }
 0x2f2   :  { %v1083_v17 = vadd.f32 %v1082_v63, %v5113_v5  ;;  %3940 = vmatprep.mubr.msk.f32.mxu0 %vm50_vm0, %v1231_v55 }
 0x2f3   :  { %3941 = vmatmul.mubr.msk.f32.vlgmr.msra.gmra.mrb[0].mxu0 %vm50_vm0, %v1232_v49  ;;  %v1234_v11 = vmax.f32 %v1088_v35, 0.0 }
 0x2f4   :  { %v1233_v12 = vmax.f32 %v1083_v17, 0.0  ;;  %v3892_v22 = vpop.f32.mrb[36].mxu1 }
 0x2f5   :  { %v1098_v0 = vadd.f32 %v3892_v22, %v5113_v5  ;;  %v1092_v16 = vpop.f32.mrb[37].mxu1 }
 0x2f6   :  { %v1093_v53 = vadd.f32 %v1092_v16, %v5113_v5  ;;  %3943 = vmatprep.mubr.msk.f32.mxu0 %vm50_vm0, %v1233_v12 }
 0x2f7   :  { %3944 = vmatmul.mubr.msk.f32.gmra.mrb[2].mxu0 %vm50_vm0, %v1234_v11  ;;  %v1236_v57 = vmax.f32 %v1098_v0, 0.0 }
 0x2f8   :  { %v1235_v19 = vmax.f32 %v1093_v53, 0.0  ;;  %v3895_v30 = vpop.f32.mrb[38].mxu1 }
 0x2f9   :  { %v1108_v60 = vadd.f32 %v3895_v30, %v5113_v5  ;;  %v1102_v43 = vpop.f32.mrb[39].mxu1 }
 0x2fa   :  { %v1103_v61 = vadd.f32 %v1102_v43, %v5113_v5  ;;  %3946 = vmatprep.mubr.msk.f32.mxu0 %vm50_vm0, %v1235_v19 }
 0x2fb   :  { %3947 = vmatmul.mubr.msk.f32.gmra.mrb[4].mxu0 %vm50_vm0, %v1236_v57  ;;  %v1238_v38 = vmax.f32 %v1108_v60, 0.0 }
 0x2fc   :  { %v1237_v31 = vmax.f32 %v1103_v61, 0.0  ;;  %v3898_v44 = vpop.f32.mrb[40].mxu1 }
 0x2fd   :  { %v1118_v34 = vadd.f32 %v3898_v44, %v5113_v5  ;;  %v1112_v42 = vpop.f32.mrb[41].mxu1 }
 0x2fe   :  { %v1113_v9 = vadd.f32 %v1112_v42, %v5113_v5  ;;  %3949 = vmatprep.mubr.msk.f32.mxu0 %vm50_vm0, %v1237_v31 }
 0x2ff   :  { %3950 = vmatmul.mubr.msk.f32.gmra.mrb[6].mxu0 %vm50_vm0, %v1238_v38  ;;  %v1240_v46 = vmax.f32 %v1118_v34, 0.0 }
 0x300   :  { %v1239_v20 = vmax.f32 %v1113_v9, 0.0  ;;  %v3901_v21 = vpop.f32.mrb[42].mxu1 }
 0x301   :  { %v1128_v58 = vadd.f32 %v3901_v21, %v5113_v5  ;;  %v1122_v48 = vpop.f32.mrb[43].mxu1 }
 0x302   :  { %v1123_v59 = vadd.f32 %v1122_v48, %v5113_v5  ;;  %3952 = vmatprep.mubr.msk.f32.mxu0 %vm50_vm0, %v1239_v20 }
 0x303   :  { %3953 = vmatmul.mubr.msk.f32.gmra.mrb[8].mxu0 %vm50_vm0, %v1240_v46  ;;  %v1242_v36 = vmax.f32 %v1128_v58, 0.0 }
 0x304   :  { %v1241_v50 = vmax.f32 %v1123_v59, 0.0  ;;  %v3904_v27 = vpop.f32.mrb[44].mxu1 }
 0x305   :  { %v1138_v7 = vadd.f32 %v3904_v27, %v5113_v5  ;;  %v1132_v24 = vpop.f32.mrb[45].mxu1  ;;  %v1623_v27 = vsub.s32 4, %v4881_v51 }
 0x306   :  { %v1133_v37 = vadd.f32 %v1132_v24, %v5113_v5  ;;  %3955 = vmatprep.mubr.msk.f32.mxu0 %vm50_vm0, %v1241_v50  ;;  %v4383_v24 = vld [vmem:[%s6585_s0 + $0x8] sm:$0xff] }
 0x307   :  { %3956 = vmatmul.mubr.msk.f32.gmra.mrb[10].mxu0 %vm50_vm0, %v1242_v36  ;;  %v1244_v8 = vmax.f32 %v1138_v7, 0.0  ;;  %v5183_v36 = vld [vmem:[%s6587_s2] sm:$0xff] }
 0x308   :  { %v1243_v41 = vmax.f32 %v1133_v37, 0.0  ;;  %v3907_v54 = vpop.f32.mrb[46].mxu1  ;;  %v5186_v7 = vrot.slane %v5183_v36, %v1623_v27  ;;  %v4395_v27 = vld [vmem:[%s6585_s0 + $0x68] sm:$0xff] }
 0x309   :  { %v1148_v62 = vadd.f32 %v3907_v54, %v5113_v5  ;;  %v1142_v10 = vpop.f32.mrb[47].mxu1  ;;  %v4384_v54 = vld [vmem:[%s6585_s0] sm:$0xff] }
 0x30a   :  { %v1143_v2 = vadd.f32 %v1142_v10, %v5113_v5  ;;  %3958 = vmatprep.mubr.msk.f32.mxu0 %vm50_vm0, %v1243_v41 }
 0x30b   :  { %3959 = vmatmul.mubr.msk.f32.gmra.mrb[12].mxu0 %vm50_vm0, %v1244_v8  ;;  %v1246_v52 = vmax.f32 %v1148_v62, 0.0 }
 0x30c   :  { %v1245_v25 = vmax.f32 %v1143_v2, 0.0  ;;  %v3910_v13 = vpop.f32.mrb[48].mxu1 }
 0x30d   :  { %v1158_v28 = vadd.f32 %v3910_v13, %v5113_v5  ;;  %v1152_v33 = vpop.f32.mrb[49].mxu1 }
 0x30e   :  { %v1153_v1 = vadd.f32 %v1152_v33, %v5113_v5  ;;  %3961 = vmatprep.mubr.msk.f32.mxu0 %vm50_vm0, %v1245_v25  ;;  %v4385_v25 = vld [vmem:[%s6585_s0 + $0x18] sm:$0xff]  ;;  %v4386_v33 = vld [vmem:[%s6585_s0 + $0x10] sm:$0xff] }
 0x30f   :  { %3962 = vmatmul.mubr.msk.f32.gmra.mrb[14].mxu0 %vm50_vm0, %v1246_v52  ;;  %v1248_v4 = vmax.f32 %v1158_v28, 0.0 }
 0x310   :  { %v1247_v32 = vmax.f32 %v1153_v1, 0.0  ;;  %v3913_v3 = vpop.f32.mrb[50].mxu1 }
 0x311   :  { %v1168_v15 = vadd.f32 %v3913_v3, %v5113_v5  ;;  %v1162_v6 = vpop.f32.mrb[51].mxu1 }
 0x312   :  { %v1163_v14 = vadd.f32 %v1162_v6, %v5113_v5  ;;  %3964 = vmatprep.mubr.msk.f32.mxu0 %vm50_vm0, %v1247_v32  ;;  %v4387_v6 = vld [vmem:[%s6585_s0 + $0x28] sm:$0xff] }
 0x313   :  { %3965 = vmatmul.mubr.msk.f32.gmra.mrb[16].mxu0 %vm50_vm0, %v1248_v4  ;;  %v1250_v23 = vmax.f32 %v1168_v15, 0.0 }
 0x314   :  { %v1249_v40 = vmax.f32 %v1163_v14, 0.0  ;;  %v3916_v45 = vpop.f32.mrb[52].mxu1 }
 0x315   :  { %v1178_v47 = vadd.f32 %v3916_v45, %v5113_v5  ;;  %v1172_v26 = vpop.f32.mrb[53].mxu1 }
 0x316   :  { %v1173_v18 = vadd.f32 %v1172_v26, %v5113_v5  ;;  %3967 = vmatprep.mubr.msk.f32.mxu0 %vm50_vm0, %v1249_v40 }
 0x317   :  { %3968 = vmatmul.mubr.msk.f32.gmra.mrb[18].mxu0 %vm50_vm0, %v1250_v23  ;;  %v1252_v56 = vmax.f32 %v1178_v47, 0.0  ;;  %v4388_v23 = vld [vmem:[%s6585_s0 + $0x20] sm:$0xff] }
 0x318   :  { %v1251_v29 = vmax.f32 %v1173_v18, 0.0  ;;  %v3919_v55 = vpop.f32.mrb[54].mxu1 }
 0x319   :  { %v1188_v49 = vadd.f32 %v3919_v55, %v5113_v5  ;;  %v1182_v35 = vpop.f32.mrb[55].mxu1 }
 0x31a   :  { %v1183_v63 = vadd.f32 %v1182_v35, %v5113_v5  ;;  %3970 = vmatprep.mubr.msk.f32.mxu0 %vm50_vm0, %v1251_v29 }
 0x31b   :  { %3971 = vmatmul.mubr.msk.f32.gmra.mrb[20].mxu0 %vm50_vm0, %v1252_v56  ;;  %v1254_v22 = vmax.f32 %v1188_v49, 0.0  ;;  %v4389_v56 = vld [vmem:[%s6585_s0 + $0x38] sm:$0xff] }
 0x31c   :  { %v1253_v17 = vmax.f32 %v1183_v63, 0.0  ;;  %v3922_v12 = vpop.f32.mrb[56].mxu1 }
 0x31d   :  { %v1198_v11 = vadd.f32 %v3922_v12, %v5113_v5  ;;  %v1192_v0 = vpop.f32.mrb[57].mxu1 }
 0x31e   :  { %v1193_v16 = vadd.f32 %v1192_v0, %v5113_v5  ;;  %3973 = vmatprep.mubr.msk.f32.mxu0 %vm50_vm0, %v1253_v17  ;;  %v4390_v17 = vld [vmem:[%s6585_s0 + $0x30] sm:$0xff] }
 0x31f   :  { %3974 = vmatmul.mubr.msk.f32.gmra.mrb[22].mxu0 %vm50_vm0, %v1254_v22  ;;  %v1256_v30 = vmax.f32 %v1198_v11, 0.0 }
 0x320   :  { %v1255_v53 = vmax.f32 %v1193_v16, 0.0  ;;  %v3925_v19 = vpop.f32.mrb[58].mxu1 }
 0x321   :  { %v1208_v57 = vadd.f32 %v3925_v19, %v5113_v5  ;;  %v1202_v60 = vpop.f32.mrb[59].mxu1 }
 0x322   :  { %v1203_v43 = vadd.f32 %v1202_v60, %v5113_v5  ;;  %3976 = vmatprep.mubr.msk.f32.mxu0 %vm50_vm0, %v1255_v53  ;;  %v4391_v53 = vld [vmem:[%s6585_s0 + $0x48] sm:$0xff]  ;;  %v4392_v60 = vld [vmem:[%s6585_s0 + $0x40] sm:$0xff] }
 0x323   :  { %3977 = vmatmul.mubr.msk.f32.gmra.mrb[24].mxu0 %vm50_vm0, %v1256_v30  ;;  %v1258_v44 = vmax.f32 %v1208_v57, 0.0 }
 0x324   :  { %v1257_v61 = vmax.f32 %v1203_v43, 0.0  ;;  %v3928_v31 = vpop.f32.mrb[60].mxu1 }
 0x325   :  { %v1218_v38 = vadd.f32 %v3928_v31, %v5113_v5  ;;  %v1212_v34 = vpop.f32.mrb[61].mxu1 }
 0x326   :  { %v1213_v42 = vadd.f32 %v1212_v34, %v5113_v5  ;;  %3979 = vmatprep.mubr.msk.f32.mxu0 %vm50_vm0, %v1257_v61  ;;  %v4393_v34 = vld [vmem:[%s6585_s0 + $0x58] sm:$0xff] }
 0x327   :  { %3980 = vmatmul.mubr.msk.f32.gmra.mrb[26].mxu0 %vm50_vm0, %v1258_v44  ;;  %v1260_v21 = vmax.f32 %v1218_v38, 0.0 }
 0x328   :  { %v1259_v9 = vmax.f32 %v1213_v42, 0.0  ;;  %v3931_v20 = vpop.f32.mrb[62].mxu1 }
 0x329   :  { %v1228_v46 = vadd.f32 %v3931_v20, %v5113_v5  ;;  %v1222_v58 = vpop.f32.mrb[63].mxu1 }
 0x32a   :  { %v1223_v48 = vadd.f32 %v1222_v58, %v5113_v5  ;;  %3982 = vmatprep.mubr.msk.f32.mxu0 %vm50_vm0, %v1259_v9 }
 0x32b   :  { %3983 = vmatmul.mubr.msk.f32.gmra.mrb[28].mxu0 %vm50_vm0, %v1260_v21  ;;  %v1262_v50 = vmax.f32 %v1228_v46, 0.0  ;;  %v4394_v21 = vld [vmem:[%s6585_s0 + $0x50] sm:$0xff] }
 0x32c   :  { %v1261_v59 = vmax.f32 %v1223_v48, 0.0 }
 0x32e   :  { %3985 = vmatprep.mubr.msk.f32.mxu0 %vm50_vm0, %v1261_v59 }
 0x32f   :  { %3986 = vmatmul.mubr.msk.f32.gmra.mrb[30].mxu0 %vm50_vm0, %v1262_v50 }
 0x3c6   :  { %v3942_v5 = vpop.f32.mrb[0].mxu0 }
 0x3c7   :  { %v1590_v37 = vadd.f32 %v4383_v24, %v3942_v5  ;;  %v1430_v41 = vpop.f32.mrb[1].mxu0 }
 0x3c8   :  { %v1589_v8 = vadd.f32 %v4384_v54, %v1430_v41  ;;  %v4396_v41 = vld [vmem:[%s6585_s0 + $0x60] sm:$0xff] }
 0x3c9   :  { %v5195_v62 = vadd.f32 %v5186_v7, %v1590_v37 }
 0x3ca   :  { %v3945_v10 = vpop.f32.mrb[2].mxu0  ;;  %v5198_v2 = vadd.f32 %v5186_v7, %v1589_v8 }
 0x3cb   :  { %v1592_v13 = vadd.f32 %v4385_v25, %v3945_v10  ;;  %v1440_v52 = vpop.f32.mrb[3].mxu0  ;;  %v1660_v28 = vsel %vm50_vm0, %v5195_v62, 0.0 }
 0x3cc   :  { %v1591_v1 = vadd.f32 %v4386_v33, %v1440_v52  ;;  %1661 = vadd.xlane.f32.xlu1 %v1660_v28  ;;  %v1657_v32 = vsel %vm50_vm0, %v5198_v2, 0.0  ;;  %v4397_v52 = vld [vmem:[%s6585_s0 + $0x78] sm:$0xff] }
 0x3cd   :  { %1658 = vadd.xlane.f32.xlu0 %v1657_v32  ;;  %v5211_v3 = vadd.f32 %v5186_v7, %v1592_v13  ;;  %v4398_v32 = vld [vmem:[%s6585_s0 + $0x70] sm:$0xff] }
 0x3ce   :  { %v3948_v4 = vpop.f32.mrb[4].mxu0  ;;  %v5214_v15 = vadd.f32 %v5186_v7, %v1591_v1 }
 0x3cf   :  { %v1594_v14 = vadd.f32 %v4387_v6, %v3948_v4  ;;  %v1450_v40 = vpop.f32.mrb[5].mxu0  ;;  %v1666_v45 = vsel %vm50_vm0, %v5211_v3, 0.0 }
 0x3d0   :  { %v1593_v47 = vadd.f32 %v4388_v23, %v1450_v40  ;;  %1667 = vadd.xlane.f32.xlu1 %v1666_v45  ;;  %v1663_v26 = vsel %vm50_vm0, %v5214_v15, 0.0  ;;  %v4399_v23 = vld [vmem:[%s6585_s0 + $0x88] sm:$0xff] }
 0x3d1   :  { %1664 = vadd.xlane.f32.xlu0 %v1663_v26  ;;  %v5227_v18 = vadd.f32 %v5186_v7, %v1594_v14 }
 0x3d2   :  { %v3951_v29 = vpop.f32.mrb[6].mxu0  ;;  %v5230_v55 = vadd.f32 %v5186_v7, %v1593_v47 }
 0x3d3   :  { %v1596_v49 = vadd.f32 %v4389_v56, %v3951_v29  ;;  %v1460_v35 = vpop.f32.mrb[7].mxu0  ;;  %v1672_v63 = vsel %vm50_vm0, %v5227_v18, 0.0  ;;  %v4400_v56 = vld [vmem:[%s6585_s0 + $0x80] sm:$0xff] }
 0x3d4   :  { %v1595_v12 = vadd.f32 %v4390_v17, %v1460_v35  ;;  %1673 = vadd.xlane.f32.xlu1 %v1672_v63  ;;  %v1669_v22 = vsel %vm50_vm0, %v5230_v55, 0.0 }
 0x3d5   :  { %1670 = vadd.xlane.f32.xlu0 %v1669_v22  ;;  %v5243_v11 = vadd.f32 %v5186_v7, %v1596_v49  ;;  %v4401_v22 = vld [vmem:[%s6585_s0 + $0x98] sm:$0xff] }
 0x3d6   :  { %v3954_v0 = vpop.f32.mrb[8].mxu0  ;;  %v5246_v16 = vadd.f32 %v5186_v7, %v1595_v12 }
 0x3d7   :  { %v1598_v19 = vadd.f32 %v4391_v53, %v3954_v0  ;;  %v1470_v30 = vpop.f32.mrb[9].mxu0  ;;  %v1678_v57 = vsel %vm50_vm0, %v5243_v11, 0.0 }
 0x3d8   :  { %v1597_v43 = vadd.f32 %v4392_v60, %v1470_v30  ;;  %1679 = vadd.xlane.f32.xlu1 %v1678_v57  ;;  %v1675_v61 = vsel %vm50_vm0, %v5246_v16, 0.0  ;;  %v4402_v30 = vld [vmem:[%s6585_s0 + $0x90] sm:$0xff] }
 0x3d9   :  { %1676 = vadd.xlane.f32.xlu0 %v1675_v61  ;;  %v5259_v31 = vadd.f32 %v5186_v7, %v1598_v19 }
 0x3da   :  { %v3957_v44 = vpop.f32.mrb[10].mxu0  ;;  %v5262_v38 = vadd.f32 %v5186_v7, %v1597_v43 }
 0x3db   :  { %v1600_v42 = vadd.f32 %v4393_v34, %v3957_v44  ;;  %v1480_v9 = vpop.f32.mrb[11].mxu0  ;;  %v1684_v20 = vsel %vm50_vm0, %v5259_v31, 0.0  ;;  %v4403_v34 = vld [vmem:[%s6585_s0 + $0xa8] sm:$0xff] }
 0x3dc   :  { %v1599_v46 = vadd.f32 %v4394_v21, %v1480_v9  ;;  %1685 = vadd.xlane.f32.xlu1 %v1684_v20  ;;  %v1681_v58 = vsel %vm50_vm0, %v5262_v38, 0.0  ;;  %v4404_v21 = vld [vmem:[%s6585_s0 + $0xa0] sm:$0xff] }
 0x3dd   :  { %1682 = vadd.xlane.f32.xlu0 %v1681_v58  ;;  %v5275_v48 = vadd.f32 %v5186_v7, %v1600_v42 }
 0x3de   :  { %v3960_v59 = vpop.f32.mrb[12].mxu0  ;;  %v5278_v50 = vadd.f32 %v5186_v7, %v1599_v46 }
 0x3df   :  { %v1602_v5 = vadd.f32 %v4395_v27, %v3960_v59  ;;  %v1490_v24 = vpop.f32.mrb[13].mxu0  ;;  %v1690_v37 = vsel %vm50_vm0, %v5275_v48, 0.0 }
 0x3e0   :  { %v1601_v54 = vadd.f32 %v4396_v41, %v1490_v24  ;;  %1691 = vadd.xlane.f32.xlu1 %v1690_v37  ;;  %v1687_v8 = vsel %vm50_vm0, %v5278_v50, 0.0  ;;  %v4405_v24 = vld [vmem:[%s6585_s0 + $0xb8] sm:$0xff] }
 0x3e1   :  { %1688 = vadd.xlane.f32.xlu0 %v1687_v8  ;;  %v5291_v10 = vadd.f32 %v5186_v7, %v1602_v5  ;;  %v4406_v8 = vld [vmem:[%s6585_s0 + $0xb0] sm:$0xff] }
 0x3e2   :  { %v3963_v25 = vpop.f32.mrb[14].mxu0  ;;  %v5294_v13 = vadd.f32 %v5186_v7, %v1601_v54 }
 0x3e3   :  { %v1604_v28 = vadd.f32 %v4397_v52, %v3963_v25  ;;  %v1500_v33 = vpop.f32.mrb[15].mxu0  ;;  %v1696_v1 = vsel %vm50_vm0, %v5291_v10, 0.0 }
 0x3e4   :  { %v1603_v4 = vadd.f32 %v4398_v32, %v1500_v33  ;;  %1697 = vadd.xlane.f32.xlu1 %v1696_v1  ;;  %v1693_v6 = vsel %vm50_vm0, %v5294_v13, 0.0  ;;  %v4407_v32 = vld [vmem:[%s6585_s0 + $0xc8] sm:$0xff] }
 0x3e5   :  { %1694 = vadd.xlane.f32.xlu0 %v1693_v6  ;;  %v5307_v14 = vadd.f32 %v5186_v7, %v1604_v28 }
 0x3e6   :  { %v3966_v40 = vpop.f32.mrb[16].mxu0  ;;  %v5310_v45 = vadd.f32 %v5186_v7, %v1603_v4 }
 0x3e7   :  { %v1606_v47 = vadd.f32 %v4399_v23, %v3966_v40  ;;  %v1510_v26 = vpop.f32.mrb[17].mxu0  ;;  %v1702_v29 = vsel %vm50_vm0, %v5307_v14, 0.0  ;;  %v4408_v23 = vld [vmem:[%s6585_s0 + $0xc0] sm:$0xff] }
 0x3e8   :  { %v1605_v49 = vadd.f32 %v4400_v56, %v1510_v26  ;;  %1703 = vadd.xlane.f32.xlu1 %v1702_v29  ;;  %v1699_v35 = vsel %vm50_vm0, %v5310_v45, 0.0 }
 0x3e9   :  { %1700 = vadd.xlane.f32.xlu0 %v1699_v35  ;;  %v5323_v63 = vadd.f32 %v5186_v7, %v1606_v47  ;;  %v4409_v35 = vld [vmem:[%s6585_s0 + $0xd8] sm:$0xff] }
 0x3ea   :  { %v3969_v17 = vpop.f32.mrb[18].mxu0  ;;  %v5326_v12 = vadd.f32 %v5186_v7, %v1605_v49 }
 0x3eb   :  { %v1608_v0 = vadd.f32 %v4401_v22, %v3969_v17  ;;  %v1520_v53 = vpop.f32.mrb[19].mxu0  ;;  %v1708_v19 = vsel %vm50_vm0, %v5323_v63, 0.0 }
 0x3ec   :  { %v1607_v57 = vadd.f32 %v4402_v30, %v1520_v53  ;;  %1709 = vadd.xlane.f32.xlu1 %v1708_v19  ;;  %v1705_v60 = vsel %vm50_vm0, %v5326_v12, 0.0  ;;  %v4410_v53 = vld [vmem:[%s6585_s0 + $0xd0] sm:$0xff] }
 0x3ed   :  { %1706 = vadd.xlane.f32.xlu0 %v1705_v60  ;;  %v5339_v43 = vadd.f32 %v5186_v7, %v1608_v0 }
 0x3ee   :  { %v3972_v61 = vpop.f32.mrb[20].mxu0  ;;  %v5342_v44 = vadd.f32 %v5186_v7, %v1607_v57 }
 0x3ef   :  { %v1610_v42 = vadd.f32 %v4403_v34, %v3972_v61  ;;  %v1530_v9 = vpop.f32.mrb[21].mxu0  ;;  %v1714_v20 = vsel %vm50_vm0, %v5339_v43, 0.0  ;;  %v4411_v34 = vld [vmem:[%s6585_s0 + $0xe8] sm:$0xff] }
 0x3f0   :  { %v1609_v46 = vadd.f32 %v4404_v21, %v1530_v9  ;;  %1715 = vadd.xlane.f32.xlu1 %v1714_v20  ;;  %v1711_v58 = vsel %vm50_vm0, %v5342_v44, 0.0  ;;  %v4412_v21 = vld [vmem:[%s6585_s0 + $0xe0] sm:$0xff] }
 0x3f1   :  { %1712 = vadd.xlane.f32.xlu0 %v1711_v58  ;;  %v5355_v59 = vadd.f32 %v5186_v7, %v1610_v42 }
 0x3f2   :  { %v3975_v27 = vpop.f32.mrb[22].mxu0  ;;  %v5358_v5 = vadd.f32 %v5186_v7, %v1609_v46 }
 0x3f3   :  { %v1612_v37 = vadd.f32 %v4405_v24, %v3975_v27  ;;  %v1540_v41 = vpop.f32.mrb[23].mxu0  ;;  %v1720_v54 = vsel %vm50_vm0, %v5355_v59, 0.0 }
 0x3f4   :  { %v1611_v25 = vadd.f32 %v4406_v8, %v1540_v41  ;;  %1721 = vadd.xlane.f32.xlu1 %v1720_v54  ;;  %v1717_v52 = vsel %vm50_vm0, %v5358_v5, 0.0  ;;  %v4413_v41 = vld [vmem:[%s6585_s0 + $0xf8] sm:$0xff] }
 0x3f5   :  { %1718 = vadd.xlane.f32.xlu0 %v1717_v52  ;;  %v5371_v28 = vadd.f32 %v5186_v7, %v1612_v37  ;;  %v4414_v52 = vld [vmem:[%s6585_s0 + $0xf0] sm:$0xff] }
 0x3f6   :  { %v3978_v33 = vpop.f32.mrb[24].mxu0  ;;  %v5374_v1 = vadd.f32 %v5186_v7, %v1611_v25 }
 0x3f7   :  { %v1614_v4 = vadd.f32 %v4407_v32, %v3978_v33  ;;  %v1550_v6 = vpop.f32.mrb[25].mxu0  ;;  %v1726_v40 = vsel %vm50_vm0, %v5371_v28, 0.0 }
 0x3f8   :  { %v1613_v47 = vadd.f32 %v4408_v23, %v1550_v6  ;;  %1727 = vadd.xlane.f32.xlu1 %v1726_v40  ;;  %v1723_v26 = vsel %vm50_vm0, %v5374_v1, 0.0 }
 0x3f9   :  { %1724 = vadd.xlane.f32.xlu0 %v1723_v26  ;;  %v5387_v29 = vadd.f32 %v5186_v7, %v1614_v4  ;;  %v2146_v26 = vld [vmem:[%s6588_s3 + $0x8] sm:$0xff] }
 0x3fa   :  { %v3981_v56 = vpop.f32.mrb[26].mxu0  ;;  %v5390_v49 = vadd.f32 %v5186_v7, %v1613_v47  ;;  %v2145_v47 = vld [vmem:[%s6588_s3] sm:$0xff] }
 0x3fb   :  { %v1616_v17 = vadd.f32 %v4409_v35, %v3981_v56  ;;  %v1560_v22 = vpop.f32.mrb[27].mxu0  ;;  %v1732_v0 = vsel %vm50_vm0, %v5387_v29, 0.0  ;;  %v4068_v56 = vpack.c.bf16 %v2146_v26, %v2145_v47  ;;  %v2148_v35 = vld [vmem:[%s6588_s3 + $0x18] sm:$0xff] }
 0x3fc   :  { %v1615_v19 = vadd.f32 %v4410_v53, %v1560_v22  ;;  %1733 = vadd.xlane.f32.xlu1 %v1732_v0  ;;  %v1729_v30 = vsel %vm50_vm0, %v5390_v49, 0.0 }
 0x3fd   :  { %1730 = vadd.xlane.f32.xlu0 %v1729_v30  ;;  %v5403_v57 = vadd.f32 %v5186_v7, %v1616_v17  ;;  %4069 = vmatprep.subr.bf16.mxu1 %v4068_v56 }
 0x3fe   :  { %v3984_v60 = vpop.f32.mrb[28].mxu0  ;;  %v5406_v61 = vadd.f32 %v5186_v7, %v1615_v19  ;;  %4071 = vmatpush3.bf16.msra.mxu1 %v4068_v56 }
 0x3ff   :  { %v1618_v42 = vadd.f32 %v4411_v34, %v3984_v60  ;;  %v1570_v9 = vpop.f32.mrb[29].mxu0  ;;  %v1738_v20 = vsel %vm50_vm0, %v5403_v57, 0.0 }
 0x400   :  { %v1617_v46 = vadd.f32 %v4412_v21, %v1570_v9  ;;  %1739 = vadd.xlane.f32.xlu1 %v1738_v20  ;;  %v1735_v58 = vsel %vm50_vm0, %v5406_v61, 0.0 }
 0x401   :  { %1736 = vadd.xlane.f32.xlu0 %v1735_v58  ;;  %v5419_v27 = vadd.f32 %v5186_v7, %v1618_v42 }
 0x402   :  { %v3987_v24 = vpop.f32.mrb[30].mxu0  ;;  %v5422_v37 = vadd.f32 %v5186_v7, %v1617_v46 }
 0x403   :  { %v1620_v54 = vadd.f32 %v4413_v41, %v3987_v24  ;;  %v1580_v8 = vpop.f32.mrb[31].mxu0  ;;  %v1744_v25 = vsel %vm50_vm0, %v5419_v27, 0.0 }
 0x404   :  { %v1619_v33 = vadd.f32 %v4414_v52, %v1580_v8  ;;  %1745 = vadd.xlane.f32.xlu1 %v1744_v25  ;;  %v1741_v32 = vsel %vm50_vm0, %v5422_v37, 0.0 }
 0x405   :  { %1742 = vadd.xlane.f32.xlu0 %v1741_v32  ;;  %v5435_v4 = vadd.f32 %v5186_v7, %v1620_v54 }
 0x406   :  { %v5438_v6 = vadd.f32 %v5186_v7, %v1619_v33  ;;  %v2147_v7 = vld [vmem:[%s6588_s3 + $0x10] sm:$0xff] }
 0x407   :  { %v1750_v40 = vsel %vm50_vm0, %v5435_v4, 0.0  ;;  %v4072_v17 = vpack.c.bf16 %v2148_v35, %v2147_v7 }
 0x408   :  { %1751 = vadd.xlane.f32.xlu1 %v1750_v40  ;;  %v1747_v23 = vsel %vm50_vm0, %v5438_v6, 0.0 }
 0x409   :  { %1748 = vadd.xlane.f32.xlu0 %v1747_v23  ;;  %4073 = vmatprep.subr.bf16.mxu1 %v4072_v17 }
 0x40a   :  { %4075 = vmatpush3.bf16.msra.mxu1 %v4072_v17 }
 0x459   :  { %v1662_v22 = vpop.xlane.xlu1 %1661 }
 0x45a   :  { %v1754_v0 = vmul.f32 0.03125, %v1662_v22  ;;  %v1659_v53 = vpop.xlane.xlu0 %1658 }
 0x45b   :  { %v1753_v19 = vmul.f32 0.03125, %v1659_v53 }
 0x45c   :  { %v5457_v30 = vsub.f32 %v5195_v62, %v1754_v0 }
 0x45d   :  { %v5460_v60 = vsub.f32 %v5198_v2, %v1753_v19  ;;  %v1668_v34 = vpop.xlane.xlu1 %1667 }
 0x45e   :  { %v1756_v42 = vmul.f32 0.03125, %v1668_v34  ;;  %v1665_v9 = vpop.xlane.xlu0 %1664  ;;  %v1818_v20 = vmul.f32 %v5457_v30, %v5457_v30 }
 0x45f   :  { %v1755_v21 = vmul.f32 0.03125, %v1665_v9  ;;  %v1817_v46 = vmul.f32 %v5460_v60, %v5460_v60 }
 0x460   :  { %v5467_v58 = vsub.f32 %v5211_v3, %v1756_v42  ;;  %v1852_v24 = vsel %vm50_vm0, %v1818_v20, 0.0 }
 0x461   :  { %v5471_v62 = vsub.f32 %v5214_v15, %v1755_v21  ;;  %v1674_v2 = vpop.xlane.xlu1 %1673  ;;  %1853 = vadd.xlane.f32.xlu1 %v1852_v24  ;;  %v1849_v41 = vsel %vm50_vm0, %v1817_v46, 0.0 }
 0x462   :  { %v1758_v54 = vmul.f32 0.03125, %v1674_v2  ;;  %v1671_v8 = vpop.xlane.xlu0 %1670  ;;  %1850 = vadd.xlane.f32.xlu0 %v1849_v41  ;;  %v1820_v25 = vmul.f32 %v5467_v58, %v5467_v58 }
 0x463   :  { %v1757_v52 = vmul.f32 0.03125, %v1671_v8  ;;  %v1819_v3 = vmul.f32 %v5471_v62, %v5471_v62 }
 0x464   :  { %v5479_v33 = vsub.f32 %v5227_v18, %v1758_v54  ;;  %v1858_v15 = vsel %vm50_vm0, %v1820_v25, 0.0 }
 0x465   :  { %v5483_v32 = vsub.f32 %v5230_v55, %v1757_v52  ;;  %v1680_v40 = vpop.xlane.xlu1 %1679  ;;  %1859 = vadd.xlane.f32.xlu1 %v1858_v15  ;;  %v1855_v23 = vsel %vm50_vm0, %v1819_v3, 0.0 }
 0x466   :  { %v1760_v47 = vmul.f32 0.03125, %v1680_v40  ;;  %v1677_v26 = vpop.xlane.xlu0 %1676  ;;  %1856 = vadd.xlane.f32.xlu0 %v1855_v23  ;;  %v1822_v7 = vmul.f32 %v5479_v33, %v5479_v33 }
 0x467   :  { %v1759_v56 = vmul.f32 0.03125, %v1677_v26  ;;  %v1821_v18 = vmul.f32 %v5483_v32, %v5483_v32 }
 0x468   :  { %v5491_v35 = vsub.f32 %v5243_v11, %v1760_v47  ;;  %v1864_v55 = vsel %vm50_vm0, %v1822_v7, 0.0 }
 0x469   :  { %v5495_v17 = vsub.f32 %v5246_v16, %v1759_v56  ;;  %v1686_v22 = vpop.xlane.xlu1 %1685  ;;  %1865 = vadd.xlane.f32.xlu1 %v1864_v55  ;;  %v1861_v0 = vsel %vm50_vm0, %v1821_v18, 0.0 }
 0x46a   :  { %v1762_v53 = vmul.f32 0.03125, %v1686_v22  ;;  %v1683_v19 = vpop.xlane.xlu0 %1682  ;;  %1862 = vadd.xlane.f32.xlu0 %v1861_v0  ;;  %v1824_v34 = vmul.f32 %v5491_v35, %v5491_v35 }
 0x46b   :  { %v1761_v42 = vmul.f32 0.03125, %v1683_v19  ;;  %v1823_v11 = vmul.f32 %v5495_v17, %v5495_v17 }
 0x46c   :  { %v5503_v9 = vsub.f32 %v5259_v31, %v1762_v53  ;;  %v1870_v16 = vsel %vm50_vm0, %v1824_v34, 0.0 }
 0x46d   :  { %v5507_v20 = vsub.f32 %v5262_v38, %v1761_v42  ;;  %v1692_v21 = vpop.xlane.xlu1 %1691  ;;  %1871 = vadd.xlane.f32.xlu1 %v1870_v16  ;;  %v1867_v46 = vsel %vm50_vm0, %v1823_v11, 0.0 }
 0x46e   :  { %v1764_v24 = vmul.f32 0.03125, %v1692_v21  ;;  %v1689_v2 = vpop.xlane.xlu0 %1688  ;;  %1868 = vadd.xlane.f32.xlu0 %v1867_v46  ;;  %v1826_v41 = vmul.f32 %v5503_v9, %v5503_v9 }
 0x46f   :  { %v1763_v54 = vmul.f32 0.03125, %v1689_v2  ;;  %v1825_v31 = vmul.f32 %v5507_v20, %v5507_v20 }
 0x470   :  { %v5515_v8 = vsub.f32 %v5275_v48, %v1764_v24  ;;  %v1876_v38 = vsel %vm50_vm0, %v1826_v41, 0.0 }
 0x471   :  { %v5519_v25 = vsub.f32 %v5278_v50, %v1763_v54  ;;  %v1698_v52 = vpop.xlane.xlu1 %1697  ;;  %1877 = vadd.xlane.f32.xlu1 %v1876_v38  ;;  %v1873_v3 = vsel %vm50_vm0, %v1825_v31, 0.0 }
 0x472   :  { %v1766_v15 = vmul.f32 0.03125, %v1698_v52  ;;  %v1695_v40 = vpop.xlane.xlu0 %1694  ;;  %1874 = vadd.xlane.f32.xlu0 %v1873_v3  ;;  %v1828_v23 = vmul.f32 %v5515_v8, %v5515_v8 }
 0x473   :  { %v1765_v47 = vmul.f32 0.03125, %v1695_v40  ;;  %v1827_v48 = vmul.f32 %v5519_v25, %v5519_v25 }
 0x474   :  { %v5527_v26 = vsub.f32 %v5291_v10, %v1766_v15  ;;  %v1882_v50 = vsel %vm50_vm0, %v1828_v23, 0.0 }
 0x475   :  { %v5531_v7 = vsub.f32 %v5294_v13, %v1765_v47  ;;  %v1704_v56 = vpop.xlane.xlu1 %1703  ;;  %1883 = vadd.xlane.f32.xlu1 %v1882_v50  ;;  %v1879_v18 = vsel %vm50_vm0, %v1827_v48, 0.0 }
 0x476   :  { %v1768_v55 = vmul.f32 0.03125, %v1704_v56  ;;  %v1701_v22 = vpop.xlane.xlu0 %1700  ;;  %1880 = vadd.xlane.f32.xlu0 %v1879_v18  ;;  %v1830_v0 = vmul.f32 %v5527_v26, %v5527_v26 }
 0x477   :  { %v1767_v53 = vmul.f32 0.03125, %v1701_v22  ;;  %v1829_v10 = vmul.f32 %v5531_v7, %v5531_v7 }
 0x478   :  { %v5539_v19 = vsub.f32 %v5307_v14, %v1768_v55  ;;  %v1888_v13 = vsel %vm50_vm0, %v1830_v0, 0.0 }
 0x479   :  { %v5543_v34 = vsub.f32 %v5310_v45, %v1767_v53  ;;  %v1710_v42 = vpop.xlane.xlu1 %1709  ;;  %1889 = vadd.xlane.f32.xlu1 %v1888_v13  ;;  %v1885_v11 = vsel %vm50_vm0, %v1829_v10, 0.0 }
 0x47a   :  { %v1770_v16 = vmul.f32 0.03125, %v1710_v42  ;;  %v1707_v21 = vpop.xlane.xlu0 %1706  ;;  %1886 = vadd.xlane.f32.xlu0 %v1885_v11  ;;  %v1832_v46 = vmul.f32 %v5539_v19, %v5539_v19 }
 0x47b   :  { %v1769_v24 = vmul.f32 0.03125, %v1707_v21  ;;  %v1831_v14 = vmul.f32 %v5543_v34, %v5543_v34 }
 0x47c   :  { %v5551_v2 = vsub.f32 %v5323_v63, %v1770_v16  ;;  %v1894_v45 = vsel %vm50_vm0, %v1832_v46, 0.0 }
 0x47d   :  { %v5555_v41 = vsub.f32 %v5326_v12, %v1769_v24  ;;  %v1716_v54 = vpop.xlane.xlu1 %1715  ;;  %1895 = vadd.xlane.f32.xlu1 %v1894_v45  ;;  %v1891_v31 = vsel %vm50_vm0, %v1831_v14, 0.0 }
 0x47e   :  { %v1772_v38 = vmul.f32 0.03125, %v1716_v54  ;;  %v1713_v52 = vpop.xlane.xlu0 %1712  ;;  %1892 = vadd.xlane.f32.xlu0 %v1891_v31  ;;  %v1834_v3 = vmul.f32 %v5551_v2, %v5551_v2 }
 0x47f   :  { %v1771_v15 = vmul.f32 0.03125, %v1713_v52  ;;  %v1833_v63 = vmul.f32 %v5555_v41, %v5555_v41 }
 0x480   :  { %v5563_v40 = vsub.f32 %v5339_v43, %v1772_v38  ;;  %v1900_v12 = vsel %vm50_vm0, %v1834_v3, 0.0 }
 0x481   :  { %v5567_v23 = vsub.f32 %v5342_v44, %v1771_v15  ;;  %v1722_v47 = vpop.xlane.xlu1 %1721  ;;  %1901 = vadd.xlane.f32.xlu1 %v1900_v12  ;;  %v1897_v48 = vsel %vm50_vm0, %v1833_v63, 0.0 }
 0x482   :  { %v1774_v50 = vmul.f32 0.03125, %v1722_v47  ;;  %v1719_v56 = vpop.xlane.xlu0 %1718  ;;  %1898 = vadd.xlane.f32.xlu0 %v1897_v48  ;;  %v1836_v18 = vmul.f32 %v5563_v40, %v5563_v40 }
 0x483   :  { %v1773_v55 = vmul.f32 0.03125, %v1719_v56  ;;  %v1835_v43 = vmul.f32 %v5567_v23, %v5567_v23 }
 0x484   :  { %v5575_v22 = vsub.f32 %v5355_v59, %v1774_v50  ;;  %v1906_v44 = vsel %vm50_vm0, %v1836_v18, 0.0 }
 0x485   :  { %v5579_v0 = vsub.f32 %v5358_v5, %v1773_v55  ;;  %v1728_v53 = vpop.xlane.xlu1 %1727  ;;  %1907 = vadd.xlane.f32.xlu1 %v1906_v44  ;;  %v1903_v10 = vsel %vm50_vm0, %v1835_v43, 0.0 }
 0x486   :  { %v1776_v13 = vmul.f32 0.03125, %v1728_v53  ;;  %v1725_v42 = vpop.xlane.xlu0 %1724  ;;  %1904 = vadd.xlane.f32.xlu0 %v1903_v10  ;;  %v1838_v11 = vmul.f32 %v5575_v22, %v5575_v22 }
 0x487   :  { %v1775_v16 = vmul.f32 0.03125, %v1725_v42  ;;  %v1837_v59 = vmul.f32 %v5579_v0, %v5579_v0 }
 0x488   :  { %v5587_v21 = vsub.f32 %v5371_v28, %v1776_v13  ;;  %v1912_v5 = vsel %vm50_vm0, %v1838_v11, 0.0 }
 0x489   :  { %v5591_v46 = vsub.f32 %v5374_v1, %v1775_v16  ;;  %v1734_v24 = vpop.xlane.xlu1 %1733  ;;  %1913 = vadd.xlane.f32.xlu1 %v1912_v5  ;;  %v1909_v14 = vsel %vm50_vm0, %v1837_v59, 0.0 }
 0x48a   :  { %v1778_v45 = vmul.f32 0.03125, %v1734_v24  ;;  %v1731_v54 = vpop.xlane.xlu0 %1730  ;;  %1910 = vadd.xlane.f32.xlu0 %v1909_v14  ;;  %v1840_v31 = vmul.f32 %v5587_v21, %v5587_v21 }
 0x48b   :  { %v1777_v38 = vmul.f32 0.03125, %v1731_v54  ;;  %v1839_v28 = vmul.f32 %v5591_v46, %v5591_v46 }
 0x48c   :  { %v5599_v52 = vsub.f32 %v5387_v29, %v1778_v45  ;;  %v1918_v1 = vsel %vm50_vm0, %v1840_v31, 0.0 }
 0x48d   :  { %v5603_v3 = vsub.f32 %v5390_v49, %v1777_v38  ;;  %v1740_v15 = vpop.xlane.xlu1 %1739  ;;  %1919 = vadd.xlane.f32.xlu1 %v1918_v1  ;;  %v1915_v63 = vsel %vm50_vm0, %v1839_v28, 0.0 }
 0x48e   :  { %v1780_v12 = vmul.f32 0.03125, %v1740_v15  ;;  %v1737_v47 = vpop.xlane.xlu0 %1736  ;;  %1916 = vadd.xlane.f32.xlu0 %v1915_v63  ;;  %v1842_v48 = vmul.f32 %v5599_v52, %v5599_v52 }
 0x48f   :  { %v1779_v50 = vmul.f32 0.03125, %v1737_v47  ;;  %v1841_v29 = vmul.f32 %v5603_v3, %v5603_v3 }
 0x490   :  { %v5611_v56 = vsub.f32 %v5403_v57, %v1780_v12  ;;  %v1924_v49 = vsel %vm50_vm0, %v1842_v48, 0.0 }
 0x491   :  { %v5615_v18 = vsub.f32 %v5406_v61, %v1779_v50  ;;  %v1746_v55 = vpop.xlane.xlu1 %1745  ;;  %1925 = vadd.xlane.f32.xlu1 %v1924_v49  ;;  %v1921_v43 = vsel %vm50_vm0, %v1841_v29, 0.0 }
 0x492   :  { %v1782_v44 = vmul.f32 0.03125, %v1746_v55  ;;  %v1743_v53 = vpop.xlane.xlu0 %1742  ;;  %1922 = vadd.xlane.f32.xlu0 %v1921_v43  ;;  %v1844_v10 = vmul.f32 %v5611_v56, %v5611_v56 }
 0x493   :  { %v1781_v13 = vmul.f32 0.03125, %v1743_v53  ;;  %v1843_v57 = vmul.f32 %v5615_v18, %v5615_v18 }
 0x494   :  { %v5623_v42 = vsub.f32 %v5419_v27, %v1782_v44  ;;  %v1930_v61 = vsel %vm50_vm0, %v1844_v10, 0.0 }
 0x495   :  { %v5627_v11 = vsub.f32 %v5422_v37, %v1781_v13  ;;  %1931 = vadd.xlane.f32.xlu1 %v1930_v61  ;;  %v1752_v16 = vpop.xlane.xlu1 %1751  ;;  %v1927_v59 = vsel %vm50_vm0, %v1843_v57, 0.0  ;;  %v2075_v61 = vsub.s32 5, %v4881_v51 }
 0x496   :  { %v1784_v5 = vmul.f32 0.03125, %v1752_v16  ;;  %1928 = vadd.xlane.f32.xlu0 %v1927_v59  ;;  %v1749_v24 = vpop.xlane.xlu0 %1748  ;;  %v1846_v14 = vmul.f32 %v5623_v42, %v5623_v42 }
 0x497   :  { %v1783_v45 = vmul.f32 0.03125, %v1749_v24  ;;  %v1845_v27 = vmul.f32 %v5627_v11, %v5627_v11 }
 0x498   :  { %v5635_v54 = vsub.f32 %v5435_v4, %v1784_v5  ;;  %v1936_v37 = vsel %vm50_vm0, %v1846_v14, 0.0  ;;  %v2111_v14 = vsub.s32 6, %v4881_v51 }
 0x499   :  { %v5639_v31 = vsub.f32 %v5438_v6, %v1783_v45  ;;  %1937 = vadd.xlane.f32.xlu1 %v1936_v37  ;;  %v1933_v38 = vsel %vm50_vm0, %v1845_v27, 0.0  ;;  %v5651_v37 = vrot.slane %v5183_v36, %v2075_v61 }
 0x49a   :  { %1934 = vadd.xlane.f32.xlu0 %v1933_v38  ;;  %v1848_v28 = vmul.f32 %v5635_v54, %v5635_v54 }
 0x49b   :  { %v1847_v1 = vmul.f32 %v5639_v31, %v5639_v31 }
 0x49c   :  { %v1942_v15 = vsel %vm50_vm0, %v1848_v28, 0.0 }
 0x49d   :  { %1943 = vadd.xlane.f32.xlu1 %v1942_v15  ;;  %v1939_v4 = vsel %vm50_vm0, %v1847_v1, 0.0 }
 0x49e   :  { %1940 = vadd.xlane.f32.xlu0 %v1939_v4 }
 0x4ee   :  { %v1854_v63 = vpop.xlane.xlu1 %1853 }
 0x4ef   :  { %v1946_v12 = vmul.f32 0.03125, %v1854_v63  ;;  %v1851_v6 = vpop.xlane.xlu0 %1850 }
 0x4f0   :  { %v1945_v47 = vmul.f32 0.03125, %v1851_v6  ;;  %v5655_v6 = vrot.slane %v5183_v36, %v2111_v14 }
 0x4f1   :  { %v1978_v48 = vadd.f32 1e-05, %v1946_v12 }
 0x4f2   :  { %v1977_v50 = vadd.f32 1e-05, %v1945_v47  ;;  %v1860_v29 = vpop.xlane.xlu1 %1859 }
 0x4f3   :  { %4190 = vrsqrt.f32 %v1978_v48  ;;  %v1948_v49 = vmul.f32 0.03125, %v1860_v29  ;;  %v1857_v55 = vpop.xlane.xlu0 %1856 }
 0x4f4   :  { %4192 = vrsqrt.f32 %v1977_v50  ;;  %v1947_v43 = vmul.f32 0.03125, %v1857_v55 }
 0x4f5   :  { %v1980_v44 = vadd.f32 1e-05, %v1948_v49 }
 0x4f6   :  { %v1979_v53 = vadd.f32 1e-05, %v1947_v43  ;;  %v1866_v10 = vpop.xlane.xlu1 %1865 }
 0x4f7   :  { %4194 = vrsqrt.f32 %v1980_v44  ;;  %v1950_v13 = vmul.f32 0.03125, %v1866_v10  ;;  %v1863_v57 = vpop.xlane.xlu0 %1862 }
 0x4f8   :  { %4196 = vrsqrt.f32 %v1979_v53  ;;  %v1949_v16 = vmul.f32 0.03125, %v1863_v57 }
 0x4f9   :  { %v1982_v59 = vadd.f32 1e-05, %v1950_v13 }
 0x4fa   :  { %v1981_v5 = vadd.f32 1e-05, %v1949_v16  ;;  %v1872_v24 = vpop.xlane.xlu1 %1871 }
 0x4fb   :  { %4198 = vrsqrt.f32 %v1982_v59  ;;  %v1952_v45 = vmul.f32 0.03125, %v1872_v24  ;;  %v1869_v27 = vpop.xlane.xlu0 %1868 }
 0x4fc   :  { %4200 = vrsqrt.f32 %v1981_v5  ;;  %v1951_v38 = vmul.f32 0.03125, %v1869_v27 }
 0x4fd   :  { %v4191_v28 = vpop.eup %4190  ;;  %v1984_v1 = vadd.f32 1e-05, %v1952_v45 }
 0x4fe   :  { %v4193_v15 = vpop.eup %4192  ;;  %v2042_v4 = vmul.f32 %v4191_v28, %v5457_v30  ;;  %v1983_v63 = vadd.f32 1e-05, %v1951_v38  ;;  %v1878_v12 = vpop.xlane.xlu1 %1877 }
 0x4ff   :  { %4202 = vrsqrt.f32 %v1984_v1  ;;  %v1954_v47 = vmul.f32 0.03125, %v1878_v12  ;;  %v1875_v48 = vpop.xlane.xlu0 %1874  ;;  %v2041_v50 = vmul.f32 %v4193_v15, %v5460_v60 }
 0x500   :  { %v2078_v29 = vmul.f32 %v5651_v37, %v2042_v4  ;;  %4204 = vrsqrt.f32 %v1983_v63  ;;  %v1953_v49 = vmul.f32 0.03125, %v1875_v48 }
 0x501   :  { %v4195_v55 = vpop.eup %4194  ;;  %v1986_v43 = vadd.f32 1e-05, %v1954_v47  ;;  %v2077_v44 = vmul.f32 %v5651_v37, %v2041_v50 }
 0x502   :  { %v4197_v53 = vpop.eup %4196  ;;  %v1985_v30 = vadd.f32 1e-05, %v1953_v49  ;;  %v1884_v10 = vpop.xlane.xlu1 %1883  ;;  %v2044_v13 = vmul.f32 %v4195_v55, %v5467_v58  ;;  %v2114_v16 = vadd.f32 %v5655_v6, %v2078_v29 }
 0x503   :  { %4206 = vrsqrt.f32 %v1986_v43  ;;  %v1956_v36 = vmul.f32 0.03125, %v1884_v10  ;;  %v1881_v57 = vpop.xlane.xlu0 %1880  ;;  %v2113_v61 = vadd.f32 %v5655_v6, %v2077_v44  ;;  %v2043_v60 = vmul.f32 %v4197_v53, %v5471_v62 }
 0x504   :  { %4208 = vrsqrt.f32 %v1985_v30  ;;  %v1955_v59 = vmul.f32 0.03125, %v1881_v57  ;;  %v2080_v5 = vmul.f32 %v5651_v37, %v2044_v13 }
 0x505   :  { %v4199_v24 = vpop.eup %4198  ;;  %v1988_v14 = vadd.f32 1e-05, %v1956_v36  ;;  %3996 = vmatprep.mubr.msk.f32.mxu1 %vm50_vm0, %v2113_v61  ;;  %v2079_v45 = vmul.f32 %v5651_v37, %v2043_v60 }
 0x506   :  { %v4201_v58 = vpop.eup %4200  ;;  %v1987_v27 = vadd.f32 1e-05, %v1955_v59  ;;  %v1890_v38 = vpop.xlane.xlu1 %1889  ;;  %3997 = vmatmul.mubr.msk.f32.vlgmr.msra.gmra.mrb[64].mxu1 %vm50_vm0, %v2114_v16  ;;  %v2046_v28 = vmul.f32 %v4199_v24, %v5479_v33  ;;  %v2116_v12 = vadd.f32 %v5655_v6, %v2080_v5 }
 0x507   :  { %4210 = vrsqrt.f32 %v1988_v14  ;;  %v1958_v62 = vmul.f32 0.03125, %v1890_v38  ;;  %v1887_v1 = vpop.xlane.xlu0 %1886  ;;  %v2115_v15 = vadd.f32 %v5655_v6, %v2079_v45  ;;  %v2045_v4 = vmul.f32 %v4201_v58, %v5483_v32 }
 0x508   :  { %4212 = vrsqrt.f32 %v1987_v27  ;;  %v1957_v63 = vmul.f32 0.03125, %v1887_v1  ;;  %v2082_v47 = vmul.f32 %v5651_v37, %v2046_v28 }
 0x509   :  { %v4203_v48 = vpop.eup %4202  ;;  %v1990_v50 = vadd.f32 1e-05, %v1958_v62  ;;  %3999 = vmatprep.mubr.msk.f32.mxu1 %vm50_vm0, %v2115_v15  ;;  %v2081_v29 = vmul.f32 %v5651_v37, %v2045_v4 }
 0x50a   :  { %v4205_v33 = vpop.eup %4204  ;;  %v1989_v49 = vadd.f32 1e-05, %v1957_v63  ;;  %v1896_v55 = vpop.xlane.xlu1 %1895  ;;  %4000 = vmatmul.mubr.msk.f32.gmra.mrb[66].mxu1 %vm50_vm0, %v2116_v12  ;;  %v2048_v43 = vmul.f32 %v4203_v48, %v5491_v35  ;;  %v2118_v13 = vadd.f32 %v5655_v6, %v2082_v47 }
 0x50b   :  { %4214 = vrsqrt.f32 %v1990_v50  ;;  %v1960_v32 = vmul.f32 0.03125, %v1896_v55  ;;  %v1893_v44 = vpop.xlane.xlu0 %1892  ;;  %v2117_v53 = vadd.f32 %v5655_v6, %v2081_v29  ;;  %v2047_v30 = vmul.f32 %v4205_v33, %v5495_v17 }
 0x50c   :  { %4216 = vrsqrt.f32 %v1989_v49  ;;  %v1959_v10 = vmul.f32 0.03125, %v1893_v44  ;;  %v2084_v36 = vmul.f32 %v5651_v37, %v2048_v43 }
 0x50d   :  { %v4207_v57 = vpop.eup %4206  ;;  %v1992_v61 = vadd.f32 1e-05, %v1960_v32  ;;  %4002 = vmatprep.mubr.msk.f32.mxu1 %vm50_vm0, %v2117_v53  ;;  %v2083_v60 = vmul.f32 %v5651_v37, %v2047_v30 }
 0x50e   :  { %v4209_v35 = vpop.eup %4208  ;;  %v1991_v16 = vadd.f32 1e-05, %v1959_v10  ;;  %v1902_v59 = vpop.xlane.xlu1 %1901  ;;  %4003 = vmatmul.mubr.msk.f32.gmra.mrb[68].mxu1 %vm50_vm0, %v2118_v13  ;;  %v2050_v5 = vmul.f32 %v4207_v57, %v5503_v9  ;;  %v2120_v27 = vadd.f32 %v5655_v6, %v2084_v36 }
 0x50f   :  { %4218 = vrsqrt.f32 %v1992_v61  ;;  %v1962_v17 = vmul.f32 0.03125, %v1902_v59  ;;  %v1899_v24 = vpop.xlane.xlu0 %1898  ;;  %v2119_v14 = vadd.f32 %v5655_v6, %v2083_v60  ;;  %v2049_v45 = vmul.f32 %v4209_v35, %v5507_v20 }
 0x510   :  { %4220 = vrsqrt.f32 %v1991_v16  ;;  %v1961_v58 = vmul.f32 0.03125, %v1899_v24  ;;  %v2086_v38 = vmul.f32 %v5651_v37, %v2050_v5 }
 0x511   :  { %v4211_v28 = vpop.eup %4210  ;;  %v1994_v62 = vadd.f32 1e-05, %v1962_v17  ;;  %4005 = vmatprep.mubr.msk.f32.mxu1 %vm50_vm0, %v2119_v14  ;;  %v2085_v1 = vmul.f32 %v5651_v37, %v2049_v45 }
 0x512   :  { %v4213_v9 = vpop.eup %4212  ;;  %v1993_v15 = vadd.f32 1e-05, %v1961_v58  ;;  %v1908_v4 = vpop.xlane.xlu1 %1907  ;;  %4006 = vmatmul.mubr.msk.f32.gmra.mrb[70].mxu1 %vm50_vm0, %v2120_v27  ;;  %v2052_v63 = vmul.f32 %v4211_v28, %v5515_v8  ;;  %v2122_v29 = vadd.f32 %v5655_v6, %v2086_v38 }
 0x513   :  { %4222 = vrsqrt.f32 %v1994_v62  ;;  %v1964_v20 = vmul.f32 0.03125, %v1908_v4  ;;  %v1905_v12 = vpop.xlane.xlu0 %1904  ;;  %v2121_v47 = vadd.f32 %v5655_v6, %v2085_v1  ;;  %v2051_v48 = vmul.f32 %v4213_v9, %v5519_v25 }
 0x514   :  { %4224 = vrsqrt.f32 %v1993_v15  ;;  %v1963_v50 = vmul.f32 0.03125, %v1905_v12  ;;  %v2088_v33 = vmul.f32 %v5651_v37, %v2052_v63 }
 0x515   :  { %v4215_v49 = vpop.eup %4214  ;;  %v1996_v55 = vadd.f32 1e-05, %v1964_v20  ;;  %4008 = vmatprep.mubr.msk.f32.mxu1 %vm50_vm0, %v2121_v47  ;;  %v2087_v43 = vmul.f32 %v5651_v37, %v2051_v48 }
 0x516   :  { %v4217_v8 = vpop.eup %4216  ;;  %v1995_v32 = vadd.f32 1e-05, %v1963_v50  ;;  %v1914_v44 = vpop.xlane.xlu1 %1913  ;;  %4009 = vmatmul.mubr.msk.f32.gmra.mrb[72].mxu1 %vm50_vm0, %v2122_v29  ;;  %v2054_v53 = vmul.f32 %v4215_v49, %v5527_v26  ;;  %v2124_v57 = vadd.f32 %v5655_v6, %v2088_v33 }
 0x517   :  { %4226 = vrsqrt.f32 %v1996_v55  ;;  %v1966_v25 = vmul.f32 0.03125, %v1914_v44  ;;  %v1911_v30 = vpop.xlane.xlu0 %1910  ;;  %v2123_v10 = vadd.f32 %v5655_v6, %v2087_v43  ;;  %v2053_v13 = vmul.f32 %v4217_v8, %v5531_v7 }
 0x518   :  { %4228 = vrsqrt.f32 %v1995_v32  ;;  %v1965_v36 = vmul.f32 0.03125, %v1911_v30  ;;  %v2090_v61 = vmul.f32 %v5651_v37, %v2054_v53 }
 0x519   :  { %v4219_v60 = vpop.eup %4218  ;;  %v1998_v35 = vadd.f32 1e-05, %v1966_v25  ;;  %4011 = vmatprep.mubr.msk.f32.mxu1 %vm50_vm0, %v2123_v10  ;;  %v2089_v16 = vmul.f32 %v5651_v37, %v2053_v13 }
 0x51a   :  { %v4221_v26 = vpop.eup %4220  ;;  %v1997_v59 = vadd.f32 1e-05, %v1965_v36  ;;  %v1920_v5 = vpop.xlane.xlu1 %1919  ;;  %4012 = vmatmul.mubr.msk.f32.gmra.mrb[74].mxu1 %vm50_vm0, %v2124_v57  ;;  %v2056_v17 = vmul.f32 %v4219_v60, %v5539_v19  ;;  %v2126_v27 = vadd.f32 %v5655_v6, %v2090_v61 }
 0x51b   :  { %4230 = vrsqrt.f32 %v1998_v35  ;;  %v1968_v7 = vmul.f32 0.03125, %v1920_v5  ;;  %v1917_v24 = vpop.xlane.xlu0 %1916  ;;  %v2125_v14 = vadd.f32 %v5655_v6, %v2089_v16  ;;  %v2055_v45 = vmul.f32 %v4221_v26, %v5543_v34 }
 0x51c   :  { %4232 = vrsqrt.f32 %v1997_v59  ;;  %v1967_v58 = vmul.f32 0.03125, %v1917_v24  ;;  %v2092_v38 = vmul.f32 %v5651_v37, %v2056_v17 }
 0x51d   :  { %v4223_v28 = vpop.eup %4222  ;;  %v2000_v62 = vadd.f32 1e-05, %v1968_v7  ;;  %4014 = vmatprep.mubr.msk.f32.mxu1 %vm50_vm0, %v2125_v14  ;;  %v2091_v1 = vmul.f32 %v5651_v37, %v2055_v45 }
 0x51e   :  { %v4225_v19 = vpop.eup %4224  ;;  %v1999_v9 = vadd.f32 1e-05, %v1967_v58  ;;  %v1926_v15 = vpop.xlane.xlu1 %1925  ;;  %4015 = vmatmul.mubr.msk.f32.gmra.mrb[76].mxu1 %vm50_vm0, %v2126_v27  ;;  %v2058_v4 = vmul.f32 %v4223_v28, %v5551_v2  ;;  %v2128_v48 = vadd.f32 %v5655_v6, %v2092_v38 }
 0x51f   :  { %4234 = vrsqrt.f32 %v2000_v62  ;;  %v1970_v34 = vmul.f32 0.03125, %v1926_v15  ;;  %v1923_v63 = vpop.xlane.xlu0 %1922  ;;  %v2127_v20 = vadd.f32 %v5655_v6, %v2091_v1  ;;  %v2057_v12 = vmul.f32 %v4225_v19, %v5555_v41 }
 0x520   :  { %4236 = vrsqrt.f32 %v1999_v9  ;;  %v1969_v47 = vmul.f32 0.03125, %v1923_v63  ;;  %v2094_v50 = vmul.f32 %v5651_v37, %v2058_v4 }
 0x521   :  { %v4227_v29 = vpop.eup %4226  ;;  %v2002_v33 = vadd.f32 1e-05, %v1970_v34  ;;  %4017 = vmatprep.mubr.msk.f32.mxu1 %vm50_vm0, %v2127_v20  ;;  %v2093_v49 = vmul.f32 %v5651_v37, %v2057_v12 }
 0x522   :  { %v4229_v2 = vpop.eup %4228  ;;  %v2001_v55 = vadd.f32 1e-05, %v1969_v47  ;;  %v1932_v43 = vpop.xlane.xlu1 %1931  ;;  %4018 = vmatmul.mubr.msk.f32.gmra.mrb[78].mxu1 %vm50_vm0, %v2128_v48  ;;  %v2060_v8 = vmul.f32 %v4227_v29, %v5563_v40  ;;  %v2130_v30 = vadd.f32 %v5655_v6, %v2094_v50 }
 0x523   :  { %4238 = vrsqrt.f32 %v2002_v33  ;;  %v1972_v41 = vmul.f32 0.03125, %v1932_v43  ;;  %v1929_v32 = vpop.xlane.xlu0 %1928  ;;  %v2129_v44 = vadd.f32 %v5655_v6, %v2093_v49  ;;  %v2059_v53 = vmul.f32 %v4229_v2, %v5567_v23 }
 0x524   :  { %4240 = vrsqrt.f32 %v2001_v55  ;;  %v1971_v25 = vmul.f32 0.03125, %v1929_v32  ;;  %v2096_v10 = vmul.f32 %v5651_v37, %v2060_v8 }
 0x525   :  { %v4231_v13 = vpop.eup %4230  ;;  %v2004_v36 = vadd.f32 1e-05, %v1972_v41  ;;  %4020 = vmatprep.mubr.msk.f32.mxu1 %vm50_vm0, %v2129_v44  ;;  %v2095_v57 = vmul.f32 %v5651_v37, %v2059_v53 }
 0x526   :  { %v4233_v40 = vpop.eup %4232  ;;  %v2003_v61 = vadd.f32 1e-05, %v1971_v25  ;;  %v1938_v60 = vpop.xlane.xlu1 %1937  ;;  %4021 = vmatmul.mubr.msk.f32.gmra.mrb[80].mxu1 %vm50_vm0, %v2130_v30  ;;  %v2062_v35 = vmul.f32 %v4231_v13, %v5575_v22  ;;  %v2132_v17 = vadd.f32 %v5655_v6, %v2096_v10 }
 0x527   :  { %4242 = vrsqrt.f32 %v2004_v36  ;;  %v1974_v23 = vmul.f32 0.03125, %v1938_v60  ;;  %v1935_v16 = vpop.xlane.xlu0 %1934  ;;  %v2131_v26 = vadd.f32 %v5655_v6, %v2095_v57  ;;  %v2061_v59 = vmul.f32 %v4233_v40, %v5579_v0 }
 0x528   :  { %4244 = vrsqrt.f32 %v2003_v61  ;;  %v1973_v5 = vmul.f32 0.03125, %v1935_v16  ;;  %v2098_v7 = vmul.f32 %v5651_v37, %v2062_v35 }
 0x529   :  { %v4235_v24 = vpop.eup %4234  ;;  %v2006_v14 = vadd.f32 1e-05, %v1974_v23  ;;  %4023 = vmatprep.mubr.msk.f32.mxu1 %vm50_vm0, %v2131_v26  ;;  %v2097_v45 = vmul.f32 %v5651_v37, %v2061_v59  ;;  %v5787_v23 = vand.u32 127, %v468_v39  ;;  %v4415_v39 = vld [vmem:[%s6587_s2] sm:$0xff] }
 0x52a   :  { %v4237_v22 = vpop.eup %4236  ;;  %v2005_v58 = vadd.f32 1e-05, %v1973_v5  ;;  %v1944_v27 = vpop.xlane.xlu1 %1943  ;;  %4024 = vmatmul.mubr.msk.f32.gmra.mrb[82].mxu1 %vm50_vm0, %v2132_v17  ;;  %v2064_v38 = vmul.f32 %v4235_v24, %v5587_v21  ;;  %v2134_v9 = vadd.f32 %v5655_v6, %v2098_v7  ;;  %v2151_v5 = vsub.s32 7, %v4881_v51 }
 0x52b   :  { %4246 = vrsqrt.f32 %v2006_v14  ;;  %v1976_v0 = vmul.f32 0.03125, %v1944_v27  ;;  %v1941_v28 = vpop.xlane.xlu0 %1940  ;;  %v2133_v62 = vadd.f32 %v5655_v6, %v2097_v45  ;;  %v2063_v1 = vmul.f32 %v4237_v22, %v5591_v46 }
 0x52c   :  { %4248 = vrsqrt.f32 %v2005_v58  ;;  %v1975_v19 = vmul.f32 0.03125, %v1941_v28  ;;  %v2100_v15 = vmul.f32 %v5651_v37, %v2064_v38  ;;  %v5791_v26 = vadd.s32 128, %v5787_v23 }
 0x52d   :  { %v4239_v4 = vpop.eup %4238  ;;  %v2008_v34 = vadd.f32 1e-05, %v1976_v0  ;;  %4026 = vmatprep.mubr.msk.f32.mxu1 %vm50_vm0, %v2133_v62  ;;  %v2099_v63 = vmul.f32 %v5651_v37, %v2063_v1  ;;  %v5802_v17 = vrot.slane %v4415_v39, %v2151_v5 }
 0x52e   :  { %v4241_v21 = vpop.eup %4240  ;;  %v2007_v20 = vadd.f32 1e-05, %v1975_v19  ;;  %4027 = vmatmul.mubr.msk.f32.gmra.mrb[84].mxu1 %vm50_vm0, %v2134_v9  ;;  %v2066_v12 = vmul.f32 %v4239_v4, %v5599_v52  ;;  %v2136_v48 = vadd.f32 %v5655_v6, %v2100_v15 }
 0x52f   :  { %4250 = vrsqrt.f32 %v2008_v34  ;;  %v2135_v46 = vadd.f32 %v5655_v6, %v2099_v63  ;;  %v2065_v47 = vmul.f32 %v4241_v21, %v5603_v3 }
 0x530   :  { %4252 = vrsqrt.f32 %v2007_v20  ;;  %v2102_v50 = vmul.f32 %v5651_v37, %v2066_v12 }
 0x531   :  { %v4243_v29 = vpop.eup %4242  ;;  %4029 = vmatprep.mubr.msk.f32.mxu1 %vm50_vm0, %v2135_v46  ;;  %v2101_v33 = vmul.f32 %v5651_v37, %v2065_v47 }
 0x532   :  { %v4245_v49 = vpop.eup %4244  ;;  %4030 = vmatmul.mubr.msk.f32.gmra.mrb[86].mxu1 %vm50_vm0, %v2136_v48  ;;  %v2068_v52 = vmul.f32 %v4243_v29, %v5611_v56  ;;  %v2138_v3 = vadd.f32 %v5655_v6, %v2102_v50 }
 0x533   :  { %v2137_v2 = vadd.f32 %v5655_v6, %v2101_v33  ;;  %v2067_v55 = vmul.f32 %v4245_v49, %v5615_v18 }
 0x534   :  { %v2104_v43 = vmul.f32 %v5651_v37, %v2068_v52 }
 0x535   :  { %v4247_v8 = vpop.eup %4246  ;;  %4032 = vmatprep.mubr.msk.f32.mxu1 %vm50_vm0, %v2137_v2  ;;  %v2103_v41 = vmul.f32 %v5651_v37, %v2067_v55 }
 0x536   :  { %v4249_v32 = vpop.eup %4248  ;;  %4033 = vmatmul.mubr.msk.f32.gmra.mrb[88].mxu1 %vm50_vm0, %v2138_v3  ;;  %v2070_v44 = vmul.f32 %v4247_v8, %v5623_v42  ;;  %v2140_v18 = vadd.f32 %v5655_v6, %v2104_v43 }
 0x537   :  { %v2139_v56 = vadd.f32 %v5655_v6, %v2103_v41  ;;  %v2069_v53 = vmul.f32 %v4249_v32, %v5627_v11 }
 0x538   :  { %v2106_v25 = vmul.f32 %v5651_v37, %v2070_v44 }
 0x539   :  { %v4251_v30 = vpop.eup %4250  ;;  %4035 = vmatprep.mubr.msk.f32.mxu1 %vm50_vm0, %v2139_v56  ;;  %v2105_v10 = vmul.f32 %v5651_v37, %v2069_v53 }
 0x53a   :  { %v4253_v13 = vpop.eup %4252  ;;  %4036 = vmatmul.mubr.msk.f32.gmra.mrb[90].mxu1 %vm50_vm0, %v2140_v18  ;;  %v2072_v36 = vmul.f32 %v4251_v30, %v5635_v54  ;;  %v2142_v11 = vadd.f32 %v5655_v6, %v2106_v25  ;;  %v4416_v54 = vmov 0.0|0.0  }
 0x53b   :  { %v2141_v42 = vadd.f32 %v5655_v6, %v2105_v10  ;;  %v2071_v57 = vmul.f32 %v4253_v13, %v5639_v31  ;;  %4076 = vmatprep.subr.bf16.mxu0 %v4416_v54  ;;  %v2542_v31 = vand.u32 15, %v4881_v51 }
 0x53c   :  { %v2108_v40 = vmul.f32 %v5651_v37, %v2072_v36 }
 0x53d   :  { %4038 = vmatprep.mubr.msk.f32.mxu1 %vm50_vm0, %v2141_v42  ;;  %v2107_v61 = vmul.f32 %v5651_v37, %v2071_v57  ;;  %v2510_v37 = vshra.s32 %v4881_v51, 4  ;;  %v2574_v16 = vmul.u32 16, %v2542_v31 }
 0x53e   :  { %4039 = vmatmul.mubr.msk.f32.gmra.mrb[92].mxu1 %vm50_vm0, %v2142_v11  ;;  %v2144_v35 = vadd.f32 %v5655_v6, %v2108_v40 }
 0x53f   :  { %v2143_v60 = vadd.f32 %v5655_v6, %v2107_v61  ;;  %v5793_v59 = vadd.s32 %v2574_v16, %v2510_v37  ;;  %v4417_v6 = vmov 1.0  }
 0x541   :  { %4041 = vmatprep.mubr.msk.f32.mxu1 %vm50_vm0, %v2143_v60  ;;  %vm2639_vm1 = vcmp.eq.s32.totalorder %v5791_v26, %v5793_v59  ;;  %vm2638_vm2 = vcmp.eq.s32.totalorder %v5787_v23, %v5793_v59 }
 0x542   :  { %4042 = vmatmul.mubr.msk.f32.gmra.mrb[94].mxu1 %vm50_vm0, %v2144_v35  ;;  %3612 = vmatprep.mubr.msk.f32.mxu0 %vm2639_vm1, %v4417_v6 }
 0x5d9   :  { %v3998_v7 = vpop.f32.mrb[64].mxu1 }
 0x5da   :  { %v5805_v24 = vadd.f32 %v3998_v7, %v5802_v17  ;;  %v2315_v14 = vpop.f32.mrb[65].mxu1 }
 0x5db   :  { %v5808_v45 = vadd.f32 %v2315_v14, %v5802_v17 }
 0x5dd   :  { %v4077_v22 = vpack.c.bf16 %v5805_v24, %v5808_v45  ;;  %v4001_v58 = vpop.f32.mrb[66].mxu1 }
 0x5de   :  { %v5813_v27 = vadd.f32 %v4001_v58, %v5802_v17  ;;  %v2325_v38 = vpop.f32.mrb[67].mxu1 }
 0x5df   :  { %v5816_v0 = vadd.f32 %v2325_v38, %v5802_v17  ;;  %4078 = vmatpush1.bf16.msra.mxu0 %v4077_v22 }
 0x5e0   :  { %4079 = vmatprep.subr.bf16.mxu0 %v4416_v54 }
 0x5e1   :  { %v4080_v28 = vpack.c.bf16 %v5813_v27, %v5816_v0  ;;  %v4004_v62 = vpop.f32.mrb[68].mxu1 }
 0x5e2   :  { %v5822_v1 = vadd.f32 %v4004_v62, %v5802_v17  ;;  %v2335_v19 = vpop.f32.mrb[69].mxu1 }
 0x5e3   :  { %v5825_v9 = vadd.f32 %v2335_v19, %v5802_v17  ;;  %4081 = vmatpush1.bf16.msra.mxu0 %v4080_v28  ;;  %v2476_v19 = vadd.s32 8, %v4881_v51 }
 0x5e4   :  { %4082 = vmatprep.subr.bf16.mxu0 %v4416_v54 }
 0x5e5   :  { %v4083_v15 = vpack.c.bf16 %v5822_v1, %v5825_v9  ;;  %v4007_v4 = vpop.f32.mrb[70].mxu1 }
 0x5e6   :  { %v5831_v34 = vadd.f32 %v4007_v4, %v5802_v17  ;;  %v2345_v63 = vpop.f32.mrb[71].mxu1 }
 0x5e7   :  { %v5834_v21 = vadd.f32 %v2345_v63, %v5802_v17  ;;  %4084 = vmatpush1.bf16.msra.mxu0 %v4083_v15 }
 0x5e8   :  { %4085 = vmatprep.subr.bf16.mxu0 %v4416_v54 }
 0x5e9   :  { %v4086_v20 = vpack.c.bf16 %v5831_v34, %v5834_v21  ;;  %v4010_v12 = vpop.f32.mrb[72].mxu1 }
 0x5ea   :  { %v5840_v46 = vadd.f32 %v4010_v12, %v5802_v17  ;;  %v2355_v47 = vpop.f32.mrb[73].mxu1 }
 0x5eb   :  { %v5843_v48 = vadd.f32 %v2355_v47, %v5802_v17  ;;  %4087 = vmatpush1.bf16.msra.mxu0 %v4086_v20  ;;  %v2477_v47 = vadd.s32 16, %v4881_v51 }
 0x5ec   :  { %4088 = vmatprep.subr.bf16.mxu0 %v4416_v54 }
 0x5ed   :  { %v4089_v50 = vpack.c.bf16 %v5840_v46, %v5843_v48  ;;  %v4013_v29 = vpop.f32.mrb[74].mxu1 }
 0x5ee   :  { %v5849_v33 = vadd.f32 %v4013_v29, %v5802_v17  ;;  %v2365_v49 = vpop.f32.mrb[75].mxu1 }
 0x5ef   :  { %v5852_v52 = vadd.f32 %v2365_v49, %v5802_v17  ;;  %4090 = vmatpush1.bf16.msra.mxu0 %v4089_v50  ;;  %v2543_v50 = vand.u32 15, %v2476_v19 }
 0x5f0   :  { %4091 = vmatprep.subr.bf16.mxu0 %v4416_v54 }
 0x5f1   :  { %v4092_v2 = vpack.c.bf16 %v5849_v33, %v5852_v52  ;;  %v4016_v55 = vpop.f32.mrb[76].mxu1 }
 0x5f2   :  { %v5858_v3 = vadd.f32 %v4016_v55, %v5802_v17  ;;  %v2375_v43 = vpop.f32.mrb[77].mxu1 }
 0x5f3   :  { %v5861_v8 = vadd.f32 %v2375_v43, %v5802_v17  ;;  %4093 = vmatpush1.bf16.msra.mxu0 %v4092_v2 }
 0x5f4   :  { %4094 = vmatprep.subr.bf16.mxu0 %v4416_v54 }
 0x5f5   :  { %v4095_v41 = vpack.c.bf16 %v5858_v3, %v5861_v8  ;;  %v4019_v32 = vpop.f32.mrb[78].mxu1 }
 0x5f6   :  { %v5867_v44 = vadd.f32 %v4019_v32, %v5802_v17  ;;  %v2385_v56 = vpop.f32.mrb[79].mxu1  ;;  %v2478_v32 = vadd.s32 24, %v4881_v51 }
 0x5f7   :  { %v5870_v53 = vadd.f32 %v2385_v56, %v5802_v17  ;;  %4096 = vmatpush1.bf16.msra.mxu0 %v4095_v41  ;;  %v2544_v41 = vand.u32 15, %v2477_v47  ;;  %v2511_v56 = vshra.s32 %v2476_v19, 4  ;;  %v2480_v19 = vadd.s32 40, %v4881_v51 }
 0x5f8   :  { %4097 = vmatprep.subr.bf16.mxu0 %v4416_v54 }
 0x5f9   :  { %v4098_v18 = vpack.c.bf16 %v5867_v44, %v5870_v53  ;;  %v4022_v25 = vpop.f32.mrb[80].mxu1  ;;  %v2547_v59 = vand.u32 15, %v2480_v19 }
 0x5fa   :  { %v5876_v30 = vadd.f32 %v4022_v25, %v5802_v17  ;;  %v2395_v10 = vpop.f32.mrb[81].mxu1 }
 0x5fb   :  { %v5879_v13 = vadd.f32 %v2395_v10, %v5802_v17  ;;  %4099 = vmatpush1.bf16.msra.mxu0 %v4098_v18  ;;  %v2575_v18 = vmul.u32 16, %v2543_v50 }
 0x5fc   :  { %4100 = vmatprep.subr.bf16.mxu0 %v4416_v54 }
 0x5fd   :  { %v4101_v36 = vpack.c.bf16 %v5876_v30, %v5879_v13  ;;  %v4025_v42 = vpop.f32.mrb[82].mxu1 }
 0x5fe   :  { %v5885_v57 = vadd.f32 %v4025_v42, %v5802_v17  ;;  %v2405_v11 = vpop.f32.mrb[83].mxu1 }
 0x5ff   :  { %v5888_v40 = vadd.f32 %v2405_v11, %v5802_v17  ;;  %4102 = vmatpush1.bf16.msra.mxu0 %v4101_v36 }
 0x600   :  { %4103 = vmatprep.subr.bf16.mxu0 %v4416_v54 }
 0x601   :  { %v4104_v61 = vpack.c.bf16 %v5885_v57, %v5888_v40  ;;  %v4028_v60 = vpop.f32.mrb[84].mxu1 }
 0x602   :  { %v5894_v35 = vadd.f32 %v4028_v60, %v5802_v17  ;;  %v2415_v31 = vpop.f32.mrb[85].mxu1  ;;  %v2576_v60 = vmul.u32 16, %v2544_v41 }
 0x603   :  { %v5897_v37 = vadd.f32 %v2415_v31, %v5802_v17  ;;  %4105 = vmatpush1.bf16.msra.mxu0 %v4104_v61  ;;  %v2512_v61 = vshra.s32 %v2477_v47, 4  ;;  %v2545_v31 = vand.u32 15, %v2478_v32  ;;  %v2482_v47 = vadd.s32 56, %v4881_v51 }
 0x604   :  { %4106 = vmatprep.subr.bf16.mxu0 %v4416_v54 }
 0x605   :  { %v4107_v16 = vpack.c.bf16 %v5894_v35, %v5897_v37  ;;  %v4031_v5 = vpop.f32.mrb[86].mxu1  ;;  %v2549_v41 = vand.u32 15, %v2482_v47 }
 0x606   :  { %v5903_v39 = vadd.f32 %v4031_v5, %v5802_v17  ;;  %v2425_v7 = vpop.f32.mrb[87].mxu1  ;;  %v2479_v5 = vadd.s32 32, %v4881_v51 }
 0x607   :  { %v5906_v14 = vadd.f32 %v2425_v7, %v5802_v17  ;;  %4108 = vmatpush1.bf16.msra.mxu0 %v4107_v16  ;;  %v2607_v16 = vadd.s32 %v2575_v18, %v2511_v56 }
 0x608   :  { %4109 = vmatprep.subr.bf16.mxu0 %v4416_v54 }
 0x609   :  { %v4110_v22 = vpack.c.bf16 %v5903_v39, %v5906_v14  ;;  %v4034_v58 = vpop.f32.mrb[88].mxu1  ;;  %vm2641_vm3 = vcmp.eq.s32.totalorder %v5791_v26, %v2607_v16  ;;  %vm2640_vm4 = vcmp.eq.s32.totalorder %v5787_v23, %v2607_v16 }
 0x60a   :  { %v5912_v38 = vadd.f32 %v4034_v58, %v5802_v17  ;;  %v2435_v28 = vpop.f32.mrb[89].mxu1  ;;  %v2513_v58 = vshra.s32 %v2478_v32, 4  ;;  %v2483_v32 = vadd.s32 64, %v4881_v51 }
 0x60b   :  { %v5915_v62 = vadd.f32 %v2435_v28, %v5802_v17  ;;  %4111 = vmatpush1.bf16.msra.mxu0 %v4110_v22  ;;  %v2608_v22 = vadd.s32 %v2576_v60, %v2512_v61  ;;  %v2546_v28 = vand.u32 15, %v2479_v5 }
 0x60c   :  { %4112 = vmatprep.subr.bf16.mxu0 %v4416_v54  ;;  %v2550_v61 = vand.u32 15, %v2483_v32 }
 0x60d   :  { %v4113_v15 = vpack.c.bf16 %v5912_v38, %v5915_v62  ;;  %v4037_v4 = vpop.f32.mrb[90].mxu1  ;;  %vm2643_vm5 = vcmp.eq.s32.totalorder %v5791_v26, %v2608_v22  ;;  %vm2642_vm6 = vcmp.eq.s32.totalorder %v5787_v23, %v2608_v22 }
 0x60e   :  { %v5922_v63 = vadd.f32 %v4037_v4, %v5802_v17  ;;  %v2445_v20 = vpop.f32.mrb[91].mxu1  ;;  %v2578_v4 = vmul.u32 16, %v2546_v28 }
 0x60f   :  { %v5925_v12 = vadd.f32 %v2445_v20, %v5802_v17  ;;  %4114 = vmatpush1.bf16.msra.mxu0 %v4113_v15  ;;  %v2514_v15 = vshra.s32 %v2479_v5, 4  ;;  %v2481_v20 = vadd.s32 48, %v4881_v51  ;;  %v2518_v5 = vshra.s32 %v2483_v32, 4 }
 0x610   :  { %4115 = vmatprep.subr.bf16.mxu0 %v4416_v54 }
 0x611   :  { %v4116_v29 = vpack.c.bf16 %v5922_v63, %v5925_v12  ;;  %v4040_v49 = vpop.f32.mrb[92].mxu1  ;;  %v2610_v50 = vadd.s32 %v2578_v4, %v2514_v15  ;;  %v2516_v18 = vshra.s32 %v2481_v20, 4  ;;  %v2486_v15 = vadd.s32 88, %v4881_v51 }
 0x612   :  { %v5932_v2 = vadd.f32 %v4040_v49, %v5802_v17  ;;  %v2455_v55 = vpop.f32.mrb[93].mxu1  ;;  %v2579_v49 = vmul.u32 16, %v2547_v59  ;;  %v2487_v4 = vadd.s32 96, %v4881_v51 }
 0x613   :  { %v5935_v43 = vadd.f32 %v2455_v55, %v5802_v17  ;;  %4117 = vmatpush1.bf16.msra.mxu0 %v4116_v29  ;;  %v2515_v29 = vshra.s32 %v2480_v19, 4  ;;  %v2548_v55 = vand.u32 15, %v2481_v20  ;;  %vm2647_vm9 = vcmp.eq.s32.totalorder %v5791_v26, %v2610_v50 }
 0x614   :  { %4118 = vmatprep.subr.bf16.mxu0 %v4416_v54  ;;  %vm2646_vm10 = vcmp.eq.s32.totalorder %v5787_v23, %v2610_v50  ;;  %v2553_v50 = vand.u32 15, %v2486_v15 }
 0x615   :  { %v4119_v25 = vpack.c.bf16 %v5932_v2, %v5935_v43  ;;  %v4043_v10 = vpop.f32.mrb[94].mxu1  ;;  %v2611_v56 = vadd.s32 %v2579_v49, %v2515_v29  ;;  %v2554_v29 = vand.u32 15, %v2487_v4  ;;  %v2488_v49 = vadd.s32 104, %v4881_v51 }
 0x616   :  { %v5942_v36 = vadd.f32 %v4043_v10, %v5802_v17  ;;  %v2465_v42 = vpop.f32.mrb[95].mxu1  ;;  %v2517_v10 = vshra.s32 %v2482_v47, 4  ;;  %v2585_v32 = vmul.u32 16, %v2553_v50 }
 0x617   :  { %v5945_v11 = vadd.f32 %v2465_v42, %v5802_v17  ;;  %4120 = vmatpush1.bf16.msra.mxu0 %v4119_v25  ;;  %v2577_v17 = vmul.u32 16, %v2545_v31  ;;  %v2580_v25 = vmul.u32 16, %v2548_v55  ;;  %vm2649_vm11 = vcmp.eq.s32.totalorder %v5791_v26, %v2611_v56 }
 0x618   :  { %4121 = vmatprep.subr.bf16.mxu0 %v4416_v54  ;;  %v2581_v42 = vmul.u32 16, %v2549_v41  ;;  %v2484_v31 = vadd.s32 72, %v4881_v51  ;;  %vm2648_vm12 = vcmp.eq.s32.totalorder %v5787_v23, %v2611_v56  ;;  %v2521_v41 = vshra.s32 %v2486_v15, 4 }
 0x619   :  { %v4122_v7 = vpack.c.bf16 %v5942_v36, %v5945_v11  ;;  %v2609_v54 = vadd.s32 %v2577_v17, %v2513_v58  ;;  %v2612_v60 = vadd.s32 %v2580_v25, %v2516_v18  ;;  %v2485_v58 = vadd.s32 80, %v4881_v51 }
 0x61a   :  { %v2613_v16 = vadd.s32 %v2581_v42, %v2517_v10  ;;  %v2551_v22 = vand.u32 15, %v2484_v31  ;;  %v2519_v28 = vshra.s32 %v2484_v31, 4  ;;  %v2522_v56 = vshra.s32 %v2487_v4, 4 }
 0x61b   :  { %4123 = vmatpush1.bf16.msra.mxu0 %v4122_v7  ;;  %vm2645_vm7 = vcmp.eq.s32.totalorder %v5791_v26, %v2609_v54  ;;  %vm2644_vm8 = vcmp.eq.s32.totalorder %v5787_v23, %v2609_v54  ;;  %v2582_v7 = vmul.u32 16, %v2550_v61  ;;  %vm2651_vm13 = vcmp.eq.s32.totalorder %v5791_v26, %v2612_v60 }
 0x61c   :  { %vm2650_vm14 = vcmp.eq.s32.totalorder %v5787_v23, %v2612_v60  ;;  %vm2653_vm15 = vcmp.eq.s32.totalorder %v5791_v26, %v2613_v16  ;;  %v2583_v19 = vmul.u32 16, %v2551_v22  ;;  %v2552_v54 = vand.u32 15, %v2485_v58 }
 0x61d   :  { %v2614_v17 = vadd.s32 %v2582_v7, %v2518_v5  ;;  %vm2652_vm0 = vcmp.eq.s32.totalorder %v5787_v23, %v2613_v16  ;;  %v2520_v20 = vshra.s32 %v2485_v58, 4  ;;  %v2586_v18 = vmul.u32 16, %v2554_v29 }
 0x61e   :  { %3613 = vmatmul.mubr.msk.f32.vlgmr.msra.gmra.mrb[32].mxu0 %vm2638_vm2, %v4417_v6  ;;  %v2615_v59 = vadd.s32 %v2583_v19, %v2519_v28  ;;  %v2584_v47 = vmul.u32 16, %v2552_v54  ;;  %v2555_v25 = vand.u32 15, %v2488_v49  ;;  %v2617_v10 = vadd.s32 %v2585_v32, %v2521_v41 }
 0x61f   :  { %3614 = vmatprep.mubr.msk.f32.mxu0 %vm2641_vm3, %v4417_v6  ;;  %vm2655_vm1 = vcmp.eq.s32.totalorder %v5791_v26, %v2614_v17  ;;  %vm2654_vm2 = vcmp.eq.s32.totalorder %v5787_v23, %v2614_v17  ;;  %v2489_v42 = vadd.s32 112, %v4881_v51  ;;  %v2618_v61 = vadd.s32 %v2586_v18, %v2522_v56 }
 0x620   :  { %vm2657_vm3 = vcmp.eq.s32.totalorder %v5791_v26, %v2615_v59  ;;  %v2616_v55 = vadd.s32 %v2584_v47, %v2520_v20  ;;  %v2523_v60 = vshra.s32 %v2488_v49, 4  ;;  %v2587_v31 = vmul.u32 16, %v2555_v25 }
 0x621   :  { %v2556_v16 = vand.u32 15, %v2489_v42  ;;  %v2490_v5 = vadd.s32 120, %v4881_v51  ;;  %v2524_v22 = vshra.s32 %v2489_v42, 4  ;;  %v2491_v28 = vadd.s32 128, %v4881_v51 }
 0x622   :  { %3615 = vmatmul.mubr.msk.f32.gmra.mrb[34].mxu0 %vm2640_vm4, %v4417_v6  ;;  %vm2656_vm4 = vcmp.eq.s32.totalorder %v5787_v23, %v2615_v59  ;;  %v2619_v7 = vadd.s32 %v2587_v31, %v2523_v60  ;;  %v2492_v19 = vadd.s32 136, %v4881_v51  ;;  %v2493_v47 = vadd.s32 144, %v4881_v51 }
 0x623   :  { %3616 = vmatprep.mubr.msk.f32.mxu0 %vm2643_vm5, %v4417_v6  ;;  %vm2659_vm5 = vcmp.eq.s32.totalorder %v5791_v26, %v2616_v55  ;;  %v2588_v58 = vmul.u32 16, %v2556_v16  ;;  %v2557_v17 = vand.u32 15, %v2490_v5  ;;  %v2525_v15 = vshra.s32 %v2490_v5, 4 }
 0x624   :  { %v2558_v59 = vand.u32 15, %v2491_v28  ;;  %v2559_v20 = vand.u32 15, %v2492_v19  ;;  %v2526_v29 = vshra.s32 %v2491_v28, 4  ;;  %v2560_v32 = vand.u32 15, %v2493_v47 }
 0x625   :  { %v2620_v54 = vadd.s32 %v2588_v58, %v2524_v22  ;;  %v2589_v4 = vmul.u32 16, %v2557_v17  ;;  %v2494_v18 = vadd.s32 152, %v4881_v51  ;;  %v2495_v60 = vadd.s32 160, %v4881_v51 }
 0x626   :  { %3617 = vmatmul.mubr.msk.f32.gmra.mrb[36].mxu0 %vm2642_vm6, %v4417_v6  ;;  %vm2658_vm6 = vcmp.eq.s32.totalorder %v5787_v23, %v2616_v55  ;;  %v2590_v49 = vmul.u32 16, %v2558_v59  ;;  %v2527_v55 = vshra.s32 %v2492_v19, 4  ;;  %v2591_v41 = vmul.u32 16, %v2559_v20 }
 0x627   :  { %3618 = vmatprep.mubr.msk.f32.mxu0 %vm2645_vm7, %v4417_v6  ;;  %vm2661_vm7 = vcmp.eq.s32.totalorder %v5791_v26, %v2617_v10  ;;  %v2621_v50 = vadd.s32 %v2589_v4, %v2525_v15  ;;  %v2592_v42 = vmul.u32 16, %v2560_v32  ;;  %v2529_v16 = vshra.s32 %v2494_v18, 4 }
 0x628   :  { %v2622_v56 = vadd.s32 %v2590_v49, %v2526_v29  ;;  %v2623_v25 = vadd.s32 %v2591_v41, %v2527_v55  ;;  %v2496_v22 = vadd.s32 168, %v4881_v51  ;;  %v2497_v58 = vadd.s32 176, %v4881_v51 }
 0x629   :  { %v2530_v28 = vshra.s32 %v2495_v60, 4  ;;  %v2498_v4 = vadd.s32 184, %v4881_v51  ;;  %v2499_v41 = vadd.s32 192, %v4881_v51 }
 0x62a   :  { %3619 = vmatmul.mubr.msk.f32.gmra.mrb[38].mxu0 %vm2644_vm8, %v4417_v6  ;;  %vm2660_vm8 = vcmp.eq.s32.totalorder %v5787_v23, %v2617_v10  ;;  %v2528_v10 = vshra.s32 %v2493_v47, 4  ;;  %v2564_v15 = vand.u32 15, %v2497_v58  ;;  %v2531_v20 = vshra.s32 %v2496_v22, 4 }
 0x62b   :  { %3620 = vmatprep.mubr.msk.f32.mxu0 %vm2647_vm9, %v4417_v6  ;;  %vm2663_vm9 = vcmp.eq.s32.totalorder %v5791_v26, %v2618_v61  ;;  %v2565_v49 = vand.u32 15, %v2498_v4 }
 0x62c   :  { %v2624_v31 = vadd.s32 %v2592_v42, %v2528_v10  ;;  %v2596_v29 = vmul.u32 16, %v2564_v15  ;;  %v2500_v10 = vadd.s32 200, %v4881_v51 }
 0x62e   :  { %3621 = vmatmul.mubr.msk.f32.gmra.mrb[40].mxu0 %vm2646_vm10, %v4417_v6  ;;  %vm2662_vm10 = vcmp.eq.s32.totalorder %v5787_v23, %v2618_v61  ;;  %v2561_v61 = vand.u32 15, %v2494_v18  ;;  %v2597_v18 = vmul.u32 16, %v2565_v49 }
 0x62f   :  { %3622 = vmatprep.mubr.msk.f32.mxu0 %vm2649_vm11, %v4417_v6  ;;  %vm2665_vm11 = vcmp.eq.s32.totalorder %v5791_v26, %v2619_v7 }
 0x630   :  { %v2593_v5 = vmul.u32 16, %v2561_v61  ;;  %v2534_v61 = vshra.s32 %v2499_v41, 4 }
 0x632   :  { %3623 = vmatmul.mubr.msk.f32.gmra.mrb[42].mxu0 %vm2648_vm12, %v4417_v6  ;;  %vm2664_vm12 = vcmp.eq.s32.totalorder %v5787_v23, %v2619_v7  ;;  %v2562_v7 = vand.u32 15, %v2495_v60  ;;  %v2625_v17 = vadd.s32 %v2593_v5, %v2529_v16  ;;  %v2501_v16 = vadd.s32 208, %v4881_v51 }
 0x633   :  { %3624 = vmatprep.mubr.msk.f32.mxu0 %vm2651_vm13, %v4417_v6  ;;  %vm2667_vm13 = vcmp.eq.s32.totalorder %v5791_v26, %v2620_v54  ;;  %v2502_v5 = vadd.s32 216, %v4881_v51 }
 0x634   :  { %v2594_v19 = vmul.u32 16, %v2562_v7  ;;  %v2536_v15 = vshra.s32 %v2501_v16, 4 }
 0x636   :  { %3625 = vmatmul.mubr.msk.f32.gmra.mrb[44].mxu0 %vm2650_vm14, %v4417_v6  ;;  %vm2666_vm14 = vcmp.eq.s32.totalorder %v5787_v23, %v2620_v54  ;;  %v2563_v54 = vand.u32 15, %v2496_v22  ;;  %v2626_v59 = vadd.s32 %v2594_v19, %v2530_v28  ;;  %v2535_v22 = vshra.s32 %v2500_v10, 4 }
 0x637   :  { %3626 = vmatprep.mubr.msk.f32.mxu0 %vm2653_vm15, %v4417_v6  ;;  %vm2669_vm15 = vcmp.eq.s32.totalorder %v5791_v26, %v2621_v50  ;;  %v2569_v28 = vand.u32 15, %v2502_v5  ;;  %v2503_v19 = vadd.s32 224, %v4881_v51 }
 0x638   :  { %v2595_v47 = vmul.u32 16, %v2563_v54 }
 0x63a   :  { %3627 = vmatmul.mubr.msk.f32.gmra.mrb[46].mxu0 %vm2652_vm0, %v4417_v6  ;;  %vm2668_vm0 = vcmp.eq.s32.totalorder %v5787_v23, %v2621_v50  ;;  %v2532_v50 = vshra.s32 %v2497_v58, 4  ;;  %v2627_v55 = vadd.s32 %v2595_v47, %v2531_v20  ;;  %v2601_v20 = vmul.u32 16, %v2569_v28 }
 0x63b   :  { %3628 = vmatprep.mubr.msk.f32.mxu0 %vm2655_vm1, %v4417_v6  ;;  %vm2671_vm1 = vcmp.eq.s32.totalorder %v5791_v26, %v2622_v56  ;;  %v2570_v47 = vand.u32 15, %v2503_v19 }
 0x63c   :  { %v2628_v32 = vadd.s32 %v2596_v29, %v2532_v50  ;;  %v2504_v29 = vadd.s32 232, %v4881_v51 }
 0x63e   :  { %3629 = vmatmul.mubr.msk.f32.gmra.mrb[48].mxu0 %vm2654_vm2, %v4417_v6  ;;  %vm2670_vm2 = vcmp.eq.s32.totalorder %v5787_v23, %v2622_v56  ;;  %v2533_v56 = vshra.s32 %v2498_v4, 4 }
 0x63f   :  { %3630 = vmatprep.mubr.msk.f32.mxu0 %vm2657_vm3, %v4417_v6  ;;  %vm2673_vm3 = vcmp.eq.s32.totalorder %v5791_v26, %v2623_v25 }
 0x640   :  { %v2629_v42 = vadd.s32 %v2597_v18, %v2533_v56  ;;  %v2505_v56 = vadd.s32 240, %v4881_v51 }
 0x642   :  { %3631 = vmatmul.mubr.msk.f32.gmra.mrb[50].mxu0 %vm2656_vm4, %v4417_v6  ;;  %vm2672_vm4 = vcmp.eq.s32.totalorder %v5787_v23, %v2623_v25  ;;  %v2566_v25 = vand.u32 15, %v2499_v41  ;;  %v2602_v41 = vmul.u32 16, %v2570_v47 }
 0x643   :  { %3632 = vmatprep.mubr.msk.f32.mxu0 %vm2659_vm5, %v4417_v6  ;;  %vm2675_vm5 = vcmp.eq.s32.totalorder %v5791_v26, %v2624_v31 }
 0x644   :  { %v2598_v60 = vmul.u32 16, %v2566_v25  ;;  %v2539_v25 = vshra.s32 %v2504_v29, 4 }
 0x646   :  { %3633 = vmatmul.mubr.msk.f32.gmra.mrb[52].mxu0 %vm2658_vm6, %v4417_v6  ;;  %vm2674_vm6 = vcmp.eq.s32.totalorder %v5787_v23, %v2624_v31  ;;  %v2567_v31 = vand.u32 15, %v2500_v10  ;;  %v2630_v7 = vadd.s32 %v2598_v60, %v2534_v61  ;;  %v2506_v61 = vadd.s32 248, %v4881_v51 }
 0x647   :  { %3634 = vmatprep.mubr.msk.f32.mxu0 %vm2661_vm7, %v4417_v6  ;;  %vm2677_vm7 = vcmp.eq.s32.totalorder %v5791_v26, %v2625_v17 }
 0x648   :  { %v2599_v58 = vmul.u32 16, %v2567_v31  ;;  %v2540_v31 = vshra.s32 %v2505_v56, 4 }
 0x64a   :  { %3635 = vmatmul.mubr.msk.f32.gmra.mrb[54].mxu0 %vm2660_vm8, %v4417_v6  ;;  %vm2676_vm8 = vcmp.eq.s32.totalorder %v5787_v23, %v2625_v17  ;;  %v2568_v17 = vand.u32 15, %v2501_v16  ;;  %v2631_v54 = vadd.s32 %v2599_v58, %v2535_v22 }
 0x64b   :  { %3636 = vmatprep.mubr.msk.f32.mxu0 %vm2663_vm9, %v4417_v6  ;;  %vm2679_vm9 = vcmp.eq.s32.totalorder %v5791_v26, %v2626_v59 }
 0x64c   :  { %v2600_v4 = vmul.u32 16, %v2568_v17 }
 0x64e   :  { %3637 = vmatmul.mubr.msk.f32.gmra.mrb[56].mxu0 %vm2662_vm10, %v4417_v6  ;;  %vm2678_vm10 = vcmp.eq.s32.totalorder %v5787_v23, %v2626_v59  ;;  %v2537_v59 = vshra.s32 %v2502_v5, 4  ;;  %v2632_v50 = vadd.s32 %v2600_v4, %v2536_v15  ;;  %v2573_v5 = vand.u32 15, %v2506_v61 }
 0x64f   :  { %3638 = vmatprep.mubr.msk.f32.mxu0 %vm2665_vm11, %v4417_v6  ;;  %vm2681_vm11 = vcmp.eq.s32.totalorder %v5791_v26, %v2627_v55 }
 0x650   :  { %v2633_v49 = vadd.s32 %v2601_v20, %v2537_v59  ;;  %v2605_v22 = vmul.u32 16, %v2573_v5 }
 0x652   :  { %3639 = vmatmul.mubr.msk.f32.gmra.mrb[58].mxu0 %vm2664_vm12, %v4417_v6  ;;  %vm2680_vm12 = vcmp.eq.s32.totalorder %v5787_v23, %v2627_v55  ;;  %v2538_v55 = vshra.s32 %v2503_v19, 4 }
 0x653   :  { %3640 = vmatprep.mubr.msk.f32.mxu0 %vm2667_vm13, %v4417_v6  ;;  %vm2683_vm13 = vcmp.eq.s32.totalorder %v5791_v26, %v2628_v32 }
 0x654   :  { %v2634_v18 = vadd.s32 %v2602_v41, %v2538_v55 }
 0x656   :  { %3641 = vmatmul.mubr.msk.f32.gmra.mrb[60].mxu0 %vm2666_vm14, %v4417_v6  ;;  %vm2682_vm14 = vcmp.eq.s32.totalorder %v5787_v23, %v2628_v32  ;;  %v2571_v32 = vand.u32 15, %v2504_v29 }
 0x657   :  { %3642 = vmatprep.mubr.msk.f32.mxu0 %vm2669_vm15, %v4417_v6  ;;  %vm2685_vm15 = vcmp.eq.s32.totalorder %v5791_v26, %v2629_v42 }
 0x658   :  { %v2603_v10 = vmul.u32 16, %v2571_v32 }
 0x65a   :  { %3643 = vmatmul.mubr.msk.f32.gmra.mrb[62].mxu0 %vm2668_vm0, %v4417_v6  ;;  %vm2684_vm0 = vcmp.eq.s32.totalorder %v5787_v23, %v2629_v42  ;;  %v2572_v42 = vand.u32 15, %v2505_v56  ;;  %v2635_v60 = vadd.s32 %v2603_v10, %v2539_v25 }
 0x65b   :  { %3644 = vmatprep.mubr.msk.f32.mxu0 %vm2671_vm1, %v4417_v6  ;;  %vm2687_vm1 = vcmp.eq.s32.totalorder %v5791_v26, %v2630_v7 }
 0x65c   :  { %v2604_v16 = vmul.u32 16, %v2572_v42 }
 0x65e   :  { %3645 = vmatmul.mubr.msk.f32.gmra.mrb[64].mxu0 %vm2670_vm2, %v4417_v6  ;;  %vm2686_vm2 = vcmp.eq.s32.totalorder %v5787_v23, %v2630_v7  ;;  %v2636_v51 = vadd.s32 %v2604_v16, %v2540_v31  ;;  %v2541_v7 = vshra.s32 %v2506_v61, 4 }
 0x65f   :  { %3646 = vmatprep.mubr.msk.f32.mxu0 %vm2673_vm3, %v4417_v6  ;;  %vm2689_vm3 = vcmp.eq.s32.totalorder %v5791_v26, %v2631_v54 }
 0x660   :  { %v2637_v58 = vadd.s32 %v2605_v22, %v2541_v7 }
 0x662   :  { %3647 = vmatmul.mubr.msk.f32.gmra.mrb[66].mxu0 %vm2672_vm4, %v4417_v6  ;;  %vm2688_vm4 = vcmp.eq.s32.totalorder %v5787_v23, %v2631_v54 }
 0x663   :  { %3648 = vmatprep.mubr.msk.f32.mxu0 %vm2675_vm5, %v4417_v6  ;;  %vm2691_vm5 = vcmp.eq.s32.totalorder %v5791_v26, %v2632_v50 }
 0x666   :  { %3649 = vmatmul.mubr.msk.f32.gmra.mrb[68].mxu0 %vm2674_vm6, %v4417_v6  ;;  %vm2690_vm6 = vcmp.eq.s32.totalorder %v5787_v23, %v2632_v50 }
 0x667   :  { %3650 = vmatprep.mubr.msk.f32.mxu0 %vm2677_vm7, %v4417_v6  ;;  %vm2693_vm7 = vcmp.eq.s32.totalorder %v5791_v26, %v2633_v49 }
 0x66a   :  { %3651 = vmatmul.mubr.msk.f32.gmra.mrb[70].mxu0 %vm2676_vm8, %v4417_v6  ;;  %vm2692_vm8 = vcmp.eq.s32.totalorder %v5787_v23, %v2633_v49 }
 0x66b   :  { %3652 = vmatprep.mubr.msk.f32.mxu0 %vm2679_vm9, %v4417_v6  ;;  %vm2695_vm9 = vcmp.eq.s32.totalorder %v5791_v26, %v2634_v18 }
 0x66e   :  { %3653 = vmatmul.mubr.msk.f32.gmra.mrb[72].mxu0 %vm2678_vm10, %v4417_v6  ;;  %vm2694_vm10 = vcmp.eq.s32.totalorder %v5787_v23, %v2634_v18 }
 0x66f   :  { %3654 = vmatprep.mubr.msk.f32.mxu0 %vm2681_vm11, %v4417_v6  ;;  %vm2697_vm11 = vcmp.eq.s32.totalorder %v5791_v26, %v2635_v60 }
 0x672   :  { %3655 = vmatmul.mubr.msk.f32.gmra.mrb[74].mxu0 %vm2680_vm12, %v4417_v6  ;;  %vm2696_vm12 = vcmp.eq.s32.totalorder %v5787_v23, %v2635_v60 }
 0x673   :  { %3656 = vmatprep.mubr.msk.f32.mxu0 %vm2683_vm13, %v4417_v6  ;;  %vm2699_vm13 = vcmp.eq.s32.totalorder %v5791_v26, %v2636_v51 }
 0x676   :  { %3657 = vmatmul.mubr.msk.f32.gmra.mrb[76].mxu0 %vm2682_vm14, %v4417_v6  ;;  %vm2698_vm14 = vcmp.eq.s32.totalorder %v5787_v23, %v2636_v51 }
 0x677   :  { %3658 = vmatprep.mubr.msk.f32.mxu0 %vm2685_vm15, %v4417_v6  ;;  %vm2701_vm15 = vcmp.eq.s32.totalorder %v5791_v26, %v2637_v58 }
 0x67a   :  { %3659 = vmatmul.mubr.msk.f32.gmra.mrb[78].mxu0 %vm2684_vm0, %v4417_v6  ;;  %vm2700_vm0 = vcmp.eq.s32.totalorder %v5787_v23, %v2637_v58 }
 0x67b   :  { %3660 = vmatprep.mubr.msk.f32.mxu0 %vm2687_vm1, %v4417_v6  ;;  %vm3055_vm1 = vcmask 64512  }
 0x67e   :  { %3661 = vmatmul.mubr.msk.f32.gmra.mrb[80].mxu0 %vm2686_vm2, %v4417_v6 }
 0x67f   :  { %3662 = vmatprep.mubr.msk.f32.mxu0 %vm2689_vm3, %v4417_v6 }
 0x682   :  { %3663 = vmatmul.mubr.msk.f32.gmra.mrb[82].mxu0 %vm2688_vm4, %v4417_v6 }
 0x683   :  { %3664 = vmatprep.mubr.msk.f32.mxu0 %vm2691_vm5, %v4417_v6 }
 0x686   :  { %3665 = vmatmul.mubr.msk.f32.gmra.mrb[84].mxu0 %vm2690_vm6, %v4417_v6 }
 0x687   :  { %3666 = vmatprep.mubr.msk.f32.mxu0 %vm2693_vm7, %v4417_v6 }
 0x68a   :  { %3667 = vmatmul.mubr.msk.f32.gmra.mrb[86].mxu0 %vm2692_vm8, %v4417_v6 }
 0x68b   :  { %3668 = vmatprep.mubr.msk.f32.mxu0 %vm2695_vm9, %v4417_v6 }
 0x68e   :  { %3669 = vmatmul.mubr.msk.f32.gmra.mrb[88].mxu0 %vm2694_vm10, %v4417_v6 }
 0x68f   :  { %3670 = vmatprep.mubr.msk.f32.mxu0 %vm2697_vm11, %v4417_v6 }
 0x692   :  { %3671 = vmatmul.mubr.msk.f32.gmra.mrb[90].mxu0 %vm2696_vm12, %v4417_v6 }
 0x693   :  { %3672 = vmatprep.mubr.msk.f32.mxu0 %vm2699_vm13, %v4417_v6 }
 0x696   :  { %3673 = vmatmul.mubr.msk.f32.gmra.mrb[92].mxu0 %vm2698_vm14, %v4417_v6 }
 0x697   :  { %3674 = vmatprep.mubr.msk.f32.mxu0 %vm2701_vm15, %v4417_v6 }
 0x69a   :  { %3675 = vmatmul.mubr.msk.f32.gmra.mrb[94].mxu0 %vm2700_vm0, %v4417_v6 }
 0x6f1   :  { %v2832_v17 = vpop.f32.mrb[32].mxu0 }
 0x6f2   :  { %v2991_v28 = vadd.f32 %v2832_v17, %v5808_v45  ;;  %v2834_v19 = vpop.f32.mrb[33].mxu0 }
 0x6f4   :  { %v6106_v54 = vmul.f32 0.5, %v2991_v28 }
 0x6f5   :  { %v2837_v15 = vpop.f32.mrb[34].mxu0 }
 0x6f6   :  { %v2992_v4 = vadd.f32 %v2837_v15, %v5805_v24  ;;  %v2839_v59 = vpop.f32.mrb[35].mxu0  ;;  %v3056_v26 = vsel %vm3055_vm1, %v6106_v54, -inf }
 0x6f7   :  { %3057 = vmax.xlane.f32.xlu0 %v3056_v26 }
 0x6f8   :  { %v6111_v20 = vmul.f32 0.5, %v2992_v4 }
 0x6f9   :  { %v2842_v23 = vpop.f32.mrb[36].mxu0 }
 0x6fa   :  { %v2993_v6 = vadd.f32 %v2842_v23, %v5816_v0  ;;  %v2844_v47 = vpop.f32.mrb[37].mxu0  ;;  %v3059_v45 = vsel %vm3055_vm1, %v6111_v20, -inf }
 0x6fb   :  { %3060 = vmax.xlane.f32.xlu1 %v3059_v45 }
 0x6fc   :  { %v6116_v50 = vmul.f32 0.5, %v2993_v6 }
 0x6fd   :  { %v2847_v29 = vpop.f32.mrb[38].mxu0 }
 0x6fe   :  { %v2994_v24 = vadd.f32 %v2847_v29, %v5813_v27  ;;  %v2849_v49 = vpop.f32.mrb[39].mxu0  ;;  %v3062_v55 = vsel %vm3055_vm1, %v6116_v50, -inf }
 0x6ff   :  { %3063 = vmax.xlane.f32.xlu0 %v3062_v55 }
 0x700   :  { %v6121_v41 = vmul.f32 0.5, %v2994_v24 }
 0x701   :  { %v2852_v32 = vpop.f32.mrb[40].mxu0 }
 0x702   :  { %v2995_v0 = vadd.f32 %v2852_v32, %v5825_v9  ;;  %v2854_v56 = vpop.f32.mrb[41].mxu0  ;;  %v3065_v18 = vsel %vm3055_vm1, %v6121_v41, -inf }
 0x703   :  { %3066 = vmax.xlane.f32.xlu1 %v3065_v18 }
 0x704   :  { %v6126_v25 = vmul.f32 0.5, %v2995_v0 }
 0x705   :  { %v2857_v10 = vpop.f32.mrb[42].mxu0 }
 0x706   :  { %v2996_v27 = vadd.f32 %v2857_v10, %v5822_v1  ;;  %v2859_v42 = vpop.f32.mrb[43].mxu0  ;;  %v3068_v61 = vsel %vm3055_vm1, %v6126_v25, -inf }
 0x707   :  { %3069 = vmax.xlane.f32.xlu0 %v3068_v61 }
 0x708   :  { %v6131_v60 = vmul.f32 0.5, %v2996_v27 }
 0x709   :  { %v2862_v31 = vpop.f32.mrb[44].mxu0 }
 0x70a   :  { %v2997_v9 = vadd.f32 %v2862_v31, %v5834_v21  ;;  %v2864_v16 = vpop.f32.mrb[45].mxu0  ;;  %v3071_v5 = vsel %vm3055_vm1, %v6131_v60, -inf }
 0x70b   :  { %3072 = vmax.xlane.f32.xlu1 %v3071_v5 }
 0x70c   :  { %v6136_v51 = vmul.f32 0.5, %v2997_v9 }
 0x70d   :  { %v2867_v7 = vpop.f32.mrb[46].mxu0 }
 0x70e   :  { %v2998_v1 = vadd.f32 %v2867_v7, %v5831_v34  ;;  %v2869_v22 = vpop.f32.mrb[47].mxu0  ;;  %v3074_v58 = vsel %vm3055_vm1, %v6136_v51, -inf }
 0x70f   :  { %3075 = vmax.xlane.f32.xlu0 %v3074_v58 }
 0x710   :  { %v6141_v17 = vmul.f32 0.5, %v2998_v1 }
 0x711   :  { %v2872_v28 = vpop.f32.mrb[48].mxu0 }
 0x712   :  { %v2999_v21 = vadd.f32 %v2872_v28, %v5843_v48  ;;  %v2874_v19 = vpop.f32.mrb[49].mxu0  ;;  %v3077_v15 = vsel %vm3055_vm1, %v6141_v17, -inf }
 0x713   :  { %3078 = vmax.xlane.f32.xlu1 %v3077_v15 }
 0x714   :  { %v6146_v4 = vmul.f32 0.5, %v2999_v21 }
 0x715   :  { %v2877_v59 = vpop.f32.mrb[50].mxu0 }
 0x716   :  { %v3000_v34 = vadd.f32 %v2877_v59, %v5840_v46  ;;  %v2879_v26 = vpop.f32.mrb[51].mxu0  ;;  %v3080_v23 = vsel %vm3055_vm1, %v6146_v4, -inf }
 0x717   :  { %3081 = vmax.xlane.f32.xlu0 %v3080_v23 }
 0x718   :  { %v6151_v6 = vmul.f32 0.5, %v3000_v34 }
 0x719   :  { %v2882_v47 = vpop.f32.mrb[52].mxu0 }
 0x71a   :  { %v3001_v48 = vadd.f32 %v2882_v47, %v5852_v52  ;;  %v2884_v45 = vpop.f32.mrb[53].mxu0  ;;  %v3083_v29 = vsel %vm3055_vm1, %v6151_v6, -inf }
 0x71b   :  { %3084 = vmax.xlane.f32.xlu1 %v3083_v29 }
 0x71c   :  { %v6156_v24 = vmul.f32 0.5, %v3001_v48 }
 0x71d   :  { %v2887_v49 = vpop.f32.mrb[54].mxu0 }
 0x71e   :  { %v3002_v46 = vadd.f32 %v2887_v49, %v5849_v33  ;;  %v2889_v55 = vpop.f32.mrb[55].mxu0  ;;  %v3086_v32 = vsel %vm3055_vm1, %v6156_v24, -inf }
 0x71f   :  { %3087 = vmax.xlane.f32.xlu0 %v3086_v32 }
 0x720   :  { %v6161_v0 = vmul.f32 0.5, %v3002_v46 }
 0x721   :  { %v2892_v56 = vpop.f32.mrb[56].mxu0 }
 0x722   :  { %v3003_v52 = vadd.f32 %v2892_v56, %v5861_v8  ;;  %v2894_v18 = vpop.f32.mrb[57].mxu0  ;;  %v3089_v10 = vsel %vm3055_vm1, %v6161_v0, -inf }
 0x723   :  { %3090 = vmax.xlane.f32.xlu1 %v3089_v10 }
 0x724   :  { %v6166_v27 = vmul.f32 0.5, %v3003_v52 }
 0x725   :  { %v2897_v42 = vpop.f32.mrb[58].mxu0 }
 0x726   :  { %v3004_v33 = vadd.f32 %v2897_v42, %v5858_v3  ;;  %v2899_v61 = vpop.f32.mrb[59].mxu0  ;;  %v3092_v31 = vsel %vm3055_vm1, %v6166_v27, -inf }
 0x727   :  { %3093 = vmax.xlane.f32.xlu0 %v3092_v31 }
 0x728   :  { %v6171_v9 = vmul.f32 0.5, %v3004_v33 }
 0x729   :  { %v2902_v16 = vpop.f32.mrb[60].mxu0 }
 0x72a   :  { %v3005_v8 = vadd.f32 %v2902_v16, %v5870_v53  ;;  %v2904_v5 = vpop.f32.mrb[61].mxu0  ;;  %v3095_v7 = vsel %vm3055_vm1, %v6171_v9, -inf }
 0x72b   :  { %3096 = vmax.xlane.f32.xlu1 %v3095_v7 }
 0x72c   :  { %v6176_v1 = vmul.f32 0.5, %v3005_v8 }
 0x72d   :  { %v2907_v22 = vpop.f32.mrb[62].mxu0 }
 0x72e   :  { %v3006_v3 = vadd.f32 %v2907_v22, %v5867_v44  ;;  %v2909_v58 = vpop.f32.mrb[63].mxu0  ;;  %v3098_v28 = vsel %vm3055_vm1, %v6176_v1, -inf }
 0x72f   :  { %3099 = vmax.xlane.f32.xlu0 %v3098_v28 }
 0x730   :  { %v6181_v21 = vmul.f32 0.5, %v3006_v3 }
 0x731   :  { %v2912_v19 = vpop.f32.mrb[64].mxu0 }
 0x732   :  { %v3007_v53 = vadd.f32 %v2912_v19, %v5879_v13  ;;  %v2914_v15 = vpop.f32.mrb[65].mxu0  ;;  %v3101_v59 = vsel %vm3055_vm1, %v6181_v21, -inf }
 0x733   :  { %3102 = vmax.xlane.f32.xlu1 %v3101_v59 }
 0x734   :  { %v6186_v34 = vmul.f32 0.5, %v3007_v53 }
 0x735   :  { %v2917_v26 = vpop.f32.mrb[66].mxu0 }
 0x736   :  { %v3008_v44 = vadd.f32 %v2917_v26, %v5876_v30  ;;  %v2919_v23 = vpop.f32.mrb[67].mxu0  ;;  %v3104_v47 = vsel %vm3055_vm1, %v6186_v34, -inf }
 0x737   :  { %3105 = vmax.xlane.f32.xlu0 %v3104_v47 }
 0x738   :  { %v6191_v48 = vmul.f32 0.5, %v3008_v44 }
 0x739   :  { %v2922_v45 = vpop.f32.mrb[68].mxu0 }
 0x73a   :  { %v3009_v13 = vadd.f32 %v2922_v45, %v5888_v40  ;;  %v2924_v29 = vpop.f32.mrb[69].mxu0  ;;  %v3107_v49 = vsel %vm3055_vm1, %v6191_v48, -inf }
 0x73b   :  { %3108 = vmax.xlane.f32.xlu1 %v3107_v49 }
 0x73c   :  { %v6196_v46 = vmul.f32 0.5, %v3009_v13 }
 0x73d   :  { %v2927_v55 = vpop.f32.mrb[70].mxu0 }
 0x73e   :  { %v3010_v30 = vadd.f32 %v2927_v55, %v5885_v57  ;;  %v2929_v32 = vpop.f32.mrb[71].mxu0  ;;  %v3110_v56 = vsel %vm3055_vm1, %v6196_v46, -inf }
 0x73f   :  { %3111 = vmax.xlane.f32.xlu0 %v3110_v56 }
 0x740   :  { %v6201_v52 = vmul.f32 0.5, %v3010_v30 }
 0x741   :  { %v2932_v18 = vpop.f32.mrb[72].mxu0 }
 0x742   :  { %v3011_v40 = vadd.f32 %v2932_v18, %v5897_v37  ;;  %v2934_v10 = vpop.f32.mrb[73].mxu0  ;;  %v3113_v42 = vsel %vm3055_vm1, %v6201_v52, -inf }
 0x743   :  { %3114 = vmax.xlane.f32.xlu1 %v3113_v42 }
 0x744   :  { %v6206_v33 = vmul.f32 0.5, %v3011_v40 }
 0x745   :  { %v2937_v61 = vpop.f32.mrb[74].mxu0 }
 0x746   :  { %v3012_v57 = vadd.f32 %v2937_v61, %v5894_v35  ;;  %v2939_v31 = vpop.f32.mrb[75].mxu0  ;;  %v3116_v16 = vsel %vm3055_vm1, %v6206_v33, -inf }
 0x747   :  { %3117 = vmax.xlane.f32.xlu0 %v3116_v16 }
 0x748   :  { %v6211_v8 = vmul.f32 0.5, %v3012_v57 }
 0x749   :  { %v2942_v5 = vpop.f32.mrb[76].mxu0 }
 0x74a   :  { %v3013_v37 = vadd.f32 %v2942_v5, %v5906_v14  ;;  %v2944_v7 = vpop.f32.mrb[77].mxu0  ;;  %v3119_v22 = vsel %vm3055_vm1, %v6211_v8, -inf }
 0x74b   :  { %3120 = vmax.xlane.f32.xlu1 %v3119_v22 }
 0x74c   :  { %v6216_v3 = vmul.f32 0.5, %v3013_v37 }
 0x74d   :  { %v2947_v58 = vpop.f32.mrb[78].mxu0 }
 0x74e   :  { %v3014_v35 = vadd.f32 %v2947_v58, %v5903_v39  ;;  %v2949_v28 = vpop.f32.mrb[79].mxu0  ;;  %v3122_v19 = vsel %vm3055_vm1, %v6216_v3, -inf }
 0x74f   :  { %3123 = vmax.xlane.f32.xlu0 %v3122_v19 }
 0x750   :  { %v6221_v53 = vmul.f32 0.5, %v3014_v35 }
 0x751   :  { %v2952_v15 = vpop.f32.mrb[80].mxu0 }
 0x752   :  { %v3015_v14 = vadd.f32 %v2952_v15, %v5915_v62  ;;  %v2954_v59 = vpop.f32.mrb[81].mxu0  ;;  %v3125_v26 = vsel %vm3055_vm1, %v6221_v53, -inf }
 0x753   :  { %3126 = vmax.xlane.f32.xlu1 %v3125_v26 }
 0x754   :  { %v6226_v44 = vmul.f32 0.5, %v3015_v14 }
 0x755   :  { %v2957_v23 = vpop.f32.mrb[82].mxu0 }
 0x756   :  { %v3016_v39 = vadd.f32 %v2957_v23, %v5912_v38  ;;  %v2959_v47 = vpop.f32.mrb[83].mxu0  ;;  %v3128_v45 = vsel %vm3055_vm1, %v6226_v44, -inf }
 0x757   :  { %3129 = vmax.xlane.f32.xlu0 %v3128_v45 }
 0x758   :  { %v6231_v13 = vmul.f32 0.5, %v3016_v39 }
 0x759   :  { %v2962_v29 = vpop.f32.mrb[84].mxu0 }
 0x75a   :  { %v3017_v62 = vadd.f32 %v2962_v29, %v5925_v12  ;;  %v2964_v49 = vpop.f32.mrb[85].mxu0  ;;  %v3131_v55 = vsel %vm3055_vm1, %v6231_v13, -inf }
 0x75b   :  { %3132 = vmax.xlane.f32.xlu1 %v3131_v55 }
 0x75c   :  { %v6236_v30 = vmul.f32 0.5, %v3017_v62 }
 0x75d   :  { %v2967_v32 = vpop.f32.mrb[86].mxu0 }
 0x75e   :  { %v3018_v38 = vadd.f32 %v2967_v32, %v5922_v63  ;;  %v2969_v56 = vpop.f32.mrb[87].mxu0  ;;  %v3134_v18 = vsel %vm3055_vm1, %v6236_v30, -inf }
 0x75f   :  { %3135 = vmax.xlane.f32.xlu0 %v3134_v18 }
 0x760   :  { %v6241_v40 = vmul.f32 0.5, %v3018_v38 }
 0x761   :  { %v2972_v10 = vpop.f32.mrb[88].mxu0 }
 0x762   :  { %v3019_v12 = vadd.f32 %v2972_v10, %v5935_v43  ;;  %v2974_v42 = vpop.f32.mrb[89].mxu0  ;;  %v3137_v61 = vsel %vm3055_vm1, %v6241_v40, -inf }
 0x763   :  { %3138 = vmax.xlane.f32.xlu1 %v3137_v61 }
 0x764   :  { %v6246_v57 = vmul.f32 0.5, %v3019_v12 }
 0x765   :  { %v2977_v31 = vpop.f32.mrb[90].mxu0 }
 0x766   :  { %v3020_v63 = vadd.f32 %v2977_v31, %v5932_v2  ;;  %v2979_v16 = vpop.f32.mrb[91].mxu0  ;;  %v3140_v5 = vsel %vm3055_vm1, %v6246_v57, -inf }
 0x767   :  { %3141 = vmax.xlane.f32.xlu0 %v3140_v5 }
 0x768   :  { %v6251_v37 = vmul.f32 0.5, %v3020_v63 }
 0x769   :  { %v2982_v7 = vpop.f32.mrb[92].mxu0 }
 0x76a   :  { %v3021_v43 = vadd.f32 %v2982_v7, %v5945_v11  ;;  %v2984_v22 = vpop.f32.mrb[93].mxu0  ;;  %v3143_v58 = vsel %vm3055_vm1, %v6251_v37, -inf }
 0x76b   :  { %3144 = vmax.xlane.f32.xlu1 %v3143_v58 }
 0x76c   :  { %v6256_v35 = vmul.f32 0.5, %v3021_v43 }
 0x76d   :  { %v2987_v28 = vpop.f32.mrb[94].mxu0 }
 0x76e   :  { %v3022_v2 = vadd.f32 %v2987_v28, %v5942_v36  ;;  %v2989_v19 = vpop.f32.mrb[95].mxu0  ;;  %v3146_v15 = vsel %vm3055_vm1, %v6256_v35, -inf }
 0x76f   :  { %3147 = vmax.xlane.f32.xlu0 %v3146_v15 }
 0x770   :  { %v6261_v14 = vmul.f32 0.5, %v3022_v2 }
 0x772   :  { %v3149_v11 = vsel %vm3055_vm1, %v6261_v14, -inf }
 0x773   :  { %3150 = vmax.xlane.f32.xlu1 %v3149_v11 }
 0x784   :  { %v3058_v59 = vpop.xlane.xlu0 %3057 }
 0x785   :  { %v6266_v26 = vsub.f32 %v6106_v54, %v3058_v59 }
 0x787   :  { %v3184_v23 = vmul.f32 1.442695, %v6266_v26 }
 0x788   :  { %v3061_v39 = vpop.xlane.xlu1 %3060 }
 0x789   :  { %4254 = vpow2.f32 %v3184_v23  ;;  %v6270_v36 = vsub.f32 %v6111_v20, %v3061_v39 }
 0x78b   :  { %v3186_v47 = vmul.f32 1.442695, %v6270_v36 }
 0x78c   :  { %v3064_v45 = vpop.xlane.xlu0 %3063 }
 0x78d   :  { %4256 = vpow2.f32 %v3186_v47  ;;  %v6274_v29 = vsub.f32 %v6116_v50, %v3064_v45 }
 0x78f   :  { %v3188_v62 = vmul.f32 1.442695, %v6274_v29 }
 0x790   :  { %v3067_v49 = vpop.xlane.xlu1 %3066 }
 0x791   :  { %4258 = vpow2.f32 %v3188_v62  ;;  %v6278_v54 = vsub.f32 %v6121_v41, %v3067_v49 }
 0x793   :  { %v4255_v55 = vpop.eup %4254  ;;  %v3190_v32 = vmul.f32 1.442695, %v6278_v54 }
 0x794   :  { %v3070_v38 = vpop.xlane.xlu0 %3069  ;;  %v3248_v20 = vsel %vm3055_vm1, %v4255_v55, 0.0 }
 0x795   :  { %4260 = vpow2.f32 %v3190_v32  ;;  %v6283_v56 = vsub.f32 %v6126_v25, %v3070_v38  ;;  %3249 = vadd.xlane.f32.xlu0 %v3248_v20 }
 0x797   :  { %v4257_v50 = vpop.eup %4256  ;;  %v3192_v18 = vmul.f32 1.442695, %v6283_v56 }
 0x798   :  { %v3073_v10 = vpop.xlane.xlu1 %3072  ;;  %v3251_v12 = vsel %vm3055_vm1, %v4257_v50, 0.0 }
 0x799   :  { %4262 = vpow2.f32 %v3192_v18  ;;  %v6288_v41 = vsub.f32 %v6131_v60, %v3073_v10  ;;  %3252 = vadd.xlane.f32.xlu1 %v3251_v12 }
 0x79b   :  { %v4259_v42 = vpop.eup %4258  ;;  %v3194_v61 = vmul.f32 1.442695, %v6288_v41 }
 0x79c   :  { %v3076_v31 = vpop.xlane.xlu0 %3075  ;;  %v3254_v63 = vsel %vm3055_vm1, %v4259_v42, 0.0 }
 0x79d   :  { %4264 = vpow2.f32 %v3194_v61  ;;  %v6293_v25 = vsub.f32 %v6136_v51, %v3076_v31  ;;  %3255 = vadd.xlane.f32.xlu0 %v3254_v63 }
 0x79f   :  { %v4261_v16 = vpop.eup %4260  ;;  %v3196_v5 = vmul.f32 1.442695, %v6293_v25 }
 0x7a0   :  { %v3079_v7 = vpop.xlane.xlu1 %3078  ;;  %v3257_v43 = vsel %vm3055_vm1, %v4261_v16, 0.0 }
 0x7a1   :  { %4266 = vpow2.f32 %v3196_v5  ;;  %v6298_v60 = vsub.f32 %v6141_v17, %v3079_v7  ;;  %3258 = vadd.xlane.f32.xlu1 %v3257_v43 }
 0x7a3   :  { %v4263_v22 = vpop.eup %4262  ;;  %v3198_v58 = vmul.f32 1.442695, %v6298_v60 }
 0x7a4   :  { %v3082_v28 = vpop.xlane.xlu0 %3081  ;;  %v3260_v2 = vsel %vm3055_vm1, %v4263_v22, 0.0 }
 0x7a5   :  { %4268 = vpow2.f32 %v3198_v58  ;;  %v6303_v51 = vsub.f32 %v6146_v4, %v3082_v28  ;;  %3261 = vadd.xlane.f32.xlu0 %v3260_v2 }
 0x7a7   :  { %v4265_v19 = vpop.eup %4264  ;;  %v3200_v15 = vmul.f32 1.442695, %v6303_v51 }
 0x7a8   :  { %v3085_v11 = vpop.xlane.xlu1 %3084  ;;  %v3263_v59 = vsel %vm3055_vm1, %v4265_v19, 0.0 }
 0x7a9   :  { %4270 = vpow2.f32 %v3200_v15  ;;  %v6308_v17 = vsub.f32 %v6151_v6, %v3085_v11  ;;  %3264 = vadd.xlane.f32.xlu1 %v3263_v59 }
 0x7ab   :  { %v4267_v23 = vpop.eup %4266  ;;  %v3202_v39 = vmul.f32 1.442695, %v6308_v17 }
 0x7ac   :  { %v3088_v47 = vpop.xlane.xlu0 %3087  ;;  %v3266_v45 = vsel %vm3055_vm1, %v4267_v23, 0.0 }
 0x7ad   :  { %4272 = vpow2.f32 %v3202_v39  ;;  %v6313_v4 = vsub.f32 %v6156_v24, %v3088_v47  ;;  %3267 = vadd.xlane.f32.xlu0 %v3266_v45 }
 0x7af   :  { %v4269_v62 = vpop.eup %4268  ;;  %v3204_v49 = vmul.f32 1.442695, %v6313_v4 }
 0x7b0   :  { %v3091_v55 = vpop.xlane.xlu1 %3090  ;;  %v3269_v32 = vsel %vm3055_vm1, %v4269_v62, 0.0 }
 0x7b1   :  { %4274 = vpow2.f32 %v3204_v49  ;;  %v6318_v6 = vsub.f32 %v6161_v0, %v3091_v55  ;;  %3270 = vadd.xlane.f32.xlu1 %v3269_v32 }
 0x7b3   :  { %v4271_v38 = vpop.eup %4270  ;;  %v3206_v20 = vmul.f32 1.442695, %v6318_v6 }
 0x7b4   :  { %v3094_v50 = vpop.xlane.xlu0 %3093  ;;  %v3272_v18 = vsel %vm3055_vm1, %v4271_v38, 0.0 }
 0x7b5   :  { %4276 = vpow2.f32 %v3206_v20  ;;  %v6323_v24 = vsub.f32 %v6166_v27, %v3094_v50  ;;  %3273 = vadd.xlane.f32.xlu0 %v3272_v18 }
 0x7b7   :  { %v4273_v10 = vpop.eup %4272  ;;  %v3208_v12 = vmul.f32 1.442695, %v6323_v24 }
 0x7b8   :  { %v3097_v42 = vpop.xlane.xlu1 %3096  ;;  %v3275_v61 = vsel %vm3055_vm1, %v4273_v10, 0.0 }
 0x7b9   :  { %4278 = vpow2.f32 %v3208_v12  ;;  %v6328_v0 = vsub.f32 %v6171_v9, %v3097_v42  ;;  %3276 = vadd.xlane.f32.xlu1 %v3275_v61 }
 0x7bb   :  { %v4275_v31 = vpop.eup %4274  ;;  %v3210_v63 = vmul.f32 1.442695, %v6328_v0 }
 0x7bc   :  { %v3100_v16 = vpop.xlane.xlu0 %3099  ;;  %v3278_v5 = vsel %vm3055_vm1, %v4275_v31, 0.0 }
 0x7bd   :  { %4280 = vpow2.f32 %v3210_v63  ;;  %v6333_v27 = vsub.f32 %v6176_v1, %v3100_v16  ;;  %3279 = vadd.xlane.f32.xlu0 %v3278_v5 }
 0x7bf   :  { %v4277_v7 = vpop.eup %4276  ;;  %v3212_v43 = vmul.f32 1.442695, %v6333_v27 }
 0x7c0   :  { %v3103_v22 = vpop.xlane.xlu1 %3102  ;;  %v3281_v58 = vsel %vm3055_vm1, %v4277_v7, 0.0 }
 0x7c1   :  { %4282 = vpow2.f32 %v3212_v43  ;;  %v6338_v9 = vsub.f32 %v6181_v21, %v3103_v22  ;;  %3282 = vadd.xlane.f32.xlu1 %v3281_v58 }
 0x7c3   :  { %v4279_v28 = vpop.eup %4278  ;;  %v3214_v2 = vmul.f32 1.442695, %v6338_v9 }
 0x7c4   :  { %v3106_v19 = vpop.xlane.xlu0 %3105  ;;  %v3284_v15 = vsel %vm3055_vm1, %v4279_v28, 0.0 }
 0x7c5   :  { %4284 = vpow2.f32 %v3214_v2  ;;  %v6343_v1 = vsub.f32 %v6186_v34, %v3106_v19  ;;  %3285 = vadd.xlane.f32.xlu0 %v3284_v15 }
 0x7c7   :  { %v4281_v11 = vpop.eup %4280  ;;  %v3216_v59 = vmul.f32 1.442695, %v6343_v1 }
 0x7c8   :  { %v3109_v23 = vpop.xlane.xlu1 %3108  ;;  %v3287_v39 = vsel %vm3055_vm1, %v4281_v11, 0.0 }
 0x7c9   :  { %4286 = vpow2.f32 %v3216_v59  ;;  %v6348_v21 = vsub.f32 %v6191_v48, %v3109_v23  ;;  %3288 = vadd.xlane.f32.xlu1 %v3287_v39 }
 0x7cb   :  { %v4283_v47 = vpop.eup %4282  ;;  %v3218_v45 = vmul.f32 1.442695, %v6348_v21 }
 0x7cc   :  { %v3112_v62 = vpop.xlane.xlu0 %3111  ;;  %v3290_v49 = vsel %vm3055_vm1, %v4283_v47, 0.0 }
 0x7cd   :  { %4288 = vpow2.f32 %v3218_v45  ;;  %v6353_v34 = vsub.f32 %v6196_v46, %v3112_v62  ;;  %3291 = vadd.xlane.f32.xlu0 %v3290_v49 }
 0x7cf   :  { %v4285_v55 = vpop.eup %4284  ;;  %v3220_v32 = vmul.f32 1.442695, %v6353_v34 }
 0x7d0   :  { %v3115_v38 = vpop.xlane.xlu1 %3114  ;;  %v3293_v20 = vsel %vm3055_vm1, %v4285_v55, 0.0 }
 0x7d1   :  { %4290 = vpow2.f32 %v3220_v32  ;;  %v6358_v48 = vsub.f32 %v6201_v52, %v3115_v38  ;;  %3294 = vadd.xlane.f32.xlu1 %v3293_v20 }
 0x7d3   :  { %v4287_v50 = vpop.eup %4286  ;;  %v3222_v18 = vmul.f32 1.442695, %v6358_v48 }
 0x7d4   :  { %v3118_v10 = vpop.xlane.xlu0 %3117  ;;  %v3296_v12 = vsel %vm3055_vm1, %v4287_v50, 0.0 }
 0x7d5   :  { %4292 = vpow2.f32 %v3222_v18  ;;  %v6363_v46 = vsub.f32 %v6206_v33, %v3118_v10  ;;  %3297 = vadd.xlane.f32.xlu0 %v3296_v12 }
 0x7d7   :  { %v4289_v42 = vpop.eup %4288  ;;  %v3224_v61 = vmul.f32 1.442695, %v6363_v46 }
 0x7d8   :  { %v3121_v31 = vpop.xlane.xlu1 %3120  ;;  %v3299_v63 = vsel %vm3055_vm1, %v4289_v42, 0.0 }
 0x7d9   :  { %4294 = vpow2.f32 %v3224_v61  ;;  %v6368_v52 = vsub.f32 %v6211_v8, %v3121_v31  ;;  %3300 = vadd.xlane.f32.xlu1 %v3299_v63 }
 0x7db   :  { %v4291_v16 = vpop.eup %4290  ;;  %v3226_v5 = vmul.f32 1.442695, %v6368_v52 }
 0x7dc   :  { %v3124_v7 = vpop.xlane.xlu0 %3123  ;;  %v3302_v43 = vsel %vm3055_vm1, %v4291_v16, 0.0 }
 0x7dd   :  { %4296 = vpow2.f32 %v3226_v5  ;;  %v6373_v33 = vsub.f32 %v6216_v3, %v3124_v7  ;;  %3303 = vadd.xlane.f32.xlu0 %v3302_v43 }
 0x7df   :  { %v4293_v22 = vpop.eup %4292  ;;  %v3228_v58 = vmul.f32 1.442695, %v6373_v33 }
 0x7e0   :  { %v3127_v28 = vpop.xlane.xlu1 %3126  ;;  %v3305_v2 = vsel %vm3055_vm1, %v4293_v22, 0.0 }
 0x7e1   :  { %4298 = vpow2.f32 %v3228_v58  ;;  %v6378_v8 = vsub.f32 %v6221_v53, %v3127_v28  ;;  %3306 = vadd.xlane.f32.xlu1 %v3305_v2 }
 0x7e3   :  { %v4295_v19 = vpop.eup %4294  ;;  %v3230_v15 = vmul.f32 1.442695, %v6378_v8 }
 0x7e4   :  { %v3130_v11 = vpop.xlane.xlu0 %3129  ;;  %v3308_v59 = vsel %vm3055_vm1, %v4295_v19, 0.0 }
 0x7e5   :  { %4300 = vpow2.f32 %v3230_v15  ;;  %v6383_v3 = vsub.f32 %v6226_v44, %v3130_v11  ;;  %3309 = vadd.xlane.f32.xlu0 %v3308_v59 }
 0x7e7   :  { %v4297_v23 = vpop.eup %4296  ;;  %v3232_v39 = vmul.f32 1.442695, %v6383_v3 }
 0x7e8   :  { %v3133_v47 = vpop.xlane.xlu1 %3132  ;;  %v3311_v45 = vsel %vm3055_vm1, %v4297_v23, 0.0 }
 0x7e9   :  { %4302 = vpow2.f32 %v3232_v39  ;;  %v6388_v53 = vsub.f32 %v6231_v13, %v3133_v47  ;;  %3312 = vadd.xlane.f32.xlu1 %v3311_v45 }
 0x7eb   :  { %v4299_v62 = vpop.eup %4298  ;;  %v3234_v49 = vmul.f32 1.442695, %v6388_v53 }
 0x7ec   :  { %v3136_v55 = vpop.xlane.xlu0 %3135  ;;  %v3314_v32 = vsel %vm3055_vm1, %v4299_v62, 0.0 }
 0x7ed   :  { %4304 = vpow2.f32 %v3234_v49  ;;  %v6393_v44 = vsub.f32 %v6236_v30, %v3136_v55  ;;  %3315 = vadd.xlane.f32.xlu0 %v3314_v32 }
 0x7ef   :  { %v4301_v38 = vpop.eup %4300  ;;  %v3236_v20 = vmul.f32 1.442695, %v6393_v44 }
 0x7f0   :  { %v3139_v50 = vpop.xlane.xlu1 %3138  ;;  %v3317_v18 = vsel %vm3055_vm1, %v4301_v38, 0.0 }
 0x7f1   :  { %4306 = vpow2.f32 %v3236_v20  ;;  %v6398_v13 = vsub.f32 %v6241_v40, %v3139_v50  ;;  %3318 = vadd.xlane.f32.xlu1 %v3317_v18 }
 0x7f3   :  { %v4303_v10 = vpop.eup %4302  ;;  %v3238_v12 = vmul.f32 1.442695, %v6398_v13 }
 0x7f4   :  { %v3142_v42 = vpop.xlane.xlu0 %3141  ;;  %v3320_v61 = vsel %vm3055_vm1, %v4303_v10, 0.0 }
 0x7f5   :  { %4308 = vpow2.f32 %v3238_v12  ;;  %v6403_v30 = vsub.f32 %v6246_v57, %v3142_v42  ;;  %3321 = vadd.xlane.f32.xlu0 %v3320_v61 }
 0x7f7   :  { %v4305_v31 = vpop.eup %4304  ;;  %v3240_v63 = vmul.f32 1.442695, %v6403_v30 }
 0x7f8   :  { %v3145_v16 = vpop.xlane.xlu1 %3144  ;;  %v3323_v5 = vsel %vm3055_vm1, %v4305_v31, 0.0 }
 0x7f9   :  { %4310 = vpow2.f32 %v3240_v63  ;;  %v6408_v40 = vsub.f32 %v6251_v37, %v3145_v16  ;;  %3324 = vadd.xlane.f32.xlu1 %v3323_v5 }
 0x7fb   :  { %v4307_v7 = vpop.eup %4306  ;;  %v3242_v43 = vmul.f32 1.442695, %v6408_v40 }
 0x7fc   :  { %v3148_v22 = vpop.xlane.xlu0 %3147  ;;  %v3326_v58 = vsel %vm3055_vm1, %v4307_v7, 0.0 }
 0x7fd   :  { %4312 = vpow2.f32 %v3242_v43  ;;  %v6413_v57 = vsub.f32 %v6256_v35, %v3148_v22  ;;  %3327 = vadd.xlane.f32.xlu0 %v3326_v58 }
 0x7ff   :  { %v4309_v28 = vpop.eup %4308  ;;  %v3244_v2 = vmul.f32 1.442695, %v6413_v57 }
 0x800   :  { %v3151_v19 = vpop.xlane.xlu1 %3150  ;;  %v3329_v15 = vsel %vm3055_vm1, %v4309_v28, 0.0 }
 0x801   :  { %4314 = vpow2.f32 %v3244_v2  ;;  %v6418_v37 = vsub.f32 %v6261_v14, %v3151_v19  ;;  %3330 = vadd.xlane.f32.xlu1 %v3329_v15 }
 0x803   :  { %v4311_v11 = vpop.eup %4310  ;;  %v3246_v59 = vmul.f32 1.442695, %v6418_v37 }
 0x804   :  { %v3332_v23 = vsel %vm3055_vm1, %v4311_v11, 0.0 }
 0x805   :  { %4316 = vpow2.f32 %v3246_v59  ;;  %3333 = vadd.xlane.f32.xlu0 %v3332_v23 }
 0x807   :  { %v4313_v35 = vpop.eup %4312 }
 0x808   :  { %v3335_v39 = vsel %vm3055_vm1, %v4313_v35, 0.0 }
 0x809   :  { %3336 = vadd.xlane.f32.xlu1 %v3335_v39 }
 0x80b   :  { %v4315_v47 = vpop.eup %4314 }
 0x80c   :  { %v3338_v45 = vsel %vm3055_vm1, %v4315_v47, 0.0 }
 0x80d   :  { %3339 = vadd.xlane.f32.xlu0 %v3338_v45 }
 0x80f   :  { %v4317_v62 = vpop.eup %4316 }
 0x810   :  { %v3341_v14 = vsel %vm3055_vm1, %v4317_v62, 0.0 }
 0x811   :  { %3342 = vadd.xlane.f32.xlu1 %v3341_v14 }
 0x822   :  { %v3250_v49 = vpop.xlane.xlu0 %3249 }
 0x823   :  { %4318 = vlog2.f32 %v3250_v49 }
 0x826   :  { %v3253_v55 = vpop.xlane.xlu1 %3252 }
 0x827   :  { %4320 = vlog2.f32 %v3253_v55 }
 0x82a   :  { %v3256_v32 = vpop.xlane.xlu0 %3255 }
 0x82b   :  { %4322 = vlog2.f32 %v3256_v32 }
 0x82d   :  { %v4319_v38 = vpop.eup %4318 }
 0x82e   :  { %v3345_v20 = vmul.f32 0.6931472, %v4319_v38  ;;  %v3259_v50 = vpop.xlane.xlu1 %3258 }
 0x82f   :  { %4324 = vlog2.f32 %v3259_v50 }
 0x830   :  { %v3408_v18 = vsub.f32 %v6266_v26, %v3345_v20 }
 0x831   :  { %v4321_v10 = vpop.eup %4320 }
 0x832   :  { %3440 = vst.msk [vmem:[%s6589_s4] sm:$0xff] %vm3055_vm1, %v3408_v18  ;;  %v3347_v12 = vmul.f32 0.6931472, %v4321_v10  ;;  %v3262_v42 = vpop.xlane.xlu0 %3261 }
 0x833   :  { %4326 = vlog2.f32 %v3262_v42 }
 0x834   :  { %v3409_v61 = vsub.f32 %v6270_v36, %v3347_v12 }
 0x835   :  { %v4323_v31 = vpop.eup %4322 }
 0x836   :  { %3441 = vst.msk [vmem:[%s6589_s4 + $0x8] sm:$0xff] %vm3055_vm1, %v3409_v61  ;;  %v3349_v63 = vmul.f32 0.6931472, %v4323_v31  ;;  %v3265_v16 = vpop.xlane.xlu1 %3264 }
 0x837   :  { %4328 = vlog2.f32 %v3265_v16 }
 0x838   :  { %v3410_v26 = vsub.f32 %v6274_v29, %v3349_v63 }
 0x839   :  { %v4325_v5 = vpop.eup %4324 }
 0x83a   :  { %3442 = vst.msk [vmem:[%s6589_s4 + $0x10] sm:$0xff] %vm3055_vm1, %v3410_v26  ;;  %v3351_v7 = vmul.f32 0.6931472, %v4325_v5  ;;  %v3268_v43 = vpop.xlane.xlu0 %3267 }
 0x83b   :  { %4330 = vlog2.f32 %v3268_v43 }
 0x83c   :  { %v3411_v36 = vsub.f32 %v6278_v54, %v3351_v7 }
 0x83d   :  { %v4327_v22 = vpop.eup %4326 }
 0x83e   :  { %3443 = vst.msk [vmem:[%s6589_s4 + $0x18] sm:$0xff] %vm3055_vm1, %v3411_v36  ;;  %v3353_v58 = vmul.f32 0.6931472, %v4327_v22  ;;  %v3271_v28 = vpop.xlane.xlu1 %3270 }
 0x83f   :  { %4332 = vlog2.f32 %v3271_v28 }
 0x840   :  { %v3412_v29 = vsub.f32 %v6283_v56, %v3353_v58 }
 0x841   :  { %v4329_v2 = vpop.eup %4328 }
 0x842   :  { %3444 = vst.msk [vmem:[%s6589_s4 + $0x20] sm:$0xff] %vm3055_vm1, %v3412_v29  ;;  %v3355_v19 = vmul.f32 0.6931472, %v4329_v2  ;;  %v3274_v15 = vpop.xlane.xlu0 %3273 }
 0x843   :  { %4334 = vlog2.f32 %v3274_v15 }
 0x844   :  { %v3413_v54 = vsub.f32 %v6288_v41, %v3355_v19 }
 0x845   :  { %v4331_v11 = vpop.eup %4330 }
 0x846   :  { %3445 = vst.msk [vmem:[%s6589_s4 + $0x28] sm:$0xff] %vm3055_vm1, %v3413_v54  ;;  %v3357_v59 = vmul.f32 0.6931472, %v4331_v11  ;;  %v3277_v23 = vpop.xlane.xlu1 %3276 }
 0x847   :  { %4336 = vlog2.f32 %v3277_v23 }
 0x848   :  { %v3414_v56 = vsub.f32 %v6293_v25, %v3357_v59 }
 0x849   :  { %v4333_v35 = vpop.eup %4332 }
 0x84a   :  { %3446 = vst.msk [vmem:[%s6589_s4 + $0x30] sm:$0xff] %vm3055_vm1, %v3414_v56  ;;  %v3359_v39 = vmul.f32 0.6931472, %v4333_v35  ;;  %v3280_v47 = vpop.xlane.xlu0 %3279 }
 0x84b   :  { %4338 = vlog2.f32 %v3280_v47 }
 0x84c   :  { %v3415_v41 = vsub.f32 %v6298_v60, %v3359_v39 }
 0x84d   :  { %v4335_v45 = vpop.eup %4334 }
 0x84e   :  { %3447 = vst.msk [vmem:[%s6589_s4 + $0x38] sm:$0xff] %vm3055_vm1, %v3415_v41  ;;  %v3361_v62 = vmul.f32 0.6931472, %v4335_v45  ;;  %v3283_v14 = vpop.xlane.xlu1 %3282 }
 0x84f   :  { %4340 = vlog2.f32 %v3283_v14 }
 0x850   :  { %v3416_v25 = vsub.f32 %v6303_v51, %v3361_v62 }
 0x851   :  { %v4337_v49 = vpop.eup %4336 }
 0x852   :  { %3448 = vst.msk [vmem:[%s6589_s4 + $0x40] sm:$0xff] %vm3055_vm1, %v3416_v25  ;;  %v3363_v55 = vmul.f32 0.6931472, %v4337_v49  ;;  %v3286_v32 = vpop.xlane.xlu0 %3285 }
 0x853   :  { %4342 = vlog2.f32 %v3286_v32 }
 0x854   :  { %v3417_v60 = vsub.f32 %v6308_v17, %v3363_v55 }
 0x855   :  { %v4339_v38 = vpop.eup %4338 }
 0x856   :  { %3449 = vst.msk [vmem:[%s6589_s4 + $0x48] sm:$0xff] %vm3055_vm1, %v3417_v60  ;;  %v3365_v20 = vmul.f32 0.6931472, %v4339_v38  ;;  %v3289_v50 = vpop.xlane.xlu1 %3288 }
 0x857   :  { %4344 = vlog2.f32 %v3289_v50 }
 0x858   :  { %v3418_v51 = vsub.f32 %v6313_v4, %v3365_v20 }
 0x859   :  { %v4341_v18 = vpop.eup %4340 }
 0x85a   :  { %3450 = vst.msk [vmem:[%s6589_s4 + $0x50] sm:$0xff] %vm3055_vm1, %v3418_v51  ;;  %v3367_v10 = vmul.f32 0.6931472, %v4341_v18  ;;  %v3292_v12 = vpop.xlane.xlu0 %3291 }
 0x85b   :  { %4346 = vlog2.f32 %v3292_v12 }
 0x85c   :  { %v3419_v17 = vsub.f32 %v6318_v6, %v3367_v10 }
 0x85d   :  { %v4343_v42 = vpop.eup %4342 }
 0x85e   :  { %3451 = vst.msk [vmem:[%s6589_s4 + $0x58] sm:$0xff] %vm3055_vm1, %v3419_v17  ;;  %v3369_v61 = vmul.f32 0.6931472, %v4343_v42  ;;  %v3295_v31 = vpop.xlane.xlu1 %3294 }
 0x85f   :  { %4348 = vlog2.f32 %v3295_v31 }
 0x860   :  { %v3420_v4 = vsub.f32 %v6323_v24, %v3369_v61 }
 0x861   :  { %v4345_v63 = vpop.eup %4344 }
 0x862   :  { %3452 = vst.msk [vmem:[%s6589_s4 + $0x60] sm:$0xff] %vm3055_vm1, %v3420_v4  ;;  %v3371_v16 = vmul.f32 0.6931472, %v4345_v63  ;;  %v3298_v26 = vpop.xlane.xlu0 %3297 }
 0x863   :  { %4350 = vlog2.f32 %v3298_v26 }
 0x864   :  { %v3421_v6 = vsub.f32 %v6328_v0, %v3371_v16 }
 0x865   :  { %v4347_v5 = vpop.eup %4346 }
 0x866   :  { %3453 = vst.msk [vmem:[%s6589_s4 + $0x68] sm:$0xff] %vm3055_vm1, %v3421_v6  ;;  %v3373_v7 = vmul.f32 0.6931472, %v4347_v5  ;;  %v3301_v43 = vpop.xlane.xlu1 %3300 }
 0x867   :  { %4352 = vlog2.f32 %v3301_v43 }
 0x868   :  { %v3422_v24 = vsub.f32 %v6333_v27, %v3373_v7 }
 0x869   :  { %v4349_v36 = vpop.eup %4348 }
 0x86a   :  { %3454 = vst.msk [vmem:[%s6589_s4 + $0x70] sm:$0xff] %vm3055_vm1, %v3422_v24  ;;  %v3375_v22 = vmul.f32 0.6931472, %v4349_v36  ;;  %v3304_v58 = vpop.xlane.xlu0 %3303 }
 0x86b   :  { %4354 = vlog2.f32 %v3304_v58 }
 0x86c   :  { %v3423_v0 = vsub.f32 %v6338_v9, %v3375_v22 }
 0x86d   :  { %v4351_v28 = vpop.eup %4350 }
 0x86e   :  { %3455 = vst.msk [vmem:[%s6589_s4 + $0x78] sm:$0xff] %vm3055_vm1, %v3423_v0  ;;  %v3377_v29 = vmul.f32 0.6931472, %v4351_v28  ;;  %v3307_v2 = vpop.xlane.xlu1 %3306 }
 0x86f   :  { %4356 = vlog2.f32 %v3307_v2 }
 0x870   :  { %v3424_v27 = vsub.f32 %v6343_v1, %v3377_v29 }
 0x871   :  { %v4353_v19 = vpop.eup %4352 }
 0x872   :  { %3456 = vst.msk [vmem:[%s6589_s4 + $0x80] sm:$0xff] %vm3055_vm1, %v3424_v27  ;;  %v3379_v15 = vmul.f32 0.6931472, %v4353_v19  ;;  %v3310_v54 = vpop.xlane.xlu0 %3309 }
 0x873   :  { %4358 = vlog2.f32 %v3310_v54 }
 0x874   :  { %v3425_v9 = vsub.f32 %v6348_v21, %v3379_v15 }
 0x875   :  { %v4355_v11 = vpop.eup %4354 }
 0x876   :  { %3457 = vst.msk [vmem:[%s6589_s4 + $0x88] sm:$0xff] %vm3055_vm1, %v3425_v9  ;;  %v3381_v59 = vmul.f32 0.6931472, %v4355_v11  ;;  %v3313_v23 = vpop.xlane.xlu1 %3312 }
 0x877   :  { %4360 = vlog2.f32 %v3313_v23 }
 0x878   :  { %v3426_v1 = vsub.f32 %v6353_v34, %v3381_v59 }
 0x879   :  { %v4357_v56 = vpop.eup %4356 }
 0x87a   :  { %3458 = vst.msk [vmem:[%s6589_s4 + $0x90] sm:$0xff] %vm3055_vm1, %v3426_v1  ;;  %v3383_v35 = vmul.f32 0.6931472, %v4357_v56  ;;  %v3316_v39 = vpop.xlane.xlu0 %3315 }
 0x87b   :  { %4362 = vlog2.f32 %v3316_v39 }
 0x87c   :  { %v3427_v21 = vsub.f32 %v6358_v48, %v3383_v35 }
 0x87d   :  { %v4359_v47 = vpop.eup %4358 }
 0x87e   :  { %3459 = vst.msk [vmem:[%s6589_s4 + $0x98] sm:$0xff] %vm3055_vm1, %v3427_v21  ;;  %v3385_v41 = vmul.f32 0.6931472, %v4359_v47  ;;  %v3319_v45 = vpop.xlane.xlu1 %3318 }
 0x87f   :  { %4364 = vlog2.f32 %v3319_v45 }
 0x880   :  { %v3428_v34 = vsub.f32 %v6363_v46, %v3385_v41 }
 0x881   :  { %v4361_v62 = vpop.eup %4360 }
 0x882   :  { %3460 = vst.msk [vmem:[%s6589_s4 + $0xa0] sm:$0xff] %vm3055_vm1, %v3428_v34  ;;  %v3387_v14 = vmul.f32 0.6931472, %v4361_v62  ;;  %v3322_v25 = vpop.xlane.xlu0 %3321 }
 0x883   :  { %4366 = vlog2.f32 %v3322_v25 }
 0x884   :  { %v3429_v48 = vsub.f32 %v6368_v52, %v3387_v14 }
 0x885   :  { %v4363_v49 = vpop.eup %4362 }
 0x886   :  { %3461 = vst.msk [vmem:[%s6589_s4 + $0xa8] sm:$0xff] %vm3055_vm1, %v3429_v48  ;;  %v3389_v55 = vmul.f32 0.6931472, %v4363_v49  ;;  %v3325_v32 = vpop.xlane.xlu1 %3324 }
 0x887   :  { %4368 = vlog2.f32 %v3325_v32 }
 0x888   :  { %v3430_v46 = vsub.f32 %v6373_v33, %v3389_v55 }
 0x889   :  { %v4365_v60 = vpop.eup %4364 }
 0x88a   :  { %3462 = vst.msk [vmem:[%s6589_s4 + $0xb0] sm:$0xff] %vm3055_vm1, %v3430_v46  ;;  %v3391_v38 = vmul.f32 0.6931472, %v4365_v60  ;;  %v3328_v20 = vpop.xlane.xlu0 %3327 }
 0x88b   :  { %4370 = vlog2.f32 %v3328_v20 }
 0x88c   :  { %v3431_v52 = vsub.f32 %v6378_v8, %v3391_v38 }
 0x88d   :  { %v4367_v50 = vpop.eup %4366 }
 0x88e   :  { %3463 = vst.msk [vmem:[%s6589_s4 + $0xb8] sm:$0xff] %vm3055_vm1, %v3431_v52  ;;  %v3393_v51 = vmul.f32 0.6931472, %v4367_v50  ;;  %v3331_v18 = vpop.xlane.xlu1 %3330 }
 0x88f   :  { %4372 = vlog2.f32 %v3331_v18 }
 0x890   :  { %v3432_v33 = vsub.f32 %v6383_v3, %v3393_v51 }
 0x891   :  { %v4369_v10 = vpop.eup %4368 }
 0x892   :  { %3464 = vst.msk [vmem:[%s6589_s4 + $0xc0] sm:$0xff] %vm3055_vm1, %v3432_v33  ;;  %v3395_v12 = vmul.f32 0.6931472, %v4369_v10  ;;  %v3334_v17 = vpop.xlane.xlu0 %3333 }
 0x893   :  { %4374 = vlog2.f32 %v3334_v17 }
 0x894   :  { %v3433_v8 = vsub.f32 %v6388_v53, %v3395_v12 }
 0x895   :  { %v4371_v42 = vpop.eup %4370 }
 0x896   :  { %3465 = vst.msk [vmem:[%s6589_s4 + $0xc8] sm:$0xff] %vm3055_vm1, %v3433_v8  ;;  %v3397_v61 = vmul.f32 0.6931472, %v4371_v42  ;;  %v3337_v31 = vpop.xlane.xlu1 %3336 }
 0x897   :  { %4376 = vlog2.f32 %v3337_v31 }
 0x898   :  { %v3434_v3 = vsub.f32 %v6393_v44, %v3397_v61 }
 0x899   :  { %v4373_v4 = vpop.eup %4372 }
 0x89a   :  { %3466 = vst.msk [vmem:[%s6589_s4 + $0xd0] sm:$0xff] %vm3055_vm1, %v3434_v3  ;;  %v3399_v63 = vmul.f32 0.6931472, %v4373_v4  ;;  %v3340_v16 = vpop.xlane.xlu0 %3339 }
 0x89b   :  { %4378 = vlog2.f32 %v3340_v16 }
 0x89c   :  { %v3435_v53 = vsub.f32 %v6398_v13, %v3399_v63 }
 0x89d   :  { %v4375_v26 = vpop.eup %4374 }
 0x89e   :  { %3467 = vst.msk [vmem:[%s6589_s4 + $0xd8] sm:$0xff] %vm3055_vm1, %v3435_v53  ;;  %v3401_v6 = vmul.f32 0.6931472, %v4375_v26  ;;  %v3343_v5 = vpop.xlane.xlu1 %3342 }
 0x89f   :  { %4380 = vlog2.f32 %v3343_v5 }
 0x8a0   :  { %v3436_v44 = vsub.f32 %v6403_v30, %v3401_v6 }
 0x8a1   :  { %v4377_v7 = vpop.eup %4376 }
 0x8a2   :  { %3468 = vst.msk [vmem:[%s6589_s4 + $0xe0] sm:$0xff] %vm3055_vm1, %v3436_v44  ;;  %v3403_v43 = vmul.f32 0.6931472, %v4377_v7 }
 0x8a4   :  { %v3437_v13 = vsub.f32 %v6408_v40, %v3403_v43 }
 0x8a5   :  { %v4379_v24 = vpop.eup %4378 }
 0x8a6   :  { %3469 = vst.msk [vmem:[%s6589_s4 + $0xe8] sm:$0xff] %vm3055_vm1, %v3437_v13  ;;  %v3405_v36 = vmul.f32 0.6931472, %v4379_v24 }
 0x8a8   :  { %v3438_v22 = vsub.f32 %v6413_v57, %v3405_v36 }
 0x8a9   :  { %v4381_v58 = vpop.eup %4380 }
 0x8aa   :  { %3470 = vst.msk [vmem:[%s6589_s4 + $0xf0] sm:$0xff] %vm3055_vm1, %v3438_v22  ;;  %v3407_v30 = vmul.f32 0.6931472, %v4381_v58 }
 0x8ac   :  { %v3439_v0 = vsub.f32 %v6418_v37, %v3407_v30 }
 0x8ae   :  { %3471 = vst.msk [vmem:[%s6589_s4 + $0xf8] sm:$0xff] %vm3055_vm1, %v3439_v0 }

</bundles_post_ra>
